<compile_context>
chip_gen: v7x
topology: tpu7x:2x2x1
jax: 0.10.0
libtpu: 0.0.40
codegen_flags: <defaults>
</compile_context>

<pallas_src>
import functools
import math

import jax
import jax.numpy as jnp
from jax.experimental import pallas as pl
from jax.experimental.pallas import tpu as pltpu


COMPUTE_DTYPE = jnp.bfloat16   # MXU operand dtype (f32 accumulation via preferred_element_type)


# ----------------------------- in-kernel helpers -----------------------------

def _mish(x):
    # mish(x) = x * tanh(softplus(x)), numerically stable softplus
    sp = jnp.maximum(x, 0.0) + jnp.log1p(jnp.exp(-jnp.abs(x)))
    return x * jnp.tanh(sp)


# ----------------------------- fused Pallas kernel ----------------------------

def _fused_kernel(*refs, names, n_agents, down_acts, compute_dtype):
    """Entire SharedAttentionAutoEncoder forward for one batch tile.

    refs = (pe_ref, x_ref, *weight_refs, out_ref)
      pe_ref : [tile_b, dim]          sinusoidal time embedding (per batch row)
      x_ref  : [n_agents, tile_b, td] input (agent axis leading → safe ref[k] slicing)
      out_ref: [n_agents, tile_b, td]
    """
    r = dict(zip(names, refs[:-1]))
    out_ref = refs[-1]
    cd = compute_dtype
    a = n_agents

    def dot(v, wname):
        # bf16 x bf16 -> f32 accumulate on the MXU
        return jnp.dot(v.astype(cd), r[wname][...].astype(cd),
                       preferred_element_type=jnp.float32)

    def bias(bname):
        return r[bname][...].astype(jnp.float32)

    # ---- time MLP: computed ONCE per batch row; all agents share it ----------
    pe = r["pe"][...].astype(jnp.float32)                          # [tb, dim]
    th = _mish(dot(pe, "time_w1") + bias("time_b1"))
    t_emb = dot(th, "time_w2") + bias("time_b2")                   # [tb, dim]
    mish_t = _mish(t_emb)                                          # hoisted Mish(t)

    # TODO(synk): TemporalMlpBlock residual/activation ordering assumed as
    #             out = act(h @ w2 + b2) + (x @ wr + br); verify vs. reference.
    def temporal_down(v, p, out_act):
        h = _mish(dot(v, p + "_w1") + bias(p + "_b1"))
        h = h + dot(mish_t, p + "_wt") + bias(p + "_bt")
        o = dot(h, p + "_w2") + bias(p + "_b2")
        if out_act == "mish":
            o = _mish(o)
        return o + dot(v, p + "_wr") + bias(p + "_br")

    def temporal_up(v, hdn, p):
        # concat([v, hdn], -1) @ W  ==  v @ W_x + hdn @ W_h   (concat-free)
        h = _mish(dot(v, p + "_w1x") + dot(hdn, p + "_w1h") + bias(p + "_b1"))
        h = h + dot(mish_t, p + "_wt") + bias(p + "_bt")
        o = _mish(dot(h, p + "_w2") + bias(p + "_b2"))
        return o + dot(v, p + "_wrx") + dot(hdn, p + "_wrh") + bias(p + "_br")

    def self_attn(xs, p):
        # fused score-MLP + agent-axis softmax + gating (agent axis = python list)
        ss = []
        for v in xs:
            hidden = jnp.maximum(dot(v, p + "_w1") + bias(p + "_b1"), 0.0)   # ReLU
            ss.append(dot(hidden, p + "_w2") + bias(p + "_b2"))
        m = ss[0]
        for s in ss[1:]:
            m = jnp.maximum(m, s)
        es = [jnp.exp(s - m) for s in ss]
        denom = es[0]
        for e in es[1:]:
            denom = denom + e
        inv = pl.reciprocal(denom, approx=True)                    # EUP, f32
        return [v * (e * inv) for v, e in zip(xs, es)]

    # ---- per-agent activations: list of [tb, feat] tiles ----------------------
    xs = [r["x"][k].astype(jnp.float32) for k in range(a)]

    hs = []
    for i, act in enumerate(down_acts):
        xs = [temporal_down(v, f"down{i}", act) for v in xs]
        hs.append(xs)

    xs = self_attn(xs, "attn0")

    n_ups = len(down_acts) - 1
    for li in range(n_ups):
        hdn = self_attn(hs.pop(), f"attn{li + 1}")
        xs = [temporal_up(v, hv, f"up{li}") for v, hv in zip(xs, hdn)]

    for k in range(a):
        y = _mish(dot(xs[k], "final_w1") + bias("final_b1"))
        y = dot(y, "final_w2") + bias("final_b2")                  # [tb, td]
        out_ref[k] = y.astype(out_ref.dtype)


# ----------------------------- parameters ------------------------------------

def _linear(key, din, dout, w_dtype=COMPUTE_DTYPE):
    kw, kb = jax.random.split(key)
    bound = 1.0 / math.sqrt(din)
    w = jax.random.uniform(kw, (din, dout), jnp.float32, -bound, bound).astype(w_dtype)
    b = jax.random.uniform(kb, (1, dout), jnp.float32, -bound, bound)
    return w, b


def _split_linear(key, din_x, din_h, dout, w_dtype=COMPUTE_DTYPE):
    # Single Linear(din_x + din_h, dout) split into two weight halves (concat-free).
    kx, kh, kb = jax.random.split(key, 3)
    bound = 1.0 / math.sqrt(din_x + din_h)
    wx = jax.random.uniform(kx, (din_x, dout), jnp.float32, -bound, bound).astype(w_dtype)
    wh = jax.random.uniform(kh, (din_h, dout), jnp.float32, -bound, bound).astype(w_dtype)
    b = jax.random.uniform(kb, (1, dout), jnp.float32, -bound, bound)
    return wx, wh, b


def init_params(key, transition_dim, dim, dim_mults, n_agents, attn_hidden=128):
    dims = [transition_dim] + [dim * m for m in dim_mults]
    in_out = list(zip(dims[:-1], dims[1:]))
    embed_dim = dim                       # returns_condition=False
    keys = iter(jax.random.split(key, 64))

    p = {}                                # flat name -> array (stable insertion order)
    meta = {"dim": dim, "transition_dim": transition_dim, "n_agents": n_agents}

    # time_mlp: SinusoidalPosEmb(dim) -> Linear(dim, 4*dim) -> Mish -> Linear(4*dim, dim)
    p["time_w1"], p["time_b1"] = _linear(next(keys), dim, dim * 4)
    p["time_w2"], p["time_b2"] = _linear(next(keys), dim * 4, dim)

    # downs
    down_acts = []
    n_res = len(in_out)
    for ind, (din, dout) in enumerate(in_out):
        is_last = ind >= n_res - 1
        pre = f"down{ind}"
        p[pre + "_w1"], p[pre + "_b1"] = _linear(next(keys), din, dout)
        p[pre + "_wt"], p[pre + "_bt"] = _linear(next(keys), embed_dim, dout)
        p[pre + "_w2"], p[pre + "_b2"] = _linear(next(keys), dout, dout)
        p[pre + "_wr"], p[pre + "_br"] = _linear(next(keys), din, dout)
        down_acts.append(None if is_last else "mish")

    # ups: TemporalMlpBlock(2*dout, din) with first/residual Linear split into x/h halves
    for ind, (din, dout) in enumerate(reversed(in_out[1:])):
        pre = f"up{ind}"
        p[pre + "_w1x"], p[pre + "_w1h"], p[pre + "_b1"] = _split_linear(next(keys), dout, dout, din)
        p[pre + "_wt"], p[pre + "_bt"] = _linear(next(keys), embed_dim, din)
        p[pre + "_w2"], p[pre + "_b2"] = _linear(next(keys), din, din)
        p[pre + "_wrx"], p[pre + "_wrh"], p[pre + "_br"] = _split_linear(next(keys), dout, dout, din)

    # final_mlp: Linear(dim, dim) -> Mish -> Linear(dim, transition_dim)
    p["final_w1"], p["final_b1"] = _linear(next(keys), dim, dim)
    p["final_w2"], p["final_b2"] = _linear(next(keys), dim, transition_dim)

    # self_attn blocks actually used in forward (module's self_attn[-1] is never called)
    attn_dims = [in_out[-1][1]] + [d for (_, d) in reversed(in_out)][: len(in_out) - 1]
    for i, d in enumerate(attn_dims):
        pre = f"attn{i}"
        p[pre + "_w1"], p[pre + "_b1"] = _linear(next(keys), d, attn_hidden)
        p[pre + "_w2"], p[pre + "_b2"] = _linear(next(keys), attn_hidden, d)

    meta["down_acts"] = tuple(down_acts)
    return p, meta


# ----------------------------- forward wrapper --------------------------------

def sinusoidal_pos_emb(t, dim):
    half = dim // 2
    denom = max(half - 1, 1)              # guard dim == 2
    freqs = jnp.exp(jnp.arange(half, dtype=jnp.float32) * -(math.log(10000.0) / denom))
    arg = t[:, None] * freqs[None, :]
    return jnp.concatenate([jnp.sin(arg), jnp.cos(arg)], axis=-1)   # [B, dim]


def _pick_tile_b(batch):
    # batch tile: whole batch if small / not 8-aligned, else a multiple of 8 up to 128.
    if batch % 8 != 0 or batch <= 128:
        return batch
    tb = 128
    while batch % tb != 0:
        tb -= 8
    return max(tb, 8)


def shared_attention_autoencoder_forward(params, x, time, *, meta):
    """x: [batch, horizon=1, n_agents, transition_dim]; time: [batch]."""
    b, hor, a, td = x.shape
    assert hor == 1, "only horizon=1 is supported"
    assert a == meta["n_agents"]
    dim = meta["dim"]
    down_acts = meta["down_acts"]

    pe = sinusoidal_pos_emb(time.astype(jnp.float32), dim)          # [b, dim] (per batch row)
    x_ab = jnp.transpose(x.reshape(b, a, td), (1, 0, 2))            # [a, b, td] agent-leading

    names = tuple(params.keys())
    weights = [params[n] for n in names]

    tile_b = _pick_tile_b(b)
    grid = (b // tile_b,)

    def _const_spec(shape):
        nd = len(shape)
        return pl.BlockSpec(shape, lambda i, _nd=nd: (0,) * _nd)    # whole array, fetched once

    in_specs = [
        pl.BlockSpec((tile_b, dim), lambda i: (i, 0)),              # pe  (batch-tiled)
        pl.BlockSpec((a, tile_b, td), lambda i: (0, i, 0)),         # x   (batch-tiled)
    ] + [_const_spec(w.shape) for w in weights]
    out_spec = pl.BlockSpec((a, tile_b, td), lambda i: (0, i, 0))

    kernel = functools.partial(
        _fused_kernel,
        names=("pe", "x") + names,
        n_agents=a,
        down_acts=down_acts,
        compute_dtype=COMPUTE_DTYPE,
    )

    out_abt = pl.pallas_call(
        kernel,
        out_shape=jax.ShapeDtypeStruct((a, b, td), jnp.float32),
        grid=grid,
        in_specs=in_specs,
        out_specs=out_spec,
        compiler_params=pltpu.CompilerParams(
            dimension_semantics=("parallel",),
        ),
    )(pe, x_ab, *weights)

    return jnp.transpose(out_abt, (1, 0, 2)).reshape(b, 1, a, td)


# ----------------------------- main ------------------------------------------

if __name__ == "__main__":
    key = jax.random.PRNGKey(0)
    kp, kx, kt = jax.random.split(key, 3)

    batch, n_agents, transition_dim, dim = 2, 2, 8, 32
    params, meta = init_params(kp, transition_dim, dim, (1, 2, 4), n_agents)

    x = jax.random.normal(kx, (batch, 1, n_agents, transition_dim), jnp.float32)
    time = jax.random.uniform(kt, (batch,), jnp.float32, 0.0, 100.0)

    fwd = jax.jit(functools.partial(shared_attention_autoencoder_forward, meta=meta))
    out = jax.block_until_ready(fwd(params, x, time))

    assert out.shape == (batch, 1, n_agents, transition_dim)
    assert bool(jnp.all(jnp.isfinite(out)))
    print("KERNEL_OK")
</pallas_src>

<mosaic_0001>
module attributes {stable_mosaic.version = 11 : i64} {
  func.func @_fused_kernel(%arg0: i32, %arg1: memref<2x32xf32, #tpu.memory_space<vmem>>, %arg2: memref<2x2x8xf32, #tpu.memory_space<vmem>>, %arg3: memref<1x128xf32, #tpu.memory_space<vmem>>, %arg4: memref<1x128xf32, #tpu.memory_space<vmem>>, %arg5: memref<128x128xbf16, #tpu.memory_space<vmem>>, %arg6: memref<128x128xbf16, #tpu.memory_space<vmem>>, %arg7: memref<1x128xf32, #tpu.memory_space<vmem>>, %arg8: memref<1x128xf32, #tpu.memory_space<vmem>>, %arg9: memref<128x128xbf16, #tpu.memory_space<vmem>>, %arg10: memref<128x128xbf16, #tpu.memory_space<vmem>>, %arg11: memref<1x128xf32, #tpu.memory_space<vmem>>, %arg12: memref<1x64xf32, #tpu.memory_space<vmem>>, %arg13: memref<64x128xbf16, #tpu.memory_space<vmem>>, %arg14: memref<128x64xbf16, #tpu.memory_space<vmem>>, %arg15: memref<1x32xf32, #tpu.memory_space<vmem>>, %arg16: memref<1x32xf32, #tpu.memory_space<vmem>>, %arg17: memref<1x32xf32, #tpu.memory_space<vmem>>, %arg18: memref<1x32xf32, #tpu.memory_space<vmem>>, %arg19: memref<8x32xbf16, #tpu.memory_space<vmem>>, %arg20: memref<32x32xbf16, #tpu.memory_space<vmem>>, %arg21: memref<8x32xbf16, #tpu.memory_space<vmem>>, %arg22: memref<32x32xbf16, #tpu.memory_space<vmem>>, %arg23: memref<1x64xf32, #tpu.memory_space<vmem>>, %arg24: memref<1x64xf32, #tpu.memory_space<vmem>>, %arg25: memref<1x64xf32, #tpu.memory_space<vmem>>, %arg26: memref<1x64xf32, #tpu.memory_space<vmem>>, %arg27: memref<32x64xbf16, #tpu.memory_space<vmem>>, %arg28: memref<64x64xbf16, #tpu.memory_space<vmem>>, %arg29: memref<32x64xbf16, #tpu.memory_space<vmem>>, %arg30: memref<32x64xbf16, #tpu.memory_space<vmem>>, %arg31: memref<1x128xf32, #tpu.memory_space<vmem>>, %arg32: memref<1x128xf32, #tpu.memory_space<vmem>>, %arg33: memref<1x128xf32, #tpu.memory_space<vmem>>, %arg34: memref<1x128xf32, #tpu.memory_space<vmem>>, %arg35: memref<64x128xbf16, #tpu.memory_space<vmem>>, %arg36: memref<128x128xbf16, #tpu.memory_space<vmem>>, %arg37: memref<64x128xbf16, #tpu.memory_space<vmem>>, %arg38: memref<32x128xbf16, #tpu.memory_space<vmem>>, %arg39: memref<1x32xf32, #tpu.memory_space<vmem>>, %arg40: memref<1x8xf32, #tpu.memory_space<vmem>>, %arg41: memref<32x32xbf16, #tpu.memory_space<vmem>>, %arg42: memref<32x8xbf16, #tpu.memory_space<vmem>>, %arg43: memref<1x128xf32, #tpu.memory_space<vmem>>, %arg44: memref<1x32xf32, #tpu.memory_space<vmem>>, %arg45: memref<32x128xbf16, #tpu.memory_space<vmem>>, %arg46: memref<128x32xbf16, #tpu.memory_space<vmem>>, %arg47: memref<1x64xf32, #tpu.memory_space<vmem>>, %arg48: memref<1x64xf32, #tpu.memory_space<vmem>>, %arg49: memref<1x64xf32, #tpu.memory_space<vmem>>, %arg50: memref<1x64xf32, #tpu.memory_space<vmem>>, %arg51: memref<128x64xbf16, #tpu.memory_space<vmem>>, %arg52: memref<128x64xbf16, #tpu.memory_space<vmem>>, %arg53: memref<64x64xbf16, #tpu.memory_space<vmem>>, %arg54: memref<128x64xbf16, #tpu.memory_space<vmem>>, %arg55: memref<128x64xbf16, #tpu.memory_space<vmem>>, %arg56: memref<32x64xbf16, #tpu.memory_space<vmem>>, %arg57: memref<1x32xf32, #tpu.memory_space<vmem>>, %arg58: memref<1x32xf32, #tpu.memory_space<vmem>>, %arg59: memref<1x32xf32, #tpu.memory_space<vmem>>, %arg60: memref<1x32xf32, #tpu.memory_space<vmem>>, %arg61: memref<64x32xbf16, #tpu.memory_space<vmem>>, %arg62: memref<64x32xbf16, #tpu.memory_space<vmem>>, %arg63: memref<32x32xbf16, #tpu.memory_space<vmem>>, %arg64: memref<64x32xbf16, #tpu.memory_space<vmem>>, %arg65: memref<64x32xbf16, #tpu.memory_space<vmem>>, %arg66: memref<32x32xbf16, #tpu.memory_space<vmem>>, %arg67: memref<2x2x8xf32, #tpu.memory_space<vmem>>) attributes {dimension_semantics = [#tpu.dimension_semantics<parallel>], iteration_bounds = array<i64: 1>, scalar_prefetch = 0 : i64, scratch_operands = 0 : i64, tpu.core_type = #tpu.core_type<tc>, window_params = [{transform_indices = @transform_0, window_bounds = array<i64: 2, 32>}, {transform_indices = @transform_1, window_bounds = array<i64: 2, 2, 8>}, {pipeline_mode = #tpu.pipeline_mode<synchronous>, transform_indices = @transform_2, window_bounds = array<i64: 1, 128>}, {pipeline_mode = #tpu.pipeline_mode<synchronous>, transform_indices = @transform_3, window_bounds = array<i64: 1, 128>}, {pipeline_mode = #tpu.pipeline_mode<synchronous>, transform_indices = @transform_4, window_bounds = array<i64: 128, 128>}, {pipeline_mode = #tpu.pipeline_mode<synchronous>, transform_indices = @transform_5, window_bounds = array<i64: 128, 128>}, {pipeline_mode = #tpu.pipeline_mode<synchronous>, transform_indices = @transform_6, window_bounds = array<i64: 1, 128>}, {pipeline_mode = #tpu.pipeline_mode<synchronous>, transform_indices = @transform_7, window_bounds = array<i64: 1, 128>}, {pipeline_mode = #tpu.pipeline_mode<synchronous>, transform_indices = @transform_8, window_bounds = array<i64: 128, 128>}, {pipeline_mode = #tpu.pipeline_mode<synchronous>, transform_indices = @transform_9, window_bounds = array<i64: 128, 128>}, {pipeline_mode = #tpu.pipeline_mode<synchronous>, transform_indices = @transform_10, window_bounds = array<i64: 1, 128>}, {pipeline_mode = #tpu.pipeline_mode<synchronous>, transform_indices = @transform_11, window_bounds = array<i64: 1, 64>}, {pipeline_mode = #tpu.pipeline_mode<synchronous>, transform_indices = @transform_12, window_bounds = array<i64: 64, 128>}, {pipeline_mode = #tpu.pipeline_mode<synchronous>, transform_indices = @transform_13, window_bounds = array<i64: 128, 64>}, {pipeline_mode = #tpu.pipeline_mode<synchronous>, transform_indices = @transform_14, window_bounds = array<i64: 1, 32>}, {pipeline_mode = #tpu.pipeline_mode<synchronous>, transform_indices = @transform_15, window_bounds = array<i64: 1, 32>}, {pipeline_mode = #tpu.pipeline_mode<synchronous>, transform_indices = @transform_16, window_bounds = array<i64: 1, 32>}, {pipeline_mode = #tpu.pipeline_mode<synchronous>, transform_indices = @transform_17, window_bounds = array<i64: 1, 32>}, {pipeline_mode = #tpu.pipeline_mode<synchronous>, transform_indices = @transform_18, window_bounds = array<i64: 8, 32>}, {pipeline_mode = #tpu.pipeline_mode<synchronous>, transform_indices = @transform_19, window_bounds = array<i64: 32, 32>}, {pipeline_mode = #tpu.pipeline_mode<synchronous>, transform_indices = @transform_20, window_bounds = array<i64: 8, 32>}, {pipeline_mode = #tpu.pipeline_mode<synchronous>, transform_indices = @transform_21, window_bounds = array<i64: 32, 32>}, {pipeline_mode = #tpu.pipeline_mode<synchronous>, transform_indices = @transform_22, window_bounds = array<i64: 1, 64>}, {pipeline_mode = #tpu.pipeline_mode<synchronous>, transform_indices = @transform_23, window_bounds = array<i64: 1, 64>}, {pipeline_mode = #tpu.pipeline_mode<synchronous>, transform_indices = @transform_24, window_bounds = array<i64: 1, 64>}, {pipeline_mode = #tpu.pipeline_mode<synchronous>, transform_indices = @transform_25, window_bounds = array<i64: 1, 64>}, {pipeline_mode = #tpu.pipeline_mode<synchronous>, transform_indices = @transform_26, window_bounds = array<i64: 32, 64>}, {pipeline_mode = #tpu.pipeline_mode<synchronous>, transform_indices = @transform_27, window_bounds = array<i64: 64, 64>}, {pipeline_mode = #tpu.pipeline_mode<synchronous>, transform_indices = @transform_28, window_bounds = array<i64: 32, 64>}, {pipeline_mode = #tpu.pipeline_mode<synchronous>, transform_indices = @transform_29, window_bounds = array<i64: 32, 64>}, {pipeline_mode = #tpu.pipeline_mode<synchronous>, transform_indices = @transform_30, window_bounds = array<i64: 1, 128>}, {pipeline_mode = #tpu.pipeline_mode<synchronous>, transform_indices = @transform_31, window_bounds = array<i64: 1, 128>}, {pipeline_mode = #tpu.pipeline_mode<synchronous>, transform_indices = @transform_32, window_bounds = array<i64: 1, 128>}, {pipeline_mode = #tpu.pipeline_mode<synchronous>, transform_indices = @transform_33, window_bounds = array<i64: 1, 128>}, {pipeline_mode = #tpu.pipeline_mode<synchronous>, transform_indices = @transform_34, window_bounds = array<i64: 64, 128>}, {pipeline_mode = #tpu.pipeline_mode<synchronous>, transform_indices = @transform_35, window_bounds = array<i64: 128, 128>}, {pipeline_mode = #tpu.pipeline_mode<synchronous>, transform_indices = @transform_36, window_bounds = array<i64: 64, 128>}, {pipeline_mode = #tpu.pipeline_mode<synchronous>, transform_indices = @transform_37, window_bounds = array<i64: 32, 128>}, {pipeline_mode = #tpu.pipeline_mode<synchronous>, transform_indices = @transform_38, window_bounds = array<i64: 1, 32>}, {pipeline_mode = #tpu.pipeline_mode<synchronous>, transform_indices = @transform_39, window_bounds = array<i64: 1, 8>}, {pipeline_mode = #tpu.pipeline_mode<synchronous>, transform_indices = @transform_40, window_bounds = array<i64: 32, 32>}, {pipeline_mode = #tpu.pipeline_mode<synchronous>, transform_indices = @transform_41, window_bounds = array<i64: 32, 8>}, {pipeline_mode = #tpu.pipeline_mode<synchronous>, transform_indices = @transform_42, window_bounds = array<i64: 1, 128>}, {pipeline_mode = #tpu.pipeline_mode<synchronous>, transform_indices = @transform_43, window_bounds = array<i64: 1, 32>}, {pipeline_mode = #tpu.pipeline_mode<synchronous>, transform_indices = @transform_44, window_bounds = array<i64: 32, 128>}, {pipeline_mode = #tpu.pipeline_mode<synchronous>, transform_indices = @transform_45, window_bounds = array<i64: 128, 32>}, {pipeline_mode = #tpu.pipeline_mode<synchronous>, transform_indices = @transform_46, window_bounds = array<i64: 1, 64>}, {pipeline_mode = #tpu.pipeline_mode<synchronous>, transform_indices = @transform_47, window_bounds = array<i64: 1, 64>}, {pipeline_mode = #tpu.pipeline_mode<synchronous>, transform_indices = @transform_48, window_bounds = array<i64: 1, 64>}, {pipeline_mode = #tpu.pipeline_mode<synchronous>, transform_indices = @transform_49, window_bounds = array<i64: 1, 64>}, {pipeline_mode = #tpu.pipeline_mode<synchronous>, transform_indices = @transform_50, window_bounds = array<i64: 128, 64>}, {pipeline_mode = #tpu.pipeline_mode<synchronous>, transform_indices = @transform_51, window_bounds = array<i64: 128, 64>}, {pipeline_mode = #tpu.pipeline_mode<synchronous>, transform_indices = @transform_52, window_bounds = array<i64: 64, 64>}, {pipeline_mode = #tpu.pipeline_mode<synchronous>, transform_indices = @transform_53, window_bounds = array<i64: 128, 64>}, {pipeline_mode = #tpu.pipeline_mode<synchronous>, transform_indices = @transform_54, window_bounds = array<i64: 128, 64>}, {pipeline_mode = #tpu.pipeline_mode<synchronous>, transform_indices = @transform_55, window_bounds = array<i64: 32, 64>}, {pipeline_mode = #tpu.pipeline_mode<synchronous>, transform_indices = @transform_56, window_bounds = array<i64: 1, 32>}, {pipeline_mode = #tpu.pipeline_mode<synchronous>, transform_indices = @transform_57, window_bounds = array<i64: 1, 32>}, {pipeline_mode = #tpu.pipeline_mode<synchronous>, transform_indices = @transform_58, window_bounds = array<i64: 1, 32>}, {pipeline_mode = #tpu.pipeline_mode<synchronous>, transform_indices = @transform_59, window_bounds = array<i64: 1, 32>}, {pipeline_mode = #tpu.pipeline_mode<synchronous>, transform_indices = @transform_60, window_bounds = array<i64: 64, 32>}, {pipeline_mode = #tpu.pipeline_mode<synchronous>, transform_indices = @transform_61, window_bounds = array<i64: 64, 32>}, {pipeline_mode = #tpu.pipeline_mode<synchronous>, transform_indices = @transform_62, window_bounds = array<i64: 32, 32>}, {pipeline_mode = #tpu.pipeline_mode<synchronous>, transform_indices = @transform_63, window_bounds = array<i64: 64, 32>}, {pipeline_mode = #tpu.pipeline_mode<synchronous>, transform_indices = @transform_64, window_bounds = array<i64: 64, 32>}, {pipeline_mode = #tpu.pipeline_mode<synchronous>, transform_indices = @transform_65, window_bounds = array<i64: 32, 32>}, {transform_indices = @transform_66, window_bounds = array<i64: 2, 2, 8>}]} {
    %c0 = arith.constant 0 : index
    %c0_0 = arith.constant 0 : index
    %0 = vector.load %arg1[%c0, %c0_0] : memref<2x32xf32, #tpu.memory_space<vmem>>, vector<2x32xf32>
    %1 = arith.truncf %0 : vector<2x32xf32> to vector<2x32xbf16>
    %c0_1 = arith.constant 0 : index
    %c0_2 = arith.constant 0 : index
    %2 = vector.load %arg45[%c0_1, %c0_2] : memref<32x128xbf16, #tpu.memory_space<vmem>>, vector<32x128xbf16>
    %cst = arith.constant dense<0.000000e+00> : vector<2x128xf32>
    %3 = tpu.matmul %1, %2, %cst {dimension_numbers = #tpu.dot_dimension_numbers<[1], [0], [0], [1], [0, 0, 1, 1], [], []>} : vector<2x32xbf16>, vector<32x128xbf16>, vector<2x128xf32> -> vector<2x128xf32>
    %c0_3 = arith.constant 0 : index
    %c0_4 = arith.constant 0 : index
    %4 = vector.load %arg43[%c0_3, %c0_4] : memref<1x128xf32, #tpu.memory_space<vmem>>, vector<1x128xf32>
    %5 = vector.broadcast %4 : vector<1x128xf32> to vector<2x128xf32>
    %6 = arith.addf %3, %5 : vector<2x128xf32>
    %cst_5 = arith.constant 0.000000e+00 : f32
    %7 = vector.broadcast %cst_5 : f32 to vector<2x128xf32>
    %8 = arith.maximumf %6, %7 : vector<2x128xf32>
    %9 = math.absf %6 : vector<2x128xf32>
    %cst_6 = arith.constant 0.000000e+00 : f32
    %10 = vector.broadcast %cst_6 : f32 to vector<2x128xf32>
    %11 = arith.subf %10, %9 : vector<2x128xf32>
    %12 = math.exp %11 : vector<2x128xf32>
    %13 = math.log1p %12 : vector<2x128xf32>
    %14 = arith.addf %8, %13 : vector<2x128xf32>
    %15 = math.tanh %14 : vector<2x128xf32>
    %16 = arith.mulf %6, %15 : vector<2x128xf32>
    %17 = arith.truncf %16 : vector<2x128xf32> to vector<2x128xbf16>
    %c0_7 = arith.constant 0 : index
    %c0_8 = arith.constant 0 : index
    %18 = vector.load %arg46[%c0_7, %c0_8] : memref<128x32xbf16, #tpu.memory_space<vmem>>, vector<128x32xbf16>
    %cst_9 = arith.constant dense<0.000000e+00> : vector<2x32xf32>
    %19 = tpu.matmul %17, %18, %cst_9 {dimension_numbers = #tpu.dot_dimension_numbers<[1], [0], [0], [1], [0, 0, 1, 1], [], []>} : vector<2x128xbf16>, vector<128x32xbf16>, vector<2x32xf32> -> vector<2x32xf32>
    %c0_10 = arith.constant 0 : index
    %c0_11 = arith.constant 0 : index
    %20 = vector.load %arg44[%c0_10, %c0_11] : memref<1x32xf32, #tpu.memory_space<vmem>>, vector<1x32xf32>
    %21 = vector.broadcast %20 : vector<1x32xf32> to vector<2x32xf32>
    %22 = arith.addf %19, %21 : vector<2x32xf32>
    %cst_12 = arith.constant 0.000000e+00 : f32
    %23 = vector.broadcast %cst_12 : f32 to vector<2x32xf32>
    %24 = arith.maximumf %22, %23 : vector<2x32xf32>
    %25 = math.absf %22 : vector<2x32xf32>
    %cst_13 = arith.constant 0.000000e+00 : f32
    %26 = vector.broadcast %cst_13 : f32 to vector<2x32xf32>
    %27 = arith.subf %26, %25 : vector<2x32xf32>
    %28 = math.exp %27 : vector<2x32xf32>
    %29 = math.log1p %28 : vector<2x32xf32>
    %30 = arith.addf %24, %29 : vector<2x32xf32>
    %31 = math.tanh %30 : vector<2x32xf32>
    %32 = arith.mulf %22, %31 : vector<2x32xf32>
    %c0_14 = arith.constant 0 : index
    %c0_15 = arith.constant 0 : index
    %c0_16 = arith.constant 0 : index
    %33 = vector.load %arg2[%c0_14, %c0_15, %c0_16] : memref<2x2x8xf32, #tpu.memory_space<vmem>>, vector<1x2x8xf32>
    %34 = vector.shape_cast %33 : vector<1x2x8xf32> to vector<2x8xf32>
    %c1 = arith.constant 1 : index
    %c0_17 = arith.constant 0 : index
    %c0_18 = arith.constant 0 : index
    %35 = vector.load %arg2[%c1, %c0_17, %c0_18] : memref<2x2x8xf32, #tpu.memory_space<vmem>>, vector<1x2x8xf32>
    %36 = vector.shape_cast %35 : vector<1x2x8xf32> to vector<2x8xf32>
    %37 = arith.truncf %34 : vector<2x8xf32> to vector<2x8xbf16>
    %c0_19 = arith.constant 0 : index
    %c0_20 = arith.constant 0 : index
    %38 = vector.load %arg19[%c0_19, %c0_20] : memref<8x32xbf16, #tpu.memory_space<vmem>>, vector<8x32xbf16>
    %cst_21 = arith.constant dense<0.000000e+00> : vector<2x32xf32>
    %39 = tpu.matmul %37, %38, %cst_21 {dimension_numbers = #tpu.dot_dimension_numbers<[1], [0], [0], [1], [0, 0, 1, 1], [], []>} : vector<2x8xbf16>, vector<8x32xbf16>, vector<2x32xf32> -> vector<2x32xf32>
    %c0_22 = arith.constant 0 : index
    %c0_23 = arith.constant 0 : index
    %40 = vector.load %arg15[%c0_22, %c0_23] : memref<1x32xf32, #tpu.memory_space<vmem>>, vector<1x32xf32>
    %41 = vector.broadcast %40 : vector<1x32xf32> to vector<2x32xf32>
    %42 = arith.addf %39, %41 : vector<2x32xf32>
    %cst_24 = arith.constant 0.000000e+00 : f32
    %43 = vector.broadcast %cst_24 : f32 to vector<2x32xf32>
    %44 = arith.maximumf %42, %43 : vector<2x32xf32>
    %45 = math.absf %42 : vector<2x32xf32>
    %cst_25 = arith.constant 0.000000e+00 : f32
    %46 = vector.broadcast %cst_25 : f32 to vector<2x32xf32>
    %47 = arith.subf %46, %45 : vector<2x32xf32>
    %48 = math.exp %47 : vector<2x32xf32>
    %49 = math.log1p %48 : vector<2x32xf32>
    %50 = arith.addf %44, %49 : vector<2x32xf32>
    %51 = math.tanh %50 : vector<2x32xf32>
    %52 = arith.mulf %42, %51 : vector<2x32xf32>
    %53 = arith.truncf %32 : vector<2x32xf32> to vector<2x32xbf16>
    %c0_26 = arith.constant 0 : index
    %c0_27 = arith.constant 0 : index
    %54 = vector.load %arg22[%c0_26, %c0_27] : memref<32x32xbf16, #tpu.memory_space<vmem>>, vector<32x32xbf16>
    %cst_28 = arith.constant dense<0.000000e+00> : vector<2x32xf32>
    %55 = tpu.matmul %53, %54, %cst_28 {dimension_numbers = #tpu.dot_dimension_numbers<[1], [0], [0], [1], [0, 0, 1, 1], [], []>} : vector<2x32xbf16>, vector<32x32xbf16>, vector<2x32xf32> -> vector<2x32xf32>
    %56 = arith.addf %52, %55 : vector<2x32xf32>
    %c0_29 = arith.constant 0 : index
    %c0_30 = arith.constant 0 : index
    %57 = vector.load %arg18[%c0_29, %c0_30] : memref<1x32xf32, #tpu.memory_space<vmem>>, vector<1x32xf32>
    %58 = vector.broadcast %57 : vector<1x32xf32> to vector<2x32xf32>
    %59 = arith.addf %56, %58 : vector<2x32xf32>
    %60 = arith.truncf %59 : vector<2x32xf32> to vector<2x32xbf16>
    %c0_31 = arith.constant 0 : index
    %c0_32 = arith.constant 0 : index
    %61 = vector.load %arg20[%c0_31, %c0_32] : memref<32x32xbf16, #tpu.memory_space<vmem>>, vector<32x32xbf16>
    %cst_33 = arith.constant dense<0.000000e+00> : vector<2x32xf32>
    %62 = tpu.matmul %60, %61, %cst_33 {dimension_numbers = #tpu.dot_dimension_numbers<[1], [0], [0], [1], [0, 0, 1, 1], [], []>} : vector<2x32xbf16>, vector<32x32xbf16>, vector<2x32xf32> -> vector<2x32xf32>
    %c0_34 = arith.constant 0 : index
    %c0_35 = arith.constant 0 : index
    %63 = vector.load %arg16[%c0_34, %c0_35] : memref<1x32xf32, #tpu.memory_space<vmem>>, vector<1x32xf32>
    %64 = vector.broadcast %63 : vector<1x32xf32> to vector<2x32xf32>
    %65 = arith.addf %62, %64 : vector<2x32xf32>
    %cst_36 = arith.constant 0.000000e+00 : f32
    %66 = vector.broadcast %cst_36 : f32 to vector<2x32xf32>
    %67 = arith.maximumf %65, %66 : vector<2x32xf32>
    %68 = math.absf %65 : vector<2x32xf32>
    %cst_37 = arith.constant 0.000000e+00 : f32
    %69 = vector.broadcast %cst_37 : f32 to vector<2x32xf32>
    %70 = arith.subf %69, %68 : vector<2x32xf32>
    %71 = math.exp %70 : vector<2x32xf32>
    %72 = math.log1p %71 : vector<2x32xf32>
    %73 = arith.addf %67, %72 : vector<2x32xf32>
    %74 = math.tanh %73 : vector<2x32xf32>
    %75 = arith.mulf %65, %74 : vector<2x32xf32>
    %76 = arith.truncf %34 : vector<2x8xf32> to vector<2x8xbf16>
    %c0_38 = arith.constant 0 : index
    %c0_39 = arith.constant 0 : index
    %77 = vector.load %arg21[%c0_38, %c0_39] : memref<8x32xbf16, #tpu.memory_space<vmem>>, vector<8x32xbf16>
    %cst_40 = arith.constant dense<0.000000e+00> : vector<2x32xf32>
    %78 = tpu.matmul %76, %77, %cst_40 {dimension_numbers = #tpu.dot_dimension_numbers<[1], [0], [0], [1], [0, 0, 1, 1], [], []>} : vector<2x8xbf16>, vector<8x32xbf16>, vector<2x32xf32> -> vector<2x32xf32>
    %79 = arith.addf %75, %78 : vector<2x32xf32>
    %c0_41 = arith.constant 0 : index
    %c0_42 = arith.constant 0 : index
    %80 = vector.load %arg17[%c0_41, %c0_42] : memref<1x32xf32, #tpu.memory_space<vmem>>, vector<1x32xf32>
    %81 = vector.broadcast %80 : vector<1x32xf32> to vector<2x32xf32>
    %82 = arith.addf %79, %81 : vector<2x32xf32>
    %83 = arith.truncf %36 : vector<2x8xf32> to vector<2x8xbf16>
    %c0_43 = arith.constant 0 : index
    %c0_44 = arith.constant 0 : index
    %84 = vector.load %arg19[%c0_43, %c0_44] : memref<8x32xbf16, #tpu.memory_space<vmem>>, vector<8x32xbf16>
    %cst_45 = arith.constant dense<0.000000e+00> : vector<2x32xf32>
    %85 = tpu.matmul %83, %84, %cst_45 {dimension_numbers = #tpu.dot_dimension_numbers<[1], [0], [0], [1], [0, 0, 1, 1], [], []>} : vector<2x8xbf16>, vector<8x32xbf16>, vector<2x32xf32> -> vector<2x32xf32>
    %c0_46 = arith.constant 0 : index
    %c0_47 = arith.constant 0 : index
    %86 = vector.load %arg15[%c0_46, %c0_47] : memref<1x32xf32, #tpu.memory_space<vmem>>, vector<1x32xf32>
    %87 = vector.broadcast %86 : vector<1x32xf32> to vector<2x32xf32>
    %88 = arith.addf %85, %87 : vector<2x32xf32>
    %cst_48 = arith.constant 0.000000e+00 : f32
    %89 = vector.broadcast %cst_48 : f32 to vector<2x32xf32>
    %90 = arith.maximumf %88, %89 : vector<2x32xf32>
    %91 = math.absf %88 : vector<2x32xf32>
    %cst_49 = arith.constant 0.000000e+00 : f32
    %92 = vector.broadcast %cst_49 : f32 to vector<2x32xf32>
    %93 = arith.subf %92, %91 : vector<2x32xf32>
    %94 = math.exp %93 : vector<2x32xf32>
    %95 = math.log1p %94 : vector<2x32xf32>
    %96 = arith.addf %90, %95 : vector<2x32xf32>
    %97 = math.tanh %96 : vector<2x32xf32>
    %98 = arith.mulf %88, %97 : vector<2x32xf32>
    %99 = arith.truncf %32 : vector<2x32xf32> to vector<2x32xbf16>
    %c0_50 = arith.constant 0 : index
    %c0_51 = arith.constant 0 : index
    %100 = vector.load %arg22[%c0_50, %c0_51] : memref<32x32xbf16, #tpu.memory_space<vmem>>, vector<32x32xbf16>
    %cst_52 = arith.constant dense<0.000000e+00> : vector<2x32xf32>
    %101 = tpu.matmul %99, %100, %cst_52 {dimension_numbers = #tpu.dot_dimension_numbers<[1], [0], [0], [1], [0, 0, 1, 1], [], []>} : vector<2x32xbf16>, vector<32x32xbf16>, vector<2x32xf32> -> vector<2x32xf32>
    %102 = arith.addf %98, %101 : vector<2x32xf32>
    %c0_53 = arith.constant 0 : index
    %c0_54 = arith.constant 0 : index
    %103 = vector.load %arg18[%c0_53, %c0_54] : memref<1x32xf32, #tpu.memory_space<vmem>>, vector<1x32xf32>
    %104 = vector.broadcast %103 : vector<1x32xf32> to vector<2x32xf32>
    %105 = arith.addf %102, %104 : vector<2x32xf32>
    %106 = arith.truncf %105 : vector<2x32xf32> to vector<2x32xbf16>
    %c0_55 = arith.constant 0 : index
    %c0_56 = arith.constant 0 : index
    %107 = vector.load %arg20[%c0_55, %c0_56] : memref<32x32xbf16, #tpu.memory_space<vmem>>, vector<32x32xbf16>
    %cst_57 = arith.constant dense<0.000000e+00> : vector<2x32xf32>
    %108 = tpu.matmul %106, %107, %cst_57 {dimension_numbers = #tpu.dot_dimension_numbers<[1], [0], [0], [1], [0, 0, 1, 1], [], []>} : vector<2x32xbf16>, vector<32x32xbf16>, vector<2x32xf32> -> vector<2x32xf32>
    %c0_58 = arith.constant 0 : index
    %c0_59 = arith.constant 0 : index
    %109 = vector.load %arg16[%c0_58, %c0_59] : memref<1x32xf32, #tpu.memory_space<vmem>>, vector<1x32xf32>
    %110 = vector.broadcast %109 : vector<1x32xf32> to vector<2x32xf32>
    %111 = arith.addf %108, %110 : vector<2x32xf32>
    %cst_60 = arith.constant 0.000000e+00 : f32
    %112 = vector.broadcast %cst_60 : f32 to vector<2x32xf32>
    %113 = arith.maximumf %111, %112 : vector<2x32xf32>
    %114 = math.absf %111 : vector<2x32xf32>
    %cst_61 = arith.constant 0.000000e+00 : f32
    %115 = vector.broadcast %cst_61 : f32 to vector<2x32xf32>
    %116 = arith.subf %115, %114 : vector<2x32xf32>
    %117 = math.exp %116 : vector<2x32xf32>
    %118 = math.log1p %117 : vector<2x32xf32>
    %119 = arith.addf %113, %118 : vector<2x32xf32>
    %120 = math.tanh %119 : vector<2x32xf32>
    %121 = arith.mulf %111, %120 : vector<2x32xf32>
    %122 = arith.truncf %36 : vector<2x8xf32> to vector<2x8xbf16>
    %c0_62 = arith.constant 0 : index
    %c0_63 = arith.constant 0 : index
    %123 = vector.load %arg21[%c0_62, %c0_63] : memref<8x32xbf16, #tpu.memory_space<vmem>>, vector<8x32xbf16>
    %cst_64 = arith.constant dense<0.000000e+00> : vector<2x32xf32>
    %124 = tpu.matmul %122, %123, %cst_64 {dimension_numbers = #tpu.dot_dimension_numbers<[1], [0], [0], [1], [0, 0, 1, 1], [], []>} : vector<2x8xbf16>, vector<8x32xbf16>, vector<2x32xf32> -> vector<2x32xf32>
    %125 = arith.addf %121, %124 : vector<2x32xf32>
    %c0_65 = arith.constant 0 : index
    %c0_66 = arith.constant 0 : index
    %126 = vector.load %arg17[%c0_65, %c0_66] : memref<1x32xf32, #tpu.memory_space<vmem>>, vector<1x32xf32>
    %127 = vector.broadcast %126 : vector<1x32xf32> to vector<2x32xf32>
    %128 = arith.addf %125, %127 : vector<2x32xf32>
    %129 = arith.truncf %82 : vector<2x32xf32> to vector<2x32xbf16>
    %c0_67 = arith.constant 0 : index
    %c0_68 = arith.constant 0 : index
    %130 = vector.load %arg27[%c0_67, %c0_68] : memref<32x64xbf16, #tpu.memory_space<vmem>>, vector<32x64xbf16>
    %cst_69 = arith.constant dense<0.000000e+00> : vector<2x64xf32>
    %131 = tpu.matmul %129, %130, %cst_69 {dimension_numbers = #tpu.dot_dimension_numbers<[1], [0], [0], [1], [0, 0, 1, 1], [], []>} : vector<2x32xbf16>, vector<32x64xbf16>, vector<2x64xf32> -> vector<2x64xf32>
    %c0_70 = arith.constant 0 : index
    %c0_71 = arith.constant 0 : index
    %132 = vector.load %arg23[%c0_70, %c0_71] : memref<1x64xf32, #tpu.memory_space<vmem>>, vector<1x64xf32>
    %133 = vector.broadcast %132 : vector<1x64xf32> to vector<2x64xf32>
    %134 = arith.addf %131, %133 : vector<2x64xf32>
    %cst_72 = arith.constant 0.000000e+00 : f32
    %135 = vector.broadcast %cst_72 : f32 to vector<2x64xf32>
    %136 = arith.maximumf %134, %135 : vector<2x64xf32>
    %137 = math.absf %134 : vector<2x64xf32>
    %cst_73 = arith.constant 0.000000e+00 : f32
    %138 = vector.broadcast %cst_73 : f32 to vector<2x64xf32>
    %139 = arith.subf %138, %137 : vector<2x64xf32>
    %140 = math.exp %139 : vector<2x64xf32>
    %141 = math.log1p %140 : vector<2x64xf32>
    %142 = arith.addf %136, %141 : vector<2x64xf32>
    %143 = math.tanh %142 : vector<2x64xf32>
    %144 = arith.mulf %134, %143 : vector<2x64xf32>
    %145 = arith.truncf %32 : vector<2x32xf32> to vector<2x32xbf16>
    %c0_74 = arith.constant 0 : index
    %c0_75 = arith.constant 0 : index
    %146 = vector.load %arg30[%c0_74, %c0_75] : memref<32x64xbf16, #tpu.memory_space<vmem>>, vector<32x64xbf16>
    %cst_76 = arith.constant dense<0.000000e+00> : vector<2x64xf32>
    %147 = tpu.matmul %145, %146, %cst_76 {dimension_numbers = #tpu.dot_dimension_numbers<[1], [0], [0], [1], [0, 0, 1, 1], [], []>} : vector<2x32xbf16>, vector<32x64xbf16>, vector<2x64xf32> -> vector<2x64xf32>
    %148 = arith.addf %144, %147 : vector<2x64xf32>
    %c0_77 = arith.constant 0 : index
    %c0_78 = arith.constant 0 : index
    %149 = vector.load %arg26[%c0_77, %c0_78] : memref<1x64xf32, #tpu.memory_space<vmem>>, vector<1x64xf32>
    %150 = vector.broadcast %149 : vector<1x64xf32> to vector<2x64xf32>
    %151 = arith.addf %148, %150 : vector<2x64xf32>
    %152 = arith.truncf %151 : vector<2x64xf32> to vector<2x64xbf16>
    %c0_79 = arith.constant 0 : index
    %c0_80 = arith.constant 0 : index
    %153 = vector.load %arg28[%c0_79, %c0_80] : memref<64x64xbf16, #tpu.memory_space<vmem>>, vector<64x64xbf16>
    %cst_81 = arith.constant dense<0.000000e+00> : vector<2x64xf32>
    %154 = tpu.matmul %152, %153, %cst_81 {dimension_numbers = #tpu.dot_dimension_numbers<[1], [0], [0], [1], [0, 0, 1, 1], [], []>} : vector<2x64xbf16>, vector<64x64xbf16>, vector<2x64xf32> -> vector<2x64xf32>
    %c0_82 = arith.constant 0 : index
    %c0_83 = arith.constant 0 : index
    %155 = vector.load %arg24[%c0_82, %c0_83] : memref<1x64xf32, #tpu.memory_space<vmem>>, vector<1x64xf32>
    %156 = vector.broadcast %155 : vector<1x64xf32> to vector<2x64xf32>
    %157 = arith.addf %154, %156 : vector<2x64xf32>
    %cst_84 = arith.constant 0.000000e+00 : f32
    %158 = vector.broadcast %cst_84 : f32 to vector<2x64xf32>
    %159 = arith.maximumf %157, %158 : vector<2x64xf32>
    %160 = math.absf %157 : vector<2x64xf32>
    %cst_85 = arith.constant 0.000000e+00 : f32
    %161 = vector.broadcast %cst_85 : f32 to vector<2x64xf32>
    %162 = arith.subf %161, %160 : vector<2x64xf32>
    %163 = math.exp %162 : vector<2x64xf32>
    %164 = math.log1p %163 : vector<2x64xf32>
    %165 = arith.addf %159, %164 : vector<2x64xf32>
    %166 = math.tanh %165 : vector<2x64xf32>
    %167 = arith.mulf %157, %166 : vector<2x64xf32>
    %168 = arith.truncf %82 : vector<2x32xf32> to vector<2x32xbf16>
    %c0_86 = arith.constant 0 : index
    %c0_87 = arith.constant 0 : index
    %169 = vector.load %arg29[%c0_86, %c0_87] : memref<32x64xbf16, #tpu.memory_space<vmem>>, vector<32x64xbf16>
    %cst_88 = arith.constant dense<0.000000e+00> : vector<2x64xf32>
    %170 = tpu.matmul %168, %169, %cst_88 {dimension_numbers = #tpu.dot_dimension_numbers<[1], [0], [0], [1], [0, 0, 1, 1], [], []>} : vector<2x32xbf16>, vector<32x64xbf16>, vector<2x64xf32> -> vector<2x64xf32>
    %171 = arith.addf %167, %170 : vector<2x64xf32>
    %c0_89 = arith.constant 0 : index
    %c0_90 = arith.constant 0 : index
    %172 = vector.load %arg25[%c0_89, %c0_90] : memref<1x64xf32, #tpu.memory_space<vmem>>, vector<1x64xf32>
    %173 = vector.broadcast %172 : vector<1x64xf32> to vector<2x64xf32>
    %174 = arith.addf %171, %173 : vector<2x64xf32>
    %175 = arith.truncf %128 : vector<2x32xf32> to vector<2x32xbf16>
    %c0_91 = arith.constant 0 : index
    %c0_92 = arith.constant 0 : index
    %176 = vector.load %arg27[%c0_91, %c0_92] : memref<32x64xbf16, #tpu.memory_space<vmem>>, vector<32x64xbf16>
    %cst_93 = arith.constant dense<0.000000e+00> : vector<2x64xf32>
    %177 = tpu.matmul %175, %176, %cst_93 {dimension_numbers = #tpu.dot_dimension_numbers<[1], [0], [0], [1], [0, 0, 1, 1], [], []>} : vector<2x32xbf16>, vector<32x64xbf16>, vector<2x64xf32> -> vector<2x64xf32>
    %c0_94 = arith.constant 0 : index
    %c0_95 = arith.constant 0 : index
    %178 = vector.load %arg23[%c0_94, %c0_95] : memref<1x64xf32, #tpu.memory_space<vmem>>, vector<1x64xf32>
    %179 = vector.broadcast %178 : vector<1x64xf32> to vector<2x64xf32>
    %180 = arith.addf %177, %179 : vector<2x64xf32>
    %cst_96 = arith.constant 0.000000e+00 : f32
    %181 = vector.broadcast %cst_96 : f32 to vector<2x64xf32>
    %182 = arith.maximumf %180, %181 : vector<2x64xf32>
    %183 = math.absf %180 : vector<2x64xf32>
    %cst_97 = arith.constant 0.000000e+00 : f32
    %184 = vector.broadcast %cst_97 : f32 to vector<2x64xf32>
    %185 = arith.subf %184, %183 : vector<2x64xf32>
    %186 = math.exp %185 : vector<2x64xf32>
    %187 = math.log1p %186 : vector<2x64xf32>
    %188 = arith.addf %182, %187 : vector<2x64xf32>
    %189 = math.tanh %188 : vector<2x64xf32>
    %190 = arith.mulf %180, %189 : vector<2x64xf32>
    %191 = arith.truncf %32 : vector<2x32xf32> to vector<2x32xbf16>
    %c0_98 = arith.constant 0 : index
    %c0_99 = arith.constant 0 : index
    %192 = vector.load %arg30[%c0_98, %c0_99] : memref<32x64xbf16, #tpu.memory_space<vmem>>, vector<32x64xbf16>
    %cst_100 = arith.constant dense<0.000000e+00> : vector<2x64xf32>
    %193 = tpu.matmul %191, %192, %cst_100 {dimension_numbers = #tpu.dot_dimension_numbers<[1], [0], [0], [1], [0, 0, 1, 1], [], []>} : vector<2x32xbf16>, vector<32x64xbf16>, vector<2x64xf32> -> vector<2x64xf32>
    %194 = arith.addf %190, %193 : vector<2x64xf32>
    %c0_101 = arith.constant 0 : index
    %c0_102 = arith.constant 0 : index
    %195 = vector.load %arg26[%c0_101, %c0_102] : memref<1x64xf32, #tpu.memory_space<vmem>>, vector<1x64xf32>
    %196 = vector.broadcast %195 : vector<1x64xf32> to vector<2x64xf32>
    %197 = arith.addf %194, %196 : vector<2x64xf32>
    %198 = arith.truncf %197 : vector<2x64xf32> to vector<2x64xbf16>
    %c0_103 = arith.constant 0 : index
    %c0_104 = arith.constant 0 : index
    %199 = vector.load %arg28[%c0_103, %c0_104] : memref<64x64xbf16, #tpu.memory_space<vmem>>, vector<64x64xbf16>
    %cst_105 = arith.constant dense<0.000000e+00> : vector<2x64xf32>
    %200 = tpu.matmul %198, %199, %cst_105 {dimension_numbers = #tpu.dot_dimension_numbers<[1], [0], [0], [1], [0, 0, 1, 1], [], []>} : vector<2x64xbf16>, vector<64x64xbf16>, vector<2x64xf32> -> vector<2x64xf32>
    %c0_106 = arith.constant 0 : index
    %c0_107 = arith.constant 0 : index
    %201 = vector.load %arg24[%c0_106, %c0_107] : memref<1x64xf32, #tpu.memory_space<vmem>>, vector<1x64xf32>
    %202 = vector.broadcast %201 : vector<1x64xf32> to vector<2x64xf32>
    %203 = arith.addf %200, %202 : vector<2x64xf32>
    %cst_108 = arith.constant 0.000000e+00 : f32
    %204 = vector.broadcast %cst_108 : f32 to vector<2x64xf32>
    %205 = arith.maximumf %203, %204 : vector<2x64xf32>
    %206 = math.absf %203 : vector<2x64xf32>
    %cst_109 = arith.constant 0.000000e+00 : f32
    %207 = vector.broadcast %cst_109 : f32 to vector<2x64xf32>
    %208 = arith.subf %207, %206 : vector<2x64xf32>
    %209 = math.exp %208 : vector<2x64xf32>
    %210 = math.log1p %209 : vector<2x64xf32>
    %211 = arith.addf %205, %210 : vector<2x64xf32>
    %212 = math.tanh %211 : vector<2x64xf32>
    %213 = arith.mulf %203, %212 : vector<2x64xf32>
    %214 = arith.truncf %128 : vector<2x32xf32> to vector<2x32xbf16>
    %c0_110 = arith.constant 0 : index
    %c0_111 = arith.constant 0 : index
    %215 = vector.load %arg29[%c0_110, %c0_111] : memref<32x64xbf16, #tpu.memory_space<vmem>>, vector<32x64xbf16>
    %cst_112 = arith.constant dense<0.000000e+00> : vector<2x64xf32>
    %216 = tpu.matmul %214, %215, %cst_112 {dimension_numbers = #tpu.dot_dimension_numbers<[1], [0], [0], [1], [0, 0, 1, 1], [], []>} : vector<2x32xbf16>, vector<32x64xbf16>, vector<2x64xf32> -> vector<2x64xf32>
    %217 = arith.addf %213, %216 : vector<2x64xf32>
    %c0_113 = arith.constant 0 : index
    %c0_114 = arith.constant 0 : index
    %218 = vector.load %arg25[%c0_113, %c0_114] : memref<1x64xf32, #tpu.memory_space<vmem>>, vector<1x64xf32>
    %219 = vector.broadcast %218 : vector<1x64xf32> to vector<2x64xf32>
    %220 = arith.addf %217, %219 : vector<2x64xf32>
    %221 = arith.truncf %174 : vector<2x64xf32> to vector<2x64xbf16>
    %c0_115 = arith.constant 0 : index
    %c0_116 = arith.constant 0 : index
    %222 = vector.load %arg35[%c0_115, %c0_116] : memref<64x128xbf16, #tpu.memory_space<vmem>>, vector<64x128xbf16>
    %cst_117 = arith.constant dense<0.000000e+00> : vector<2x128xf32>
    %223 = tpu.matmul %221, %222, %cst_117 {dimension_numbers = #tpu.dot_dimension_numbers<[1], [0], [0], [1], [0, 0, 1, 1], [], []>} : vector<2x64xbf16>, vector<64x128xbf16>, vector<2x128xf32> -> vector<2x128xf32>
    %c0_118 = arith.constant 0 : index
    %c0_119 = arith.constant 0 : index
    %224 = vector.load %arg31[%c0_118, %c0_119] : memref<1x128xf32, #tpu.memory_space<vmem>>, vector<1x128xf32>
    %225 = vector.broadcast %224 : vector<1x128xf32> to vector<2x128xf32>
    %226 = arith.addf %223, %225 : vector<2x128xf32>
    %cst_120 = arith.constant 0.000000e+00 : f32
    %227 = vector.broadcast %cst_120 : f32 to vector<2x128xf32>
    %228 = arith.maximumf %226, %227 : vector<2x128xf32>
    %229 = math.absf %226 : vector<2x128xf32>
    %cst_121 = arith.constant 0.000000e+00 : f32
    %230 = vector.broadcast %cst_121 : f32 to vector<2x128xf32>
    %231 = arith.subf %230, %229 : vector<2x128xf32>
    %232 = math.exp %231 : vector<2x128xf32>
    %233 = math.log1p %232 : vector<2x128xf32>
    %234 = arith.addf %228, %233 : vector<2x128xf32>
    %235 = math.tanh %234 : vector<2x128xf32>
    %236 = arith.mulf %226, %235 : vector<2x128xf32>
    %237 = arith.truncf %32 : vector<2x32xf32> to vector<2x32xbf16>
    %c0_122 = arith.constant 0 : index
    %c0_123 = arith.constant 0 : index
    %238 = vector.load %arg38[%c0_122, %c0_123] : memref<32x128xbf16, #tpu.memory_space<vmem>>, vector<32x128xbf16>
    %cst_124 = arith.constant dense<0.000000e+00> : vector<2x128xf32>
    %239 = tpu.matmul %237, %238, %cst_124 {dimension_numbers = #tpu.dot_dimension_numbers<[1], [0], [0], [1], [0, 0, 1, 1], [], []>} : vector<2x32xbf16>, vector<32x128xbf16>, vector<2x128xf32> -> vector<2x128xf32>
    %240 = arith.addf %236, %239 : vector<2x128xf32>
    %c0_125 = arith.constant 0 : index
    %c0_126 = arith.constant 0 : index
    %241 = vector.load %arg34[%c0_125, %c0_126] : memref<1x128xf32, #tpu.memory_space<vmem>>, vector<1x128xf32>
    %242 = vector.broadcast %241 : vector<1x128xf32> to vector<2x128xf32>
    %243 = arith.addf %240, %242 : vector<2x128xf32>
    %244 = arith.truncf %243 : vector<2x128xf32> to vector<2x128xbf16>
    %c0_127 = arith.constant 0 : index
    %c0_128 = arith.constant 0 : index
    %245 = vector.load %arg36[%c0_127, %c0_128] : memref<128x128xbf16, #tpu.memory_space<vmem>>, vector<128x128xbf16>
    %cst_129 = arith.constant dense<0.000000e+00> : vector<2x128xf32>
    %246 = tpu.matmul %244, %245, %cst_129 {dimension_numbers = #tpu.dot_dimension_numbers<[1], [0], [0], [1], [0, 0, 1, 1], [], []>} : vector<2x128xbf16>, vector<128x128xbf16>, vector<2x128xf32> -> vector<2x128xf32>
    %c0_130 = arith.constant 0 : index
    %c0_131 = arith.constant 0 : index
    %247 = vector.load %arg32[%c0_130, %c0_131] : memref<1x128xf32, #tpu.memory_space<vmem>>, vector<1x128xf32>
    %248 = vector.broadcast %247 : vector<1x128xf32> to vector<2x128xf32>
    %249 = arith.addf %246, %248 : vector<2x128xf32>
    %250 = arith.truncf %174 : vector<2x64xf32> to vector<2x64xbf16>
    %c0_132 = arith.constant 0 : index
    %c0_133 = arith.constant 0 : index
    %251 = vector.load %arg37[%c0_132, %c0_133] : memref<64x128xbf16, #tpu.memory_space<vmem>>, vector<64x128xbf16>
    %cst_134 = arith.constant dense<0.000000e+00> : vector<2x128xf32>
    %252 = tpu.matmul %250, %251, %cst_134 {dimension_numbers = #tpu.dot_dimension_numbers<[1], [0], [0], [1], [0, 0, 1, 1], [], []>} : vector<2x64xbf16>, vector<64x128xbf16>, vector<2x128xf32> -> vector<2x128xf32>
    %253 = arith.addf %249, %252 : vector<2x128xf32>
    %c0_135 = arith.constant 0 : index
    %c0_136 = arith.constant 0 : index
    %254 = vector.load %arg33[%c0_135, %c0_136] : memref<1x128xf32, #tpu.memory_space<vmem>>, vector<1x128xf32>
    %255 = vector.broadcast %254 : vector<1x128xf32> to vector<2x128xf32>
    %256 = arith.addf %253, %255 : vector<2x128xf32>
    %257 = arith.truncf %220 : vector<2x64xf32> to vector<2x64xbf16>
    %c0_137 = arith.constant 0 : index
    %c0_138 = arith.constant 0 : index
    %258 = vector.load %arg35[%c0_137, %c0_138] : memref<64x128xbf16, #tpu.memory_space<vmem>>, vector<64x128xbf16>
    %cst_139 = arith.constant dense<0.000000e+00> : vector<2x128xf32>
    %259 = tpu.matmul %257, %258, %cst_139 {dimension_numbers = #tpu.dot_dimension_numbers<[1], [0], [0], [1], [0, 0, 1, 1], [], []>} : vector<2x64xbf16>, vector<64x128xbf16>, vector<2x128xf32> -> vector<2x128xf32>
    %c0_140 = arith.constant 0 : index
    %c0_141 = arith.constant 0 : index
    %260 = vector.load %arg31[%c0_140, %c0_141] : memref<1x128xf32, #tpu.memory_space<vmem>>, vector<1x128xf32>
    %261 = vector.broadcast %260 : vector<1x128xf32> to vector<2x128xf32>
    %262 = arith.addf %259, %261 : vector<2x128xf32>
    %cst_142 = arith.constant 0.000000e+00 : f32
    %263 = vector.broadcast %cst_142 : f32 to vector<2x128xf32>
    %264 = arith.maximumf %262, %263 : vector<2x128xf32>
    %265 = math.absf %262 : vector<2x128xf32>
    %cst_143 = arith.constant 0.000000e+00 : f32
    %266 = vector.broadcast %cst_143 : f32 to vector<2x128xf32>
    %267 = arith.subf %266, %265 : vector<2x128xf32>
    %268 = math.exp %267 : vector<2x128xf32>
    %269 = math.log1p %268 : vector<2x128xf32>
    %270 = arith.addf %264, %269 : vector<2x128xf32>
    %271 = math.tanh %270 : vector<2x128xf32>
    %272 = arith.mulf %262, %271 : vector<2x128xf32>
    %273 = arith.truncf %32 : vector<2x32xf32> to vector<2x32xbf16>
    %c0_144 = arith.constant 0 : index
    %c0_145 = arith.constant 0 : index
    %274 = vector.load %arg38[%c0_144, %c0_145] : memref<32x128xbf16, #tpu.memory_space<vmem>>, vector<32x128xbf16>
    %cst_146 = arith.constant dense<0.000000e+00> : vector<2x128xf32>
    %275 = tpu.matmul %273, %274, %cst_146 {dimension_numbers = #tpu.dot_dimension_numbers<[1], [0], [0], [1], [0, 0, 1, 1], [], []>} : vector<2x32xbf16>, vector<32x128xbf16>, vector<2x128xf32> -> vector<2x128xf32>
    %276 = arith.addf %272, %275 : vector<2x128xf32>
    %c0_147 = arith.constant 0 : index
    %c0_148 = arith.constant 0 : index
    %277 = vector.load %arg34[%c0_147, %c0_148] : memref<1x128xf32, #tpu.memory_space<vmem>>, vector<1x128xf32>
    %278 = vector.broadcast %277 : vector<1x128xf32> to vector<2x128xf32>
    %279 = arith.addf %276, %278 : vector<2x128xf32>
    %280 = arith.truncf %279 : vector<2x128xf32> to vector<2x128xbf16>
    %c0_149 = arith.constant 0 : index
    %c0_150 = arith.constant 0 : index
    %281 = vector.load %arg36[%c0_149, %c0_150] : memref<128x128xbf16, #tpu.memory_space<vmem>>, vector<128x128xbf16>
    %cst_151 = arith.constant dense<0.000000e+00> : vector<2x128xf32>
    %282 = tpu.matmul %280, %281, %cst_151 {dimension_numbers = #tpu.dot_dimension_numbers<[1], [0], [0], [1], [0, 0, 1, 1], [], []>} : vector<2x128xbf16>, vector<128x128xbf16>, vector<2x128xf32> -> vector<2x128xf32>
    %c0_152 = arith.constant 0 : index
    %c0_153 = arith.constant 0 : index
    %283 = vector.load %arg32[%c0_152, %c0_153] : memref<1x128xf32, #tpu.memory_space<vmem>>, vector<1x128xf32>
    %284 = vector.broadcast %283 : vector<1x128xf32> to vector<2x128xf32>
    %285 = arith.addf %282, %284 : vector<2x128xf32>
    %286 = arith.truncf %220 : vector<2x64xf32> to vector<2x64xbf16>
    %c0_154 = arith.constant 0 : index
    %c0_155 = arith.constant 0 : index
    %287 = vector.load %arg37[%c0_154, %c0_155] : memref<64x128xbf16, #tpu.memory_space<vmem>>, vector<64x128xbf16>
    %cst_156 = arith.constant dense<0.000000e+00> : vector<2x128xf32>
    %288 = tpu.matmul %286, %287, %cst_156 {dimension_numbers = #tpu.dot_dimension_numbers<[1], [0], [0], [1], [0, 0, 1, 1], [], []>} : vector<2x64xbf16>, vector<64x128xbf16>, vector<2x128xf32> -> vector<2x128xf32>
    %289 = arith.addf %285, %288 : vector<2x128xf32>
    %c0_157 = arith.constant 0 : index
    %c0_158 = arith.constant 0 : index
    %290 = vector.load %arg33[%c0_157, %c0_158] : memref<1x128xf32, #tpu.memory_space<vmem>>, vector<1x128xf32>
    %291 = vector.broadcast %290 : vector<1x128xf32> to vector<2x128xf32>
    %292 = arith.addf %289, %291 : vector<2x128xf32>
    %293 = arith.truncf %256 : vector<2x128xf32> to vector<2x128xbf16>
    %c0_159 = arith.constant 0 : index
    %c0_160 = arith.constant 0 : index
    %294 = vector.load %arg5[%c0_159, %c0_160] : memref<128x128xbf16, #tpu.memory_space<vmem>>, vector<128x128xbf16>
    %cst_161 = arith.constant dense<0.000000e+00> : vector<2x128xf32>
    %295 = tpu.matmul %293, %294, %cst_161 {dimension_numbers = #tpu.dot_dimension_numbers<[1], [0], [0], [1], [0, 0, 1, 1], [], []>} : vector<2x128xbf16>, vector<128x128xbf16>, vector<2x128xf32> -> vector<2x128xf32>
    %c0_162 = arith.constant 0 : index
    %c0_163 = arith.constant 0 : index
    %296 = vector.load %arg3[%c0_162, %c0_163] : memref<1x128xf32, #tpu.memory_space<vmem>>, vector<1x128xf32>
    %297 = vector.broadcast %296 : vector<1x128xf32> to vector<2x128xf32>
    %298 = arith.addf %295, %297 : vector<2x128xf32>
    %cst_164 = arith.constant 0.000000e+00 : f32
    %299 = vector.broadcast %cst_164 : f32 to vector<2x128xf32>
    %300 = arith.maximumf %298, %299 : vector<2x128xf32>
    %301 = arith.truncf %300 : vector<2x128xf32> to vector<2x128xbf16>
    %c0_165 = arith.constant 0 : index
    %c0_166 = arith.constant 0 : index
    %302 = vector.load %arg6[%c0_165, %c0_166] : memref<128x128xbf16, #tpu.memory_space<vmem>>, vector<128x128xbf16>
    %cst_167 = arith.constant dense<0.000000e+00> : vector<2x128xf32>
    %303 = tpu.matmul %301, %302, %cst_167 {dimension_numbers = #tpu.dot_dimension_numbers<[1], [0], [0], [1], [0, 0, 1, 1], [], []>} : vector<2x128xbf16>, vector<128x128xbf16>, vector<2x128xf32> -> vector<2x128xf32>
    %c0_168 = arith.constant 0 : index
    %c0_169 = arith.constant 0 : index
    %304 = vector.load %arg4[%c0_168, %c0_169] : memref<1x128xf32, #tpu.memory_space<vmem>>, vector<1x128xf32>
    %305 = vector.broadcast %304 : vector<1x128xf32> to vector<2x128xf32>
    %306 = arith.addf %303, %305 : vector<2x128xf32>
    %307 = arith.truncf %292 : vector<2x128xf32> to vector<2x128xbf16>
    %c0_170 = arith.constant 0 : index
    %c0_171 = arith.constant 0 : index
    %308 = vector.load %arg5[%c0_170, %c0_171] : memref<128x128xbf16, #tpu.memory_space<vmem>>, vector<128x128xbf16>
    %cst_172 = arith.constant dense<0.000000e+00> : vector<2x128xf32>
    %309 = tpu.matmul %307, %308, %cst_172 {dimension_numbers = #tpu.dot_dimension_numbers<[1], [0], [0], [1], [0, 0, 1, 1], [], []>} : vector<2x128xbf16>, vector<128x128xbf16>, vector<2x128xf32> -> vector<2x128xf32>
    %c0_173 = arith.constant 0 : index
    %c0_174 = arith.constant 0 : index
    %310 = vector.load %arg3[%c0_173, %c0_174] : memref<1x128xf32, #tpu.memory_space<vmem>>, vector<1x128xf32>
    %311 = vector.broadcast %310 : vector<1x128xf32> to vector<2x128xf32>
    %312 = arith.addf %309, %311 : vector<2x128xf32>
    %cst_175 = arith.constant 0.000000e+00 : f32
    %313 = vector.broadcast %cst_175 : f32 to vector<2x128xf32>
    %314 = arith.maximumf %312, %313 : vector<2x128xf32>
    %315 = arith.truncf %314 : vector<2x128xf32> to vector<2x128xbf16>
    %c0_176 = arith.constant 0 : index
    %c0_177 = arith.constant 0 : index
    %316 = vector.load %arg6[%c0_176, %c0_177] : memref<128x128xbf16, #tpu.memory_space<vmem>>, vector<128x128xbf16>
    %cst_178 = arith.constant dense<0.000000e+00> : vector<2x128xf32>
    %317 = tpu.matmul %315, %316, %cst_178 {dimension_numbers = #tpu.dot_dimension_numbers<[1], [0], [0], [1], [0, 0, 1, 1], [], []>} : vector<2x128xbf16>, vector<128x128xbf16>, vector<2x128xf32> -> vector<2x128xf32>
    %c0_179 = arith.constant 0 : index
    %c0_180 = arith.constant 0 : index
    %318 = vector.load %arg4[%c0_179, %c0_180] : memref<1x128xf32, #tpu.memory_space<vmem>>, vector<1x128xf32>
    %319 = vector.broadcast %318 : vector<1x128xf32> to vector<2x128xf32>
    %320 = arith.addf %317, %319 : vector<2x128xf32>
    %321 = arith.maximumf %306, %320 : vector<2x128xf32>
    %322 = arith.subf %306, %321 : vector<2x128xf32>
    %323 = math.exp %322 : vector<2x128xf32>
    %324 = arith.subf %320, %321 : vector<2x128xf32>
    %325 = math.exp %324 : vector<2x128xf32>
    %326 = arith.addf %323, %325 : vector<2x128xf32>
    %327 = tpu.reciprocal %326 {approx = true} : vector<2x128xf32> -> vector<2x128xf32>
    %328 = arith.mulf %323, %327 : vector<2x128xf32>
    %329 = arith.mulf %256, %328 : vector<2x128xf32>
    %330 = arith.mulf %325, %327 : vector<2x128xf32>
    %331 = arith.mulf %292, %330 : vector<2x128xf32>
    %332 = arith.truncf %256 : vector<2x128xf32> to vector<2x128xbf16>
    %c0_181 = arith.constant 0 : index
    %c0_182 = arith.constant 0 : index
    %333 = vector.load %arg9[%c0_181, %c0_182] : memref<128x128xbf16, #tpu.memory_space<vmem>>, vector<128x128xbf16>
    %cst_183 = arith.constant dense<0.000000e+00> : vector<2x128xf32>
    %334 = tpu.matmul %332, %333, %cst_183 {dimension_numbers = #tpu.dot_dimension_numbers<[1], [0], [0], [1], [0, 0, 1, 1], [], []>} : vector<2x128xbf16>, vector<128x128xbf16>, vector<2x128xf32> -> vector<2x128xf32>
    %c0_184 = arith.constant 0 : index
    %c0_185 = arith.constant 0 : index
    %335 = vector.load %arg7[%c0_184, %c0_185] : memref<1x128xf32, #tpu.memory_space<vmem>>, vector<1x128xf32>
    %336 = vector.broadcast %335 : vector<1x128xf32> to vector<2x128xf32>
    %337 = arith.addf %334, %336 : vector<2x128xf32>
    %cst_186 = arith.constant 0.000000e+00 : f32
    %338 = vector.broadcast %cst_186 : f32 to vector<2x128xf32>
    %339 = arith.maximumf %337, %338 : vector<2x128xf32>
    %340 = arith.truncf %339 : vector<2x128xf32> to vector<2x128xbf16>
    %c0_187 = arith.constant 0 : index
    %c0_188 = arith.constant 0 : index
    %341 = vector.load %arg10[%c0_187, %c0_188] : memref<128x128xbf16, #tpu.memory_space<vmem>>, vector<128x128xbf16>
    %cst_189 = arith.constant dense<0.000000e+00> : vector<2x128xf32>
    %342 = tpu.matmul %340, %341, %cst_189 {dimension_numbers = #tpu.dot_dimension_numbers<[1], [0], [0], [1], [0, 0, 1, 1], [], []>} : vector<2x128xbf16>, vector<128x128xbf16>, vector<2x128xf32> -> vector<2x128xf32>
    %c0_190 = arith.constant 0 : index
    %c0_191 = arith.constant 0 : index
    %343 = vector.load %arg8[%c0_190, %c0_191] : memref<1x128xf32, #tpu.memory_space<vmem>>, vector<1x128xf32>
    %344 = vector.broadcast %343 : vector<1x128xf32> to vector<2x128xf32>
    %345 = arith.addf %342, %344 : vector<2x128xf32>
    %346 = arith.truncf %292 : vector<2x128xf32> to vector<2x128xbf16>
    %c0_192 = arith.constant 0 : index
    %c0_193 = arith.constant 0 : index
    %347 = vector.load %arg9[%c0_192, %c0_193] : memref<128x128xbf16, #tpu.memory_space<vmem>>, vector<128x128xbf16>
    %cst_194 = arith.constant dense<0.000000e+00> : vector<2x128xf32>
    %348 = tpu.matmul %346, %347, %cst_194 {dimension_numbers = #tpu.dot_dimension_numbers<[1], [0], [0], [1], [0, 0, 1, 1], [], []>} : vector<2x128xbf16>, vector<128x128xbf16>, vector<2x128xf32> -> vector<2x128xf32>
    %c0_195 = arith.constant 0 : index
    %c0_196 = arith.constant 0 : index
    %349 = vector.load %arg7[%c0_195, %c0_196] : memref<1x128xf32, #tpu.memory_space<vmem>>, vector<1x128xf32>
    %350 = vector.broadcast %349 : vector<1x128xf32> to vector<2x128xf32>
    %351 = arith.addf %348, %350 : vector<2x128xf32>
    %cst_197 = arith.constant 0.000000e+00 : f32
    %352 = vector.broadcast %cst_197 : f32 to vector<2x128xf32>
    %353 = arith.maximumf %351, %352 : vector<2x128xf32>
    %354 = arith.truncf %353 : vector<2x128xf32> to vector<2x128xbf16>
    %c0_198 = arith.constant 0 : index
    %c0_199 = arith.constant 0 : index
    %355 = vector.load %arg10[%c0_198, %c0_199] : memref<128x128xbf16, #tpu.memory_space<vmem>>, vector<128x128xbf16>
    %cst_200 = arith.constant dense<0.000000e+00> : vector<2x128xf32>
    %356 = tpu.matmul %354, %355, %cst_200 {dimension_numbers = #tpu.dot_dimension_numbers<[1], [0], [0], [1], [0, 0, 1, 1], [], []>} : vector<2x128xbf16>, vector<128x128xbf16>, vector<2x128xf32> -> vector<2x128xf32>
    %c0_201 = arith.constant 0 : index
    %c0_202 = arith.constant 0 : index
    %357 = vector.load %arg8[%c0_201, %c0_202] : memref<1x128xf32, #tpu.memory_space<vmem>>, vector<1x128xf32>
    %358 = vector.broadcast %357 : vector<1x128xf32> to vector<2x128xf32>
    %359 = arith.addf %356, %358 : vector<2x128xf32>
    %360 = arith.maximumf %345, %359 : vector<2x128xf32>
    %361 = arith.subf %345, %360 : vector<2x128xf32>
    %362 = math.exp %361 : vector<2x128xf32>
    %363 = arith.subf %359, %360 : vector<2x128xf32>
    %364 = math.exp %363 : vector<2x128xf32>
    %365 = arith.addf %362, %364 : vector<2x128xf32>
    %366 = tpu.reciprocal %365 {approx = true} : vector<2x128xf32> -> vector<2x128xf32>
    %367 = arith.mulf %362, %366 : vector<2x128xf32>
    %368 = arith.mulf %256, %367 : vector<2x128xf32>
    %369 = arith.mulf %364, %366 : vector<2x128xf32>
    %370 = arith.mulf %292, %369 : vector<2x128xf32>
    %371 = arith.truncf %329 : vector<2x128xf32> to vector<2x128xbf16>
    %c0_203 = arith.constant 0 : index
    %c0_204 = arith.constant 0 : index
    %372 = vector.load %arg52[%c0_203, %c0_204] : memref<128x64xbf16, #tpu.memory_space<vmem>>, vector<128x64xbf16>
    %cst_205 = arith.constant dense<0.000000e+00> : vector<2x64xf32>
    %373 = tpu.matmul %371, %372, %cst_205 {dimension_numbers = #tpu.dot_dimension_numbers<[1], [0], [0], [1], [0, 0, 1, 1], [], []>} : vector<2x128xbf16>, vector<128x64xbf16>, vector<2x64xf32> -> vector<2x64xf32>
    %374 = arith.truncf %368 : vector<2x128xf32> to vector<2x128xbf16>
    %c0_206 = arith.constant 0 : index
    %c0_207 = arith.constant 0 : index
    %375 = vector.load %arg51[%c0_206, %c0_207] : memref<128x64xbf16, #tpu.memory_space<vmem>>, vector<128x64xbf16>
    %cst_208 = arith.constant dense<0.000000e+00> : vector<2x64xf32>
    %376 = tpu.matmul %374, %375, %cst_208 {dimension_numbers = #tpu.dot_dimension_numbers<[1], [0], [0], [1], [0, 0, 1, 1], [], []>} : vector<2x128xbf16>, vector<128x64xbf16>, vector<2x64xf32> -> vector<2x64xf32>
    %377 = arith.addf %373, %376 : vector<2x64xf32>
    %c0_209 = arith.constant 0 : index
    %c0_210 = arith.constant 0 : index
    %378 = vector.load %arg47[%c0_209, %c0_210] : memref<1x64xf32, #tpu.memory_space<vmem>>, vector<1x64xf32>
    %379 = vector.broadcast %378 : vector<1x64xf32> to vector<2x64xf32>
    %380 = arith.addf %377, %379 : vector<2x64xf32>
    %cst_211 = arith.constant 0.000000e+00 : f32
    %381 = vector.broadcast %cst_211 : f32 to vector<2x64xf32>
    %382 = arith.maximumf %380, %381 : vector<2x64xf32>
    %383 = math.absf %380 : vector<2x64xf32>
    %cst_212 = arith.constant 0.000000e+00 : f32
    %384 = vector.broadcast %cst_212 : f32 to vector<2x64xf32>
    %385 = arith.subf %384, %383 : vector<2x64xf32>
    %386 = math.exp %385 : vector<2x64xf32>
    %387 = math.log1p %386 : vector<2x64xf32>
    %388 = arith.addf %382, %387 : vector<2x64xf32>
    %389 = math.tanh %388 : vector<2x64xf32>
    %390 = arith.mulf %380, %389 : vector<2x64xf32>
    %391 = arith.truncf %32 : vector<2x32xf32> to vector<2x32xbf16>
    %c0_213 = arith.constant 0 : index
    %c0_214 = arith.constant 0 : index
    %392 = vector.load %arg56[%c0_213, %c0_214] : memref<32x64xbf16, #tpu.memory_space<vmem>>, vector<32x64xbf16>
    %cst_215 = arith.constant dense<0.000000e+00> : vector<2x64xf32>
    %393 = tpu.matmul %391, %392, %cst_215 {dimension_numbers = #tpu.dot_dimension_numbers<[1], [0], [0], [1], [0, 0, 1, 1], [], []>} : vector<2x32xbf16>, vector<32x64xbf16>, vector<2x64xf32> -> vector<2x64xf32>
    %394 = arith.addf %390, %393 : vector<2x64xf32>
    %c0_216 = arith.constant 0 : index
    %c0_217 = arith.constant 0 : index
    %395 = vector.load %arg50[%c0_216, %c0_217] : memref<1x64xf32, #tpu.memory_space<vmem>>, vector<1x64xf32>
    %396 = vector.broadcast %395 : vector<1x64xf32> to vector<2x64xf32>
    %397 = arith.addf %394, %396 : vector<2x64xf32>
    %398 = arith.truncf %397 : vector<2x64xf32> to vector<2x64xbf16>
    %c0_218 = arith.constant 0 : index
    %c0_219 = arith.constant 0 : index
    %399 = vector.load %arg53[%c0_218, %c0_219] : memref<64x64xbf16, #tpu.memory_space<vmem>>, vector<64x64xbf16>
    %cst_220 = arith.constant dense<0.000000e+00> : vector<2x64xf32>
    %400 = tpu.matmul %398, %399, %cst_220 {dimension_numbers = #tpu.dot_dimension_numbers<[1], [0], [0], [1], [0, 0, 1, 1], [], []>} : vector<2x64xbf16>, vector<64x64xbf16>, vector<2x64xf32> -> vector<2x64xf32>
    %c0_221 = arith.constant 0 : index
    %c0_222 = arith.constant 0 : index
    %401 = vector.load %arg48[%c0_221, %c0_222] : memref<1x64xf32, #tpu.memory_space<vmem>>, vector<1x64xf32>
    %402 = vector.broadcast %401 : vector<1x64xf32> to vector<2x64xf32>
    %403 = arith.addf %400, %402 : vector<2x64xf32>
    %cst_223 = arith.constant 0.000000e+00 : f32
    %404 = vector.broadcast %cst_223 : f32 to vector<2x64xf32>
    %405 = arith.maximumf %403, %404 : vector<2x64xf32>
    %406 = math.absf %403 : vector<2x64xf32>
    %cst_224 = arith.constant 0.000000e+00 : f32
    %407 = vector.broadcast %cst_224 : f32 to vector<2x64xf32>
    %408 = arith.subf %407, %406 : vector<2x64xf32>
    %409 = math.exp %408 : vector<2x64xf32>
    %410 = math.log1p %409 : vector<2x64xf32>
    %411 = arith.addf %405, %410 : vector<2x64xf32>
    %412 = math.tanh %411 : vector<2x64xf32>
    %413 = arith.mulf %403, %412 : vector<2x64xf32>
    %414 = arith.truncf %329 : vector<2x128xf32> to vector<2x128xbf16>
    %c0_225 = arith.constant 0 : index
    %c0_226 = arith.constant 0 : index
    %415 = vector.load %arg55[%c0_225, %c0_226] : memref<128x64xbf16, #tpu.memory_space<vmem>>, vector<128x64xbf16>
    %cst_227 = arith.constant dense<0.000000e+00> : vector<2x64xf32>
    %416 = tpu.matmul %414, %415, %cst_227 {dimension_numbers = #tpu.dot_dimension_numbers<[1], [0], [0], [1], [0, 0, 1, 1], [], []>} : vector<2x128xbf16>, vector<128x64xbf16>, vector<2x64xf32> -> vector<2x64xf32>
    %417 = arith.addf %413, %416 : vector<2x64xf32>
    %418 = arith.truncf %368 : vector<2x128xf32> to vector<2x128xbf16>
    %c0_228 = arith.constant 0 : index
    %c0_229 = arith.constant 0 : index
    %419 = vector.load %arg54[%c0_228, %c0_229] : memref<128x64xbf16, #tpu.memory_space<vmem>>, vector<128x64xbf16>
    %cst_230 = arith.constant dense<0.000000e+00> : vector<2x64xf32>
    %420 = tpu.matmul %418, %419, %cst_230 {dimension_numbers = #tpu.dot_dimension_numbers<[1], [0], [0], [1], [0, 0, 1, 1], [], []>} : vector<2x128xbf16>, vector<128x64xbf16>, vector<2x64xf32> -> vector<2x64xf32>
    %421 = arith.addf %417, %420 : vector<2x64xf32>
    %c0_231 = arith.constant 0 : index
    %c0_232 = arith.constant 0 : index
    %422 = vector.load %arg49[%c0_231, %c0_232] : memref<1x64xf32, #tpu.memory_space<vmem>>, vector<1x64xf32>
    %423 = vector.broadcast %422 : vector<1x64xf32> to vector<2x64xf32>
    %424 = arith.addf %421, %423 : vector<2x64xf32>
    %425 = arith.truncf %331 : vector<2x128xf32> to vector<2x128xbf16>
    %c0_233 = arith.constant 0 : index
    %c0_234 = arith.constant 0 : index
    %426 = vector.load %arg52[%c0_233, %c0_234] : memref<128x64xbf16, #tpu.memory_space<vmem>>, vector<128x64xbf16>
    %cst_235 = arith.constant dense<0.000000e+00> : vector<2x64xf32>
    %427 = tpu.matmul %425, %426, %cst_235 {dimension_numbers = #tpu.dot_dimension_numbers<[1], [0], [0], [1], [0, 0, 1, 1], [], []>} : vector<2x128xbf16>, vector<128x64xbf16>, vector<2x64xf32> -> vector<2x64xf32>
    %428 = arith.truncf %370 : vector<2x128xf32> to vector<2x128xbf16>
    %c0_236 = arith.constant 0 : index
    %c0_237 = arith.constant 0 : index
    %429 = vector.load %arg51[%c0_236, %c0_237] : memref<128x64xbf16, #tpu.memory_space<vmem>>, vector<128x64xbf16>
    %cst_238 = arith.constant dense<0.000000e+00> : vector<2x64xf32>
    %430 = tpu.matmul %428, %429, %cst_238 {dimension_numbers = #tpu.dot_dimension_numbers<[1], [0], [0], [1], [0, 0, 1, 1], [], []>} : vector<2x128xbf16>, vector<128x64xbf16>, vector<2x64xf32> -> vector<2x64xf32>
    %431 = arith.addf %427, %430 : vector<2x64xf32>
    %c0_239 = arith.constant 0 : index
    %c0_240 = arith.constant 0 : index
    %432 = vector.load %arg47[%c0_239, %c0_240] : memref<1x64xf32, #tpu.memory_space<vmem>>, vector<1x64xf32>
    %433 = vector.broadcast %432 : vector<1x64xf32> to vector<2x64xf32>
    %434 = arith.addf %431, %433 : vector<2x64xf32>
    %cst_241 = arith.constant 0.000000e+00 : f32
    %435 = vector.broadcast %cst_241 : f32 to vector<2x64xf32>
    %436 = arith.maximumf %434, %435 : vector<2x64xf32>
    %437 = math.absf %434 : vector<2x64xf32>
    %cst_242 = arith.constant 0.000000e+00 : f32
    %438 = vector.broadcast %cst_242 : f32 to vector<2x64xf32>
    %439 = arith.subf %438, %437 : vector<2x64xf32>
    %440 = math.exp %439 : vector<2x64xf32>
    %441 = math.log1p %440 : vector<2x64xf32>
    %442 = arith.addf %436, %441 : vector<2x64xf32>
    %443 = math.tanh %442 : vector<2x64xf32>
    %444 = arith.mulf %434, %443 : vector<2x64xf32>
    %445 = arith.truncf %32 : vector<2x32xf32> to vector<2x32xbf16>
    %c0_243 = arith.constant 0 : index
    %c0_244 = arith.constant 0 : index
    %446 = vector.load %arg56[%c0_243, %c0_244] : memref<32x64xbf16, #tpu.memory_space<vmem>>, vector<32x64xbf16>
    %cst_245 = arith.constant dense<0.000000e+00> : vector<2x64xf32>
    %447 = tpu.matmul %445, %446, %cst_245 {dimension_numbers = #tpu.dot_dimension_numbers<[1], [0], [0], [1], [0, 0, 1, 1], [], []>} : vector<2x32xbf16>, vector<32x64xbf16>, vector<2x64xf32> -> vector<2x64xf32>
    %448 = arith.addf %444, %447 : vector<2x64xf32>
    %c0_246 = arith.constant 0 : index
    %c0_247 = arith.constant 0 : index
    %449 = vector.load %arg50[%c0_246, %c0_247] : memref<1x64xf32, #tpu.memory_space<vmem>>, vector<1x64xf32>
    %450 = vector.broadcast %449 : vector<1x64xf32> to vector<2x64xf32>
    %451 = arith.addf %448, %450 : vector<2x64xf32>
    %452 = arith.truncf %451 : vector<2x64xf32> to vector<2x64xbf16>
    %c0_248 = arith.constant 0 : index
    %c0_249 = arith.constant 0 : index
    %453 = vector.load %arg53[%c0_248, %c0_249] : memref<64x64xbf16, #tpu.memory_space<vmem>>, vector<64x64xbf16>
    %cst_250 = arith.constant dense<0.000000e+00> : vector<2x64xf32>
    %454 = tpu.matmul %452, %453, %cst_250 {dimension_numbers = #tpu.dot_dimension_numbers<[1], [0], [0], [1], [0, 0, 1, 1], [], []>} : vector<2x64xbf16>, vector<64x64xbf16>, vector<2x64xf32> -> vector<2x64xf32>
    %c0_251 = arith.constant 0 : index
    %c0_252 = arith.constant 0 : index
    %455 = vector.load %arg48[%c0_251, %c0_252] : memref<1x64xf32, #tpu.memory_space<vmem>>, vector<1x64xf32>
    %456 = vector.broadcast %455 : vector<1x64xf32> to vector<2x64xf32>
    %457 = arith.addf %454, %456 : vector<2x64xf32>
    %cst_253 = arith.constant 0.000000e+00 : f32
    %458 = vector.broadcast %cst_253 : f32 to vector<2x64xf32>
    %459 = arith.maximumf %457, %458 : vector<2x64xf32>
    %460 = math.absf %457 : vector<2x64xf32>
    %cst_254 = arith.constant 0.000000e+00 : f32
    %461 = vector.broadcast %cst_254 : f32 to vector<2x64xf32>
    %462 = arith.subf %461, %460 : vector<2x64xf32>
    %463 = math.exp %462 : vector<2x64xf32>
    %464 = math.log1p %463 : vector<2x64xf32>
    %465 = arith.addf %459, %464 : vector<2x64xf32>
    %466 = math.tanh %465 : vector<2x64xf32>
    %467 = arith.mulf %457, %466 : vector<2x64xf32>
    %468 = arith.truncf %331 : vector<2x128xf32> to vector<2x128xbf16>
    %c0_255 = arith.constant 0 : index
    %c0_256 = arith.constant 0 : index
    %469 = vector.load %arg55[%c0_255, %c0_256] : memref<128x64xbf16, #tpu.memory_space<vmem>>, vector<128x64xbf16>
    %cst_257 = arith.constant dense<0.000000e+00> : vector<2x64xf32>
    %470 = tpu.matmul %468, %469, %cst_257 {dimension_numbers = #tpu.dot_dimension_numbers<[1], [0], [0], [1], [0, 0, 1, 1], [], []>} : vector<2x128xbf16>, vector<128x64xbf16>, vector<2x64xf32> -> vector<2x64xf32>
    %471 = arith.addf %467, %470 : vector<2x64xf32>
    %472 = arith.truncf %370 : vector<2x128xf32> to vector<2x128xbf16>
    %c0_258 = arith.constant 0 : index
    %c0_259 = arith.constant 0 : index
    %473 = vector.load %arg54[%c0_258, %c0_259] : memref<128x64xbf16, #tpu.memory_space<vmem>>, vector<128x64xbf16>
    %cst_260 = arith.constant dense<0.000000e+00> : vector<2x64xf32>
    %474 = tpu.matmul %472, %473, %cst_260 {dimension_numbers = #tpu.dot_dimension_numbers<[1], [0], [0], [1], [0, 0, 1, 1], [], []>} : vector<2x128xbf16>, vector<128x64xbf16>, vector<2x64xf32> -> vector<2x64xf32>
    %475 = arith.addf %471, %474 : vector<2x64xf32>
    %c0_261 = arith.constant 0 : index
    %c0_262 = arith.constant 0 : index
    %476 = vector.load %arg49[%c0_261, %c0_262] : memref<1x64xf32, #tpu.memory_space<vmem>>, vector<1x64xf32>
    %477 = vector.broadcast %476 : vector<1x64xf32> to vector<2x64xf32>
    %478 = arith.addf %475, %477 : vector<2x64xf32>
    %479 = arith.truncf %174 : vector<2x64xf32> to vector<2x64xbf16>
    %c0_263 = arith.constant 0 : index
    %c0_264 = arith.constant 0 : index
    %480 = vector.load %arg13[%c0_263, %c0_264] : memref<64x128xbf16, #tpu.memory_space<vmem>>, vector<64x128xbf16>
    %cst_265 = arith.constant dense<0.000000e+00> : vector<2x128xf32>
    %481 = tpu.matmul %479, %480, %cst_265 {dimension_numbers = #tpu.dot_dimension_numbers<[1], [0], [0], [1], [0, 0, 1, 1], [], []>} : vector<2x64xbf16>, vector<64x128xbf16>, vector<2x128xf32> -> vector<2x128xf32>
    %c0_266 = arith.constant 0 : index
    %c0_267 = arith.constant 0 : index
    %482 = vector.load %arg11[%c0_266, %c0_267] : memref<1x128xf32, #tpu.memory_space<vmem>>, vector<1x128xf32>
    %483 = vector.broadcast %482 : vector<1x128xf32> to vector<2x128xf32>
    %484 = arith.addf %481, %483 : vector<2x128xf32>
    %cst_268 = arith.constant 0.000000e+00 : f32
    %485 = vector.broadcast %cst_268 : f32 to vector<2x128xf32>
    %486 = arith.maximumf %484, %485 : vector<2x128xf32>
    %487 = arith.truncf %486 : vector<2x128xf32> to vector<2x128xbf16>
    %c0_269 = arith.constant 0 : index
    %c0_270 = arith.constant 0 : index
    %488 = vector.load %arg14[%c0_269, %c0_270] : memref<128x64xbf16, #tpu.memory_space<vmem>>, vector<128x64xbf16>
    %cst_271 = arith.constant dense<0.000000e+00> : vector<2x64xf32>
    %489 = tpu.matmul %487, %488, %cst_271 {dimension_numbers = #tpu.dot_dimension_numbers<[1], [0], [0], [1], [0, 0, 1, 1], [], []>} : vector<2x128xbf16>, vector<128x64xbf16>, vector<2x64xf32> -> vector<2x64xf32>
    %c0_272 = arith.constant 0 : index
    %c0_273 = arith.constant 0 : index
    %490 = vector.load %arg12[%c0_272, %c0_273] : memref<1x64xf32, #tpu.memory_space<vmem>>, vector<1x64xf32>
    %491 = vector.broadcast %490 : vector<1x64xf32> to vector<2x64xf32>
    %492 = arith.addf %489, %491 : vector<2x64xf32>
    %493 = arith.truncf %220 : vector<2x64xf32> to vector<2x64xbf16>
    %c0_274 = arith.constant 0 : index
    %c0_275 = arith.constant 0 : index
    %494 = vector.load %arg13[%c0_274, %c0_275] : memref<64x128xbf16, #tpu.memory_space<vmem>>, vector<64x128xbf16>
    %cst_276 = arith.constant dense<0.000000e+00> : vector<2x128xf32>
    %495 = tpu.matmul %493, %494, %cst_276 {dimension_numbers = #tpu.dot_dimension_numbers<[1], [0], [0], [1], [0, 0, 1, 1], [], []>} : vector<2x64xbf16>, vector<64x128xbf16>, vector<2x128xf32> -> vector<2x128xf32>
    %c0_277 = arith.constant 0 : index
    %c0_278 = arith.constant 0 : index
    %496 = vector.load %arg11[%c0_277, %c0_278] : memref<1x128xf32, #tpu.memory_space<vmem>>, vector<1x128xf32>
    %497 = vector.broadcast %496 : vector<1x128xf32> to vector<2x128xf32>
    %498 = arith.addf %495, %497 : vector<2x128xf32>
    %cst_279 = arith.constant 0.000000e+00 : f32
    %499 = vector.broadcast %cst_279 : f32 to vector<2x128xf32>
    %500 = arith.maximumf %498, %499 : vector<2x128xf32>
    %501 = arith.truncf %500 : vector<2x128xf32> to vector<2x128xbf16>
    %c0_280 = arith.constant 0 : index
    %c0_281 = arith.constant 0 : index
    %502 = vector.load %arg14[%c0_280, %c0_281] : memref<128x64xbf16, #tpu.memory_space<vmem>>, vector<128x64xbf16>
    %cst_282 = arith.constant dense<0.000000e+00> : vector<2x64xf32>
    %503 = tpu.matmul %501, %502, %cst_282 {dimension_numbers = #tpu.dot_dimension_numbers<[1], [0], [0], [1], [0, 0, 1, 1], [], []>} : vector<2x128xbf16>, vector<128x64xbf16>, vector<2x64xf32> -> vector<2x64xf32>
    %c0_283 = arith.constant 0 : index
    %c0_284 = arith.constant 0 : index
    %504 = vector.load %arg12[%c0_283, %c0_284] : memref<1x64xf32, #tpu.memory_space<vmem>>, vector<1x64xf32>
    %505 = vector.broadcast %504 : vector<1x64xf32> to vector<2x64xf32>
    %506 = arith.addf %503, %505 : vector<2x64xf32>
    %507 = arith.maximumf %492, %506 : vector<2x64xf32>
    %508 = arith.subf %492, %507 : vector<2x64xf32>
    %509 = math.exp %508 : vector<2x64xf32>
    %510 = arith.subf %506, %507 : vector<2x64xf32>
    %511 = math.exp %510 : vector<2x64xf32>
    %512 = arith.addf %509, %511 : vector<2x64xf32>
    %513 = tpu.reciprocal %512 {approx = true} : vector<2x64xf32> -> vector<2x64xf32>
    %514 = arith.mulf %509, %513 : vector<2x64xf32>
    %515 = arith.mulf %174, %514 : vector<2x64xf32>
    %516 = arith.mulf %511, %513 : vector<2x64xf32>
    %517 = arith.mulf %220, %516 : vector<2x64xf32>
    %518 = arith.truncf %424 : vector<2x64xf32> to vector<2x64xbf16>
    %c0_285 = arith.constant 0 : index
    %c0_286 = arith.constant 0 : index
    %519 = vector.load %arg62[%c0_285, %c0_286] : memref<64x32xbf16, #tpu.memory_space<vmem>>, vector<64x32xbf16>
    %cst_287 = arith.constant dense<0.000000e+00> : vector<2x32xf32>
    %520 = tpu.matmul %518, %519, %cst_287 {dimension_numbers = #tpu.dot_dimension_numbers<[1], [0], [0], [1], [0, 0, 1, 1], [], []>} : vector<2x64xbf16>, vector<64x32xbf16>, vector<2x32xf32> -> vector<2x32xf32>
    %521 = arith.truncf %515 : vector<2x64xf32> to vector<2x64xbf16>
    %c0_288 = arith.constant 0 : index
    %c0_289 = arith.constant 0 : index
    %522 = vector.load %arg61[%c0_288, %c0_289] : memref<64x32xbf16, #tpu.memory_space<vmem>>, vector<64x32xbf16>
    %cst_290 = arith.constant dense<0.000000e+00> : vector<2x32xf32>
    %523 = tpu.matmul %521, %522, %cst_290 {dimension_numbers = #tpu.dot_dimension_numbers<[1], [0], [0], [1], [0, 0, 1, 1], [], []>} : vector<2x64xbf16>, vector<64x32xbf16>, vector<2x32xf32> -> vector<2x32xf32>
    %524 = arith.addf %520, %523 : vector<2x32xf32>
    %c0_291 = arith.constant 0 : index
    %c0_292 = arith.constant 0 : index
    %525 = vector.load %arg57[%c0_291, %c0_292] : memref<1x32xf32, #tpu.memory_space<vmem>>, vector<1x32xf32>
    %526 = vector.broadcast %525 : vector<1x32xf32> to vector<2x32xf32>
    %527 = arith.addf %524, %526 : vector<2x32xf32>
    %cst_293 = arith.constant 0.000000e+00 : f32
    %528 = vector.broadcast %cst_293 : f32 to vector<2x32xf32>
    %529 = arith.maximumf %527, %528 : vector<2x32xf32>
    %530 = math.absf %527 : vector<2x32xf32>
    %cst_294 = arith.constant 0.000000e+00 : f32
    %531 = vector.broadcast %cst_294 : f32 to vector<2x32xf32>
    %532 = arith.subf %531, %530 : vector<2x32xf32>
    %533 = math.exp %532 : vector<2x32xf32>
    %534 = math.log1p %533 : vector<2x32xf32>
    %535 = arith.addf %529, %534 : vector<2x32xf32>
    %536 = math.tanh %535 : vector<2x32xf32>
    %537 = arith.mulf %527, %536 : vector<2x32xf32>
    %538 = arith.truncf %32 : vector<2x32xf32> to vector<2x32xbf16>
    %c0_295 = arith.constant 0 : index
    %c0_296 = arith.constant 0 : index
    %539 = vector.load %arg66[%c0_295, %c0_296] : memref<32x32xbf16, #tpu.memory_space<vmem>>, vector<32x32xbf16>
    %cst_297 = arith.constant dense<0.000000e+00> : vector<2x32xf32>
    %540 = tpu.matmul %538, %539, %cst_297 {dimension_numbers = #tpu.dot_dimension_numbers<[1], [0], [0], [1], [0, 0, 1, 1], [], []>} : vector<2x32xbf16>, vector<32x32xbf16>, vector<2x32xf32> -> vector<2x32xf32>
    %541 = arith.addf %537, %540 : vector<2x32xf32>
    %c0_298 = arith.constant 0 : index
    %c0_299 = arith.constant 0 : index
    %542 = vector.load %arg60[%c0_298, %c0_299] : memref<1x32xf32, #tpu.memory_space<vmem>>, vector<1x32xf32>
    %543 = vector.broadcast %542 : vector<1x32xf32> to vector<2x32xf32>
    %544 = arith.addf %541, %543 : vector<2x32xf32>
    %545 = arith.truncf %544 : vector<2x32xf32> to vector<2x32xbf16>
    %c0_300 = arith.constant 0 : index
    %c0_301 = arith.constant 0 : index
    %546 = vector.load %arg63[%c0_300, %c0_301] : memref<32x32xbf16, #tpu.memory_space<vmem>>, vector<32x32xbf16>
    %cst_302 = arith.constant dense<0.000000e+00> : vector<2x32xf32>
    %547 = tpu.matmul %545, %546, %cst_302 {dimension_numbers = #tpu.dot_dimension_numbers<[1], [0], [0], [1], [0, 0, 1, 1], [], []>} : vector<2x32xbf16>, vector<32x32xbf16>, vector<2x32xf32> -> vector<2x32xf32>
    %c0_303 = arith.constant 0 : index
    %c0_304 = arith.constant 0 : index
    %548 = vector.load %arg58[%c0_303, %c0_304] : memref<1x32xf32, #tpu.memory_space<vmem>>, vector<1x32xf32>
    %549 = vector.broadcast %548 : vector<1x32xf32> to vector<2x32xf32>
    %550 = arith.addf %547, %549 : vector<2x32xf32>
    %cst_305 = arith.constant 0.000000e+00 : f32
    %551 = vector.broadcast %cst_305 : f32 to vector<2x32xf32>
    %552 = arith.maximumf %550, %551 : vector<2x32xf32>
    %553 = math.absf %550 : vector<2x32xf32>
    %cst_306 = arith.constant 0.000000e+00 : f32
    %554 = vector.broadcast %cst_306 : f32 to vector<2x32xf32>
    %555 = arith.subf %554, %553 : vector<2x32xf32>
    %556 = math.exp %555 : vector<2x32xf32>
    %557 = math.log1p %556 : vector<2x32xf32>
    %558 = arith.addf %552, %557 : vector<2x32xf32>
    %559 = math.tanh %558 : vector<2x32xf32>
    %560 = arith.mulf %550, %559 : vector<2x32xf32>
    %561 = arith.truncf %424 : vector<2x64xf32> to vector<2x64xbf16>
    %c0_307 = arith.constant 0 : index
    %c0_308 = arith.constant 0 : index
    %562 = vector.load %arg65[%c0_307, %c0_308] : memref<64x32xbf16, #tpu.memory_space<vmem>>, vector<64x32xbf16>
    %cst_309 = arith.constant dense<0.000000e+00> : vector<2x32xf32>
    %563 = tpu.matmul %561, %562, %cst_309 {dimension_numbers = #tpu.dot_dimension_numbers<[1], [0], [0], [1], [0, 0, 1, 1], [], []>} : vector<2x64xbf16>, vector<64x32xbf16>, vector<2x32xf32> -> vector<2x32xf32>
    %564 = arith.addf %560, %563 : vector<2x32xf32>
    %565 = arith.truncf %515 : vector<2x64xf32> to vector<2x64xbf16>
    %c0_310 = arith.constant 0 : index
    %c0_311 = arith.constant 0 : index
    %566 = vector.load %arg64[%c0_310, %c0_311] : memref<64x32xbf16, #tpu.memory_space<vmem>>, vector<64x32xbf16>
    %cst_312 = arith.constant dense<0.000000e+00> : vector<2x32xf32>
    %567 = tpu.matmul %565, %566, %cst_312 {dimension_numbers = #tpu.dot_dimension_numbers<[1], [0], [0], [1], [0, 0, 1, 1], [], []>} : vector<2x64xbf16>, vector<64x32xbf16>, vector<2x32xf32> -> vector<2x32xf32>
    %568 = arith.addf %564, %567 : vector<2x32xf32>
    %c0_313 = arith.constant 0 : index
    %c0_314 = arith.constant 0 : index
    %569 = vector.load %arg59[%c0_313, %c0_314] : memref<1x32xf32, #tpu.memory_space<vmem>>, vector<1x32xf32>
    %570 = vector.broadcast %569 : vector<1x32xf32> to vector<2x32xf32>
    %571 = arith.addf %568, %570 : vector<2x32xf32>
    %572 = arith.truncf %478 : vector<2x64xf32> to vector<2x64xbf16>
    %c0_315 = arith.constant 0 : index
    %c0_316 = arith.constant 0 : index
    %573 = vector.load %arg62[%c0_315, %c0_316] : memref<64x32xbf16, #tpu.memory_space<vmem>>, vector<64x32xbf16>
    %cst_317 = arith.constant dense<0.000000e+00> : vector<2x32xf32>
    %574 = tpu.matmul %572, %573, %cst_317 {dimension_numbers = #tpu.dot_dimension_numbers<[1], [0], [0], [1], [0, 0, 1, 1], [], []>} : vector<2x64xbf16>, vector<64x32xbf16>, vector<2x32xf32> -> vector<2x32xf32>
    %575 = arith.truncf %517 : vector<2x64xf32> to vector<2x64xbf16>
    %c0_318 = arith.constant 0 : index
    %c0_319 = arith.constant 0 : index
    %576 = vector.load %arg61[%c0_318, %c0_319] : memref<64x32xbf16, #tpu.memory_space<vmem>>, vector<64x32xbf16>
    %cst_320 = arith.constant dense<0.000000e+00> : vector<2x32xf32>
    %577 = tpu.matmul %575, %576, %cst_320 {dimension_numbers = #tpu.dot_dimension_numbers<[1], [0], [0], [1], [0, 0, 1, 1], [], []>} : vector<2x64xbf16>, vector<64x32xbf16>, vector<2x32xf32> -> vector<2x32xf32>
    %578 = arith.addf %574, %577 : vector<2x32xf32>
    %c0_321 = arith.constant 0 : index
    %c0_322 = arith.constant 0 : index
    %579 = vector.load %arg57[%c0_321, %c0_322] : memref<1x32xf32, #tpu.memory_space<vmem>>, vector<1x32xf32>
    %580 = vector.broadcast %579 : vector<1x32xf32> to vector<2x32xf32>
    %581 = arith.addf %578, %580 : vector<2x32xf32>
    %cst_323 = arith.constant 0.000000e+00 : f32
    %582 = vector.broadcast %cst_323 : f32 to vector<2x32xf32>
    %583 = arith.maximumf %581, %582 : vector<2x32xf32>
    %584 = math.absf %581 : vector<2x32xf32>
    %cst_324 = arith.constant 0.000000e+00 : f32
    %585 = vector.broadcast %cst_324 : f32 to vector<2x32xf32>
    %586 = arith.subf %585, %584 : vector<2x32xf32>
    %587 = math.exp %586 : vector<2x32xf32>
    %588 = math.log1p %587 : vector<2x32xf32>
    %589 = arith.addf %583, %588 : vector<2x32xf32>
    %590 = math.tanh %589 : vector<2x32xf32>
    %591 = arith.mulf %581, %590 : vector<2x32xf32>
    %592 = arith.truncf %32 : vector<2x32xf32> to vector<2x32xbf16>
    %c0_325 = arith.constant 0 : index
    %c0_326 = arith.constant 0 : index
    %593 = vector.load %arg66[%c0_325, %c0_326] : memref<32x32xbf16, #tpu.memory_space<vmem>>, vector<32x32xbf16>
    %cst_327 = arith.constant dense<0.000000e+00> : vector<2x32xf32>
    %594 = tpu.matmul %592, %593, %cst_327 {dimension_numbers = #tpu.dot_dimension_numbers<[1], [0], [0], [1], [0, 0, 1, 1], [], []>} : vector<2x32xbf16>, vector<32x32xbf16>, vector<2x32xf32> -> vector<2x32xf32>
    %595 = arith.addf %591, %594 : vector<2x32xf32>
    %c0_328 = arith.constant 0 : index
    %c0_329 = arith.constant 0 : index
    %596 = vector.load %arg60[%c0_328, %c0_329] : memref<1x32xf32, #tpu.memory_space<vmem>>, vector<1x32xf32>
    %597 = vector.broadcast %596 : vector<1x32xf32> to vector<2x32xf32>
    %598 = arith.addf %595, %597 : vector<2x32xf32>
    %599 = arith.truncf %598 : vector<2x32xf32> to vector<2x32xbf16>
    %c0_330 = arith.constant 0 : index
    %c0_331 = arith.constant 0 : index
    %600 = vector.load %arg63[%c0_330, %c0_331] : memref<32x32xbf16, #tpu.memory_space<vmem>>, vector<32x32xbf16>
    %cst_332 = arith.constant dense<0.000000e+00> : vector<2x32xf32>
    %601 = tpu.matmul %599, %600, %cst_332 {dimension_numbers = #tpu.dot_dimension_numbers<[1], [0], [0], [1], [0, 0, 1, 1], [], []>} : vector<2x32xbf16>, vector<32x32xbf16>, vector<2x32xf32> -> vector<2x32xf32>
    %c0_333 = arith.constant 0 : index
    %c0_334 = arith.constant 0 : index
    %602 = vector.load %arg58[%c0_333, %c0_334] : memref<1x32xf32, #tpu.memory_space<vmem>>, vector<1x32xf32>
    %603 = vector.broadcast %602 : vector<1x32xf32> to vector<2x32xf32>
    %604 = arith.addf %601, %603 : vector<2x32xf32>
    %cst_335 = arith.constant 0.000000e+00 : f32
    %605 = vector.broadcast %cst_335 : f32 to vector<2x32xf32>
    %606 = arith.maximumf %604, %605 : vector<2x32xf32>
    %607 = math.absf %604 : vector<2x32xf32>
    %cst_336 = arith.constant 0.000000e+00 : f32
    %608 = vector.broadcast %cst_336 : f32 to vector<2x32xf32>
    %609 = arith.subf %608, %607 : vector<2x32xf32>
    %610 = math.exp %609 : vector<2x32xf32>
    %611 = math.log1p %610 : vector<2x32xf32>
    %612 = arith.addf %606, %611 : vector<2x32xf32>
    %613 = math.tanh %612 : vector<2x32xf32>
    %614 = arith.mulf %604, %613 : vector<2x32xf32>
    %615 = arith.truncf %478 : vector<2x64xf32> to vector<2x64xbf16>
    %c0_337 = arith.constant 0 : index
    %c0_338 = arith.constant 0 : index
    %616 = vector.load %arg65[%c0_337, %c0_338] : memref<64x32xbf16, #tpu.memory_space<vmem>>, vector<64x32xbf16>
    %cst_339 = arith.constant dense<0.000000e+00> : vector<2x32xf32>
    %617 = tpu.matmul %615, %616, %cst_339 {dimension_numbers = #tpu.dot_dimension_numbers<[1], [0], [0], [1], [0, 0, 1, 1], [], []>} : vector<2x64xbf16>, vector<64x32xbf16>, vector<2x32xf32> -> vector<2x32xf32>
    %618 = arith.addf %614, %617 : vector<2x32xf32>
    %619 = arith.truncf %517 : vector<2x64xf32> to vector<2x64xbf16>
    %c0_340 = arith.constant 0 : index
    %c0_341 = arith.constant 0 : index
    %620 = vector.load %arg64[%c0_340, %c0_341] : memref<64x32xbf16, #tpu.memory_space<vmem>>, vector<64x32xbf16>
    %cst_342 = arith.constant dense<0.000000e+00> : vector<2x32xf32>
    %621 = tpu.matmul %619, %620, %cst_342 {dimension_numbers = #tpu.dot_dimension_numbers<[1], [0], [0], [1], [0, 0, 1, 1], [], []>} : vector<2x64xbf16>, vector<64x32xbf16>, vector<2x32xf32> -> vector<2x32xf32>
    %622 = arith.addf %618, %621 : vector<2x32xf32>
    %c0_343 = arith.constant 0 : index
    %c0_344 = arith.constant 0 : index
    %623 = vector.load %arg59[%c0_343, %c0_344] : memref<1x32xf32, #tpu.memory_space<vmem>>, vector<1x32xf32>
    %624 = vector.broadcast %623 : vector<1x32xf32> to vector<2x32xf32>
    %625 = arith.addf %622, %624 : vector<2x32xf32>
    %626 = arith.truncf %571 : vector<2x32xf32> to vector<2x32xbf16>
    %c0_345 = arith.constant 0 : index
    %c0_346 = arith.constant 0 : index
    %627 = vector.load %arg41[%c0_345, %c0_346] : memref<32x32xbf16, #tpu.memory_space<vmem>>, vector<32x32xbf16>
    %cst_347 = arith.constant dense<0.000000e+00> : vector<2x32xf32>
    %628 = tpu.matmul %626, %627, %cst_347 {dimension_numbers = #tpu.dot_dimension_numbers<[1], [0], [0], [1], [0, 0, 1, 1], [], []>} : vector<2x32xbf16>, vector<32x32xbf16>, vector<2x32xf32> -> vector<2x32xf32>
    %c0_348 = arith.constant 0 : index
    %c0_349 = arith.constant 0 : index
    %629 = vector.load %arg39[%c0_348, %c0_349] : memref<1x32xf32, #tpu.memory_space<vmem>>, vector<1x32xf32>
    %630 = vector.broadcast %629 : vector<1x32xf32> to vector<2x32xf32>
    %631 = arith.addf %628, %630 : vector<2x32xf32>
    %cst_350 = arith.constant 0.000000e+00 : f32
    %632 = vector.broadcast %cst_350 : f32 to vector<2x32xf32>
    %633 = arith.maximumf %631, %632 : vector<2x32xf32>
    %634 = math.absf %631 : vector<2x32xf32>
    %cst_351 = arith.constant 0.000000e+00 : f32
    %635 = vector.broadcast %cst_351 : f32 to vector<2x32xf32>
    %636 = arith.subf %635, %634 : vector<2x32xf32>
    %637 = math.exp %636 : vector<2x32xf32>
    %638 = math.log1p %637 : vector<2x32xf32>
    %639 = arith.addf %633, %638 : vector<2x32xf32>
    %640 = math.tanh %639 : vector<2x32xf32>
    %641 = arith.mulf %631, %640 : vector<2x32xf32>
    %642 = arith.truncf %641 : vector<2x32xf32> to vector<2x32xbf16>
    %c0_352 = arith.constant 0 : index
    %c0_353 = arith.constant 0 : index
    %643 = vector.load %arg42[%c0_352, %c0_353] : memref<32x8xbf16, #tpu.memory_space<vmem>>, vector<32x8xbf16>
    %cst_354 = arith.constant dense<0.000000e+00> : vector<2x8xf32>
    %644 = tpu.matmul %642, %643, %cst_354 {dimension_numbers = #tpu.dot_dimension_numbers<[1], [0], [0], [1], [0, 0, 1, 1], [], []>} : vector<2x32xbf16>, vector<32x8xbf16>, vector<2x8xf32> -> vector<2x8xf32>
    %c0_355 = arith.constant 0 : index
    %c0_356 = arith.constant 0 : index
    %645 = vector.load %arg40[%c0_355, %c0_356] : memref<1x8xf32, #tpu.memory_space<vmem>>, vector<1x8xf32>
    %646 = vector.broadcast %645 : vector<1x8xf32> to vector<2x8xf32>
    %647 = arith.addf %644, %646 : vector<2x8xf32>
    %c0_357 = arith.constant 0 : index
    %c0_358 = arith.constant 0 : index
    %c0_359 = arith.constant 0 : index
    %648 = vector.load %arg67[%c0_357, %c0_358, %c0_359] : memref<2x2x8xf32, #tpu.memory_space<vmem>>, vector<1x2x8xf32>
    %649 = vector.shape_cast %648 : vector<1x2x8xf32> to vector<2x8xf32>
    %650 = vector.shape_cast %647 : vector<2x8xf32> to vector<1x2x8xf32>
    tpu.vector_store %arg67[%c0_357, %c0_358, %c0_359], %650 {strides = array<i32>} : memref<2x2x8xf32, #tpu.memory_space<vmem>>, vector<1x2x8xf32>,
    %651 = arith.truncf %625 : vector<2x32xf32> to vector<2x32xbf16>
    %c0_360 = arith.constant 0 : index
    %c0_361 = arith.constant 0 : index
    %652 = vector.load %arg41[%c0_360, %c0_361] : memref<32x32xbf16, #tpu.memory_space<vmem>>, vector<32x32xbf16>
    %cst_362 = arith.constant dense<0.000000e+00> : vector<2x32xf32>
    %653 = tpu.matmul %651, %652, %cst_362 {dimension_numbers = #tpu.dot_dimension_numbers<[1], [0], [0], [1], [0, 0, 1, 1], [], []>} : vector<2x32xbf16>, vector<32x32xbf16>, vector<2x32xf32> -> vector<2x32xf32>
    %c0_363 = arith.constant 0 : index
    %c0_364 = arith.constant 0 : index
    %654 = vector.load %arg39[%c0_363, %c0_364] : memref<1x32xf32, #tpu.memory_space<vmem>>, vector<1x32xf32>
    %655 = vector.broadcast %654 : vector<1x32xf32> to vector<2x32xf32>
    %656 = arith.addf %653, %655 : vector<2x32xf32>
    %cst_365 = arith.constant 0.000000e+00 : f32
    %657 = vector.broadcast %cst_365 : f32 to vector<2x32xf32>
    %658 = arith.maximumf %656, %657 : vector<2x32xf32>
    %659 = math.absf %656 : vector<2x32xf32>
    %cst_366 = arith.constant 0.000000e+00 : f32
    %660 = vector.broadcast %cst_366 : f32 to vector<2x32xf32>
    %661 = arith.subf %660, %659 : vector<2x32xf32>
    %662 = math.exp %661 : vector<2x32xf32>
    %663 = math.log1p %662 : vector<2x32xf32>
    %664 = arith.addf %658, %663 : vector<2x32xf32>
    %665 = math.tanh %664 : vector<2x32xf32>
    %666 = arith.mulf %656, %665 : vector<2x32xf32>
    %667 = arith.truncf %666 : vector<2x32xf32> to vector<2x32xbf16>
    %c0_367 = arith.constant 0 : index
    %c0_368 = arith.constant 0 : index
    %668 = vector.load %arg42[%c0_367, %c0_368] : memref<32x8xbf16, #tpu.memory_space<vmem>>, vector<32x8xbf16>
    %cst_369 = arith.constant dense<0.000000e+00> : vector<2x8xf32>
    %669 = tpu.matmul %667, %668, %cst_369 {dimension_numbers = #tpu.dot_dimension_numbers<[1], [0], [0], [1], [0, 0, 1, 1], [], []>} : vector<2x32xbf16>, vector<32x8xbf16>, vector<2x8xf32> -> vector<2x8xf32>
    %c0_370 = arith.constant 0 : index
    %c0_371 = arith.constant 0 : index
    %670 = vector.load %arg40[%c0_370, %c0_371] : memref<1x8xf32, #tpu.memory_space<vmem>>, vector<1x8xf32>
    %671 = vector.broadcast %670 : vector<1x8xf32> to vector<2x8xf32>
    %672 = arith.addf %669, %671 : vector<2x8xf32>
    %c1_372 = arith.constant 1 : index
    %c0_373 = arith.constant 0 : index
    %c0_374 = arith.constant 0 : index
    %673 = vector.load %arg67[%c1_372, %c0_373, %c0_374] : memref<2x2x8xf32, #tpu.memory_space<vmem>>, vector<1x2x8xf32>
    %674 = vector.shape_cast %673 : vector<1x2x8xf32> to vector<2x8xf32>
    %675 = vector.shape_cast %672 : vector<2x8xf32> to vector<1x2x8xf32>
    tpu.vector_store %arg67[%c1_372, %c0_373, %c0_374], %675 {strides = array<i32>} : memref<2x2x8xf32, #tpu.memory_space<vmem>>, vector<1x2x8xf32>,
    return
  }
  func.func @transform_0(%arg0: i32) -> (i32, i32) {
    %c0_i32 = arith.constant 0 : i32
    %c0_i32_0 = arith.constant 0 : i32
    return %arg0, %c0_i32 : i32, i32
  }
  func.func @transform_1(%arg0: i32) -> (i32, i32, i32) {
    %c0_i32 = arith.constant 0 : i32
    %c0_i32_0 = arith.constant 0 : i32
    %c0_i32_1 = arith.constant 0 : i32
    return %c0_i32, %arg0, %c0_i32_0 : i32, i32, i32
  }
  func.func @transform_2(%arg0: i32) -> (i32, i32) {
    %c0_i32 = arith.constant 0 : i32
    %c0_i32_0 = arith.constant 0 : i32
    %c0_i32_1 = arith.constant 0 : i32
    return %c0_i32, %c0_i32_0 : i32, i32
  }
  func.func @transform_3(%arg0: i32) -> (i32, i32) {
    %c0_i32 = arith.constant 0 : i32
    %c0_i32_0 = arith.constant 0 : i32
    %c0_i32_1 = arith.constant 0 : i32
    return %c0_i32, %c0_i32_0 : i32, i32
  }
  func.func @transform_4(%arg0: i32) -> (i32, i32) {
    %c0_i32 = arith.constant 0 : i32
    %c0_i32_0 = arith.constant 0 : i32
    %c0_i32_1 = arith.constant 0 : i32
    return %c0_i32, %c0_i32_0 : i32, i32
  }
  func.func @transform_5(%arg0: i32) -> (i32, i32) {
    %c0_i32 = arith.constant 0 : i32
    %c0_i32_0 = arith.constant 0 : i32
    %c0_i32_1 = arith.constant 0 : i32
    return %c0_i32, %c0_i32_0 : i32, i32
  }
  func.func @transform_6(%arg0: i32) -> (i32, i32) {
    %c0_i32 = arith.constant 0 : i32
    %c0_i32_0 = arith.constant 0 : i32
    %c0_i32_1 = arith.constant 0 : i32
    return %c0_i32, %c0_i32_0 : i32, i32
  }
  func.func @transform_7(%arg0: i32) -> (i32, i32) {
    %c0_i32 = arith.constant 0 : i32
    %c0_i32_0 = arith.constant 0 : i32
    %c0_i32_1 = arith.constant 0 : i32
    return %c0_i32, %c0_i32_0 : i32, i32
  }
  func.func @transform_8(%arg0: i32) -> (i32, i32) {
    %c0_i32 = arith.constant 0 : i32
    %c0_i32_0 = arith.constant 0 : i32
    %c0_i32_1 = arith.constant 0 : i32
    return %c0_i32, %c0_i32_0 : i32, i32
  }
  func.func @transform_9(%arg0: i32) -> (i32, i32) {
    %c0_i32 = arith.constant 0 : i32
    %c0_i32_0 = arith.constant 0 : i32
    %c0_i32_1 = arith.constant 0 : i32
    return %c0_i32, %c0_i32_0 : i32, i32
  }
  func.func @transform_10(%arg0: i32) -> (i32, i32) {
    %c0_i32 = arith.constant 0 : i32
    %c0_i32_0 = arith.constant 0 : i32
    %c0_i32_1 = arith.constant 0 : i32
    return %c0_i32, %c0_i32_0 : i32, i32
  }
  func.func @transform_11(%arg0: i32) -> (i32, i32) {
    %c0_i32 = arith.constant 0 : i32
    %c0_i32_0 = arith.constant 0 : i32
    %c0_i32_1 = arith.constant 0 : i32
    return %c0_i32, %c0_i32_0 : i32, i32
  }
  func.func @transform_12(%arg0: i32) -> (i32, i32) {
    %c0_i32 = arith.constant 0 : i32
    %c0_i32_0 = arith.constant 0 : i32
    %c0_i32_1 = arith.constant 0 : i32
    return %c0_i32, %c0_i32_0 : i32, i32
  }
  func.func @transform_13(%arg0: i32) -> (i32, i32) {
    %c0_i32 = arith.constant 0 : i32
    %c0_i32_0 = arith.constant 0 : i32
    %c0_i32_1 = arith.constant 0 : i32
    return %c0_i32, %c0_i32_0 : i32, i32
  }
  func.func @transform_14(%arg0: i32) -> (i32, i32) {
    %c0_i32 = arith.constant 0 : i32
    %c0_i32_0 = arith.constant 0 : i32
    %c0_i32_1 = arith.constant 0 : i32
    return %c0_i32, %c0_i32_0 : i32, i32
  }
  func.func @transform_15(%arg0: i32) -> (i32, i32) {
    %c0_i32 = arith.constant 0 : i32
    %c0_i32_0 = arith.constant 0 : i32
    %c0_i32_1 = arith.constant 0 : i32
    return %c0_i32, %c0_i32_0 : i32, i32
  }
  func.func @transform_16(%arg0: i32) -> (i32, i32) {
    %c0_i32 = arith.constant 0 : i32
    %c0_i32_0 = arith.constant 0 : i32
    %c0_i32_1 = arith.constant 0 : i32
    return %c0_i32, %c0_i32_0 : i32, i32
  }
  func.func @transform_17(%arg0: i32) -> (i32, i32) {
    %c0_i32 = arith.constant 0 : i32
    %c0_i32_0 = arith.constant 0 : i32
    %c0_i32_1 = arith.constant 0 : i32
    return %c0_i32, %c0_i32_0 : i32, i32
  }
  func.func @transform_18(%arg0: i32) -> (i32, i32) {
    %c0_i32 = arith.constant 0 : i32
    %c0_i32_0 = arith.constant 0 : i32
    %c0_i32_1 = arith.constant 0 : i32
    return %c0_i32, %c0_i32_0 : i32, i32
  }
  func.func @transform_19(%arg0: i32) -> (i32, i32) {
    %c0_i32 = arith.constant 0 : i32
    %c0_i32_0 = arith.constant 0 : i32
    %c0_i32_1 = arith.constant 0 : i32
    return %c0_i32, %c0_i32_0 : i32, i32
  }
  func.func @transform_20(%arg0: i32) -> (i32, i32) {
    %c0_i32 = arith.constant 0 : i32
    %c0_i32_0 = arith.constant 0 : i32
    %c0_i32_1 = arith.constant 0 : i32
    return %c0_i32, %c0_i32_0 : i32, i32
  }
  func.func @transform_21(%arg0: i32) -> (i32, i32) {
    %c0_i32 = arith.constant 0 : i32
    %c0_i32_0 = arith.constant 0 : i32
    %c0_i32_1 = arith.constant 0 : i32
    return %c0_i32, %c0_i32_0 : i32, i32
  }
  func.func @transform_22(%arg0: i32) -> (i32, i32) {
    %c0_i32 = arith.constant 0 : i32
    %c0_i32_0 = arith.constant 0 : i32
    %c0_i32_1 = arith.constant 0 : i32
    return %c0_i32, %c0_i32_0 : i32, i32
  }
  func.func @transform_23(%arg0: i32) -> (i32, i32) {
    %c0_i32 = arith.constant 0 : i32
    %c0_i32_0 = arith.constant 0 : i32
    %c0_i32_1 = arith.constant 0 : i32
    return %c0_i32, %c0_i32_0 : i32, i32
  }
  func.func @transform_24(%arg0: i32) -> (i32, i32) {
    %c0_i32 = arith.constant 0 : i32
    %c0_i32_0 = arith.constant 0 : i32
    %c0_i32_1 = arith.constant 0 : i32
    return %c0_i32, %c0_i32_0 : i32, i32
  }
  func.func @transform_25(%arg0: i32) -> (i32, i32) {
    %c0_i32 = arith.constant 0 : i32
    %c0_i32_0 = arith.constant 0 : i32
    %c0_i32_1 = arith.constant 0 : i32
    return %c0_i32, %c0_i32_0 : i32, i32
  }
  func.func @transform_26(%arg0: i32) -> (i32, i32) {
    %c0_i32 = arith.constant 0 : i32
    %c0_i32_0 = arith.constant 0 : i32
    %c0_i32_1 = arith.constant 0 : i32
    return %c0_i32, %c0_i32_0 : i32, i32
  }
  func.func @transform_27(%arg0: i32) -> (i32, i32) {
    %c0_i32 = arith.constant 0 : i32
    %c0_i32_0 = arith.constant 0 : i32
    %c0_i32_1 = arith.constant 0 : i32
    return %c0_i32, %c0_i32_0 : i32, i32
  }
  func.func @transform_28(%arg0: i32) -> (i32, i32) {
    %c0_i32 = arith.constant 0 : i32
    %c0_i32_0 = arith.constant 0 : i32
    %c0_i32_1 = arith.constant 0 : i32
    return %c0_i32, %c0_i32_0 : i32, i32
  }
  func.func @transform_29(%arg0: i32) -> (i32, i32) {
    %c0_i32 = arith.constant 0 : i32
    %c0_i32_0 = arith.constant 0 : i32
    %c0_i32_1 = arith.constant 0 : i32
    return %c0_i32, %c0_i32_0 : i32, i32
  }
  func.func @transform_30(%arg0: i32) -> (i32, i32) {
    %c0_i32 = arith.constant 0 : i32
    %c0_i32_0 = arith.constant 0 : i32
    %c0_i32_1 = arith.constant 0 : i32
    return %c0_i32, %c0_i32_0 : i32, i32
  }
  func.func @transform_31(%arg0: i32) -> (i32, i32) {
    %c0_i32 = arith.constant 0 : i32
    %c0_i32_0 = arith.constant 0 : i32
    %c0_i32_1 = arith.constant 0 : i32
    return %c0_i32, %c0_i32_0 : i32, i32
  }
  func.func @transform_32(%arg0: i32) -> (i32, i32) {
    %c0_i32 = arith.constant 0 : i32
    %c0_i32_0 = arith.constant 0 : i32
    %c0_i32_1 = arith.constant 0 : i32
    return %c0_i32, %c0_i32_0 : i32, i32
  }
  func.func @transform_33(%arg0: i32) -> (i32, i32) {
    %c0_i32 = arith.constant 0 : i32
    %c0_i32_0 = arith.constant 0 : i32
    %c0_i32_1 = arith.constant 0 : i32
    return %c0_i32, %c0_i32_0 : i32, i32
  }
  func.func @transform_34(%arg0: i32) -> (i32, i32) {
    %c0_i32 = arith.constant 0 : i32
    %c0_i32_0 = arith.constant 0 : i32
    %c0_i32_1 = arith.constant 0 : i32
    return %c0_i32, %c0_i32_0 : i32, i32
  }
  func.func @transform_35(%arg0: i32) -> (i32, i32) {
    %c0_i32 = arith.constant 0 : i32
    %c0_i32_0 = arith.constant 0 : i32
    %c0_i32_1 = arith.constant 0 : i32
    return %c0_i32, %c0_i32_0 : i32, i32
  }
  func.func @transform_36(%arg0: i32) -> (i32, i32) {
    %c0_i32 = arith.constant 0 : i32
    %c0_i32_0 = arith.constant 0 : i32
    %c0_i32_1 = arith.constant 0 : i32
    return %c0_i32, %c0_i32_0 : i32, i32
  }
  func.func @transform_37(%arg0: i32) -> (i32, i32) {
    %c0_i32 = arith.constant 0 : i32
    %c0_i32_0 = arith.constant 0 : i32
    %c0_i32_1 = arith.constant 0 : i32
    return %c0_i32, %c0_i32_0 : i32, i32
  }
  func.func @transform_38(%arg0: i32) -> (i32, i32) {
    %c0_i32 = arith.constant 0 : i32
    %c0_i32_0 = arith.constant 0 : i32
    %c0_i32_1 = arith.constant 0 : i32
    return %c0_i32, %c0_i32_0 : i32, i32
  }
  func.func @transform_39(%arg0: i32) -> (i32, i32) {
    %c0_i32 = arith.constant 0 : i32
    %c0_i32_0 = arith.constant 0 : i32
    %c0_i32_1 = arith.constant 0 : i32
    return %c0_i32, %c0_i32_0 : i32, i32
  }
  func.func @transform_40(%arg0: i32) -> (i32, i32) {
    %c0_i32 = arith.constant 0 : i32
    %c0_i32_0 = arith.constant 0 : i32
    %c0_i32_1 = arith.constant 0 : i32
    return %c0_i32, %c0_i32_0 : i32, i32
  }
  func.func @transform_41(%arg0: i32) -> (i32, i32) {
    %c0_i32 = arith.constant 0 : i32
    %c0_i32_0 = arith.constant 0 : i32
    %c0_i32_1 = arith.constant 0 : i32
    return %c0_i32, %c0_i32_0 : i32, i32
  }
  func.func @transform_42(%arg0: i32) -> (i32, i32) {
    %c0_i32 = arith.constant 0 : i32
    %c0_i32_0 = arith.constant 0 : i32
    %c0_i32_1 = arith.constant 0 : i32
    return %c0_i32, %c0_i32_0 : i32, i32
  }
  func.func @transform_43(%arg0: i32) -> (i32, i32) {
    %c0_i32 = arith.constant 0 : i32
    %c0_i32_0 = arith.constant 0 : i32
    %c0_i32_1 = arith.constant 0 : i32
    return %c0_i32, %c0_i32_0 : i32, i32
  }
  func.func @transform_44(%arg0: i32) -> (i32, i32) {
    %c0_i32 = arith.constant 0 : i32
    %c0_i32_0 = arith.constant 0 : i32
    %c0_i32_1 = arith.constant 0 : i32
    return %c0_i32, %c0_i32_0 : i32, i32
  }
  func.func @transform_45(%arg0: i32) -> (i32, i32) {
    %c0_i32 = arith.constant 0 : i32
    %c0_i32_0 = arith.constant 0 : i32
    %c0_i32_1 = arith.constant 0 : i32
    return %c0_i32, %c0_i32_0 : i32, i32
  }
  func.func @transform_46(%arg0: i32) -> (i32, i32) {
    %c0_i32 = arith.constant 0 : i32
    %c0_i32_0 = arith.constant 0 : i32
    %c0_i32_1 = arith.constant 0 : i32
    return %c0_i32, %c0_i32_0 : i32, i32
  }
  func.func @transform_47(%arg0: i32) -> (i32, i32) {
    %c0_i32 = arith.constant 0 : i32
    %c0_i32_0 = arith.constant 0 : i32
    %c0_i32_1 = arith.constant 0 : i32
    return %c0_i32, %c0_i32_0 : i32, i32
  }
  func.func @transform_48(%arg0: i32) -> (i32, i32) {
    %c0_i32 = arith.constant 0 : i32
    %c0_i32_0 = arith.constant 0 : i32
    %c0_i32_1 = arith.constant 0 : i32
    return %c0_i32, %c0_i32_0 : i32, i32
  }
  func.func @transform_49(%arg0: i32) -> (i32, i32) {
    %c0_i32 = arith.constant 0 : i32
    %c0_i32_0 = arith.constant 0 : i32
    %c0_i32_1 = arith.constant 0 : i32
    return %c0_i32, %c0_i32_0 : i32, i32
  }
  func.func @transform_50(%arg0: i32) -> (i32, i32) {
    %c0_i32 = arith.constant 0 : i32
    %c0_i32_0 = arith.constant 0 : i32
    %c0_i32_1 = arith.constant 0 : i32
    return %c0_i32, %c0_i32_0 : i32, i32
  }
  func.func @transform_51(%arg0: i32) -> (i32, i32) {
    %c0_i32 = arith.constant 0 : i32
    %c0_i32_0 = arith.constant 0 : i32
    %c0_i32_1 = arith.constant 0 : i32
    return %c0_i32, %c0_i32_0 : i32, i32
  }
  func.func @transform_52(%arg0: i32) -> (i32, i32) {
    %c0_i32 = arith.constant 0 : i32
    %c0_i32_0 = arith.constant 0 : i32
    %c0_i32_1 = arith.constant 0 : i32
    return %c0_i32, %c0_i32_0 : i32, i32
  }
  func.func @transform_53(%arg0: i32) -> (i32, i32) {
    %c0_i32 = arith.constant 0 : i32
    %c0_i32_0 = arith.constant 0 : i32
    %c0_i32_1 = arith.constant 0 : i32
    return %c0_i32, %c0_i32_0 : i32, i32
  }
  func.func @transform_54(%arg0: i32) -> (i32, i32) {
    %c0_i32 = arith.constant 0 : i32
    %c0_i32_0 = arith.constant 0 : i32
    %c0_i32_1 = arith.constant 0 : i32
    return %c0_i32, %c0_i32_0 : i32, i32
  }
  func.func @transform_55(%arg0: i32) -> (i32, i32) {
    %c0_i32 = arith.constant 0 : i32
    %c0_i32_0 = arith.constant 0 : i32
    %c0_i32_1 = arith.constant 0 : i32
    return %c0_i32, %c0_i32_0 : i32, i32
  }
  func.func @transform_56(%arg0: i32) -> (i32, i32) {
    %c0_i32 = arith.constant 0 : i32
    %c0_i32_0 = arith.constant 0 : i32
    %c0_i32_1 = arith.constant 0 : i32
    return %c0_i32, %c0_i32_0 : i32, i32
  }
  func.func @transform_57(%arg0: i32) -> (i32, i32) {
    %c0_i32 = arith.constant 0 : i32
    %c0_i32_0 = arith.constant 0 : i32
    %c0_i32_1 = arith.constant 0 : i32
    return %c0_i32, %c0_i32_0 : i32, i32
  }
  func.func @transform_58(%arg0: i32) -> (i32, i32) {
    %c0_i32 = arith.constant 0 : i32
    %c0_i32_0 = arith.constant 0 : i32
    %c0_i32_1 = arith.constant 0 : i32
    return %c0_i32, %c0_i32_0 : i32, i32
  }
  func.func @transform_59(%arg0: i32) -> (i32, i32) {
    %c0_i32 = arith.constant 0 : i32
    %c0_i32_0 = arith.constant 0 : i32
    %c0_i32_1 = arith.constant 0 : i32
    return %c0_i32, %c0_i32_0 : i32, i32
  }
  func.func @transform_60(%arg0: i32) -> (i32, i32) {
    %c0_i32 = arith.constant 0 : i32
    %c0_i32_0 = arith.constant 0 : i32
    %c0_i32_1 = arith.constant 0 : i32
    return %c0_i32, %c0_i32_0 : i32, i32
  }
  func.func @transform_61(%arg0: i32) -> (i32, i32) {
    %c0_i32 = arith.constant 0 : i32
    %c0_i32_0 = arith.constant 0 : i32
    %c0_i32_1 = arith.constant 0 : i32
    return %c0_i32, %c0_i32_0 : i32, i32
  }
  func.func @transform_62(%arg0: i32) -> (i32, i32) {
    %c0_i32 = arith.constant 0 : i32
    %c0_i32_0 = arith.constant 0 : i32
    %c0_i32_1 = arith.constant 0 : i32
    return %c0_i32, %c0_i32_0 : i32, i32
  }
  func.func @transform_63(%arg0: i32) -> (i32, i32) {
    %c0_i32 = arith.constant 0 : i32
    %c0_i32_0 = arith.constant 0 : i32
    %c0_i32_1 = arith.constant 0 : i32
    return %c0_i32, %c0_i32_0 : i32, i32
  }
  func.func @transform_64(%arg0: i32) -> (i32, i32) {
    %c0_i32 = arith.constant 0 : i32
    %c0_i32_0 = arith.constant 0 : i32
    %c0_i32_1 = arith.constant 0 : i32
    return %c0_i32, %c0_i32_0 : i32, i32
  }
  func.func @transform_65(%arg0: i32) -> (i32, i32) {
    %c0_i32 = arith.constant 0 : i32
    %c0_i32_0 = arith.constant 0 : i32
    %c0_i32_1 = arith.constant 0 : i32
    return %c0_i32, %c0_i32_0 : i32, i32
  }
  func.func @transform_66(%arg0: i32) -> (i32, i32, i32) {
    %c0_i32 = arith.constant 0 : i32
    %c0_i32_0 = arith.constant 0 : i32
    %c0_i32_1 = arith.constant 0 : i32
    return %c0_i32, %arg0, %c0_i32_0 : i32, i32, i32
  }
}

</mosaic_0001>

<bundles_post_ra>
// kernel: shared_attention_autoencoder_forward.1
= control target key start
LH: loop header
LB: loop body
LE: loop exit
PB: predicated region body
PF: predicated region fallthrough
CT: control target
= control target key end

     0   :  { %s7462_s6 = smov 1   ;;  %s7463_s10 = smov 2   ;;  %s9117_s0 = inlined_call_operand.smem [shape: u32[67], index: -1, kind: input, shape index: {}] }
   0x1   :  { %s7563_s5 = sld [smem:[%s9117_s0]]   ;;  %s7464_s14 = smov 3  }
   0x2   :  { %s7568_s9 = sld [smem:[%s9117_s0 + %s7462_s6]]   ;;  %s7465_s18 = smov 4  }
   0x3   :  { %s7573_s13 = sld [smem:[%s9117_s0 + %s7463_s10]]   ;;  %s7466_s22 = smov 5  }
   0x4   :  { %s7578_s17 = sld [smem:[%s9117_s0 + %s7464_s14]]   ;;  %s7467_s26 = smov 6  }
   0x5   :  { %s7583_s21 = sld [smem:[%s9117_s0 + %s7465_s18]]   ;;  %s7468_s30 = smov 7  }
   0x6   :  { %s7588_s25 = sld [smem:[%s9117_s0 + %s7466_s22]]   ;;  %s7469_s4 = smov 8  }
   0x7   :  { %9159 = sst [smem:[#allocation53_spill]] %s7563_s5  ;;  %s7470_s10 = smov 9  }
   0x8   :  { %9160 = sst [smem:[#allocation54_spill]] %s7568_s9  ;;  %s7471_s15 = smov 10  }
   0x9   :  { %s7593_s29 = sld [smem:[%s9117_s0 + %s7467_s26]]   ;;  %s7472_s20 = smov 11  }
   0xa   :  { %s7598_s3 = sld [smem:[%s9117_s0 + %s7468_s30]]   ;;  %s7473_s26 = smov 12  }
   0xb   :  { %9161 = sst [smem:[#allocation55_spill]] %s7583_s21  ;;  %s7474_s1 = smov 13  }
   0xc   :  { %9162 = sst [smem:[#allocation56_spill]] %s7588_s25  ;;  %s7475_s7 = smov 14  }
   0xd   :  { %s7603_s8 = sld [smem:[%s9117_s0 + %s7469_s4]]   ;;  %s7477_s22 = smov 16  }
   0xe   :  { %s7608_s14 = sld [smem:[%s9117_s0 + %s7470_s10]]   ;;  %s7478_s28 = smov 17  }
   0xf   :  { %s7613_s19 = sld [smem:[%s9117_s0 + %s7471_s15]]   ;;  %s7476_s15 = smov 15  }
  0x10   :  { %s7618_s24 = sld [smem:[%s9117_s0 + %s7472_s20]]  }
  0x11   :  { %s7623_s30 = sld [smem:[%s9117_s0 + %s7473_s26]]  }
  0x12   :  { %s7628_s6 = sld [smem:[%s9117_s0 + %s7474_s1]]  }
  0x13   :  { %9163 = sst [smem:[#allocation57_spill]] %s7603_s8 }
  0x14   :  { %9164 = sst [smem:[#allocation58_spill]] %s7608_s14 }
  0x15   :  { %9165 = sst [smem:[#allocation59_spill]] %s7613_s19 }
  0x16   :  { %s7633_s12 = sld [smem:[%s9117_s0 + %s7475_s7]]   ;;  %s7479_s7 = smov 18  }
  0x17   :  { %9166 = sst [smem:[#allocation60_spill]] %s7623_s30 }
  0x18   :  { %9167 = sst [smem:[#allocation61_spill]] %s7628_s6 }
  0x19   :  { %s7638_s20 = sld [smem:[%s9117_s0 + %s7476_s15]]   ;;  %s7480_s15 = smov 19  }
  0x1a   :  { %s7643_s27 = sld [smem:[%s9117_s0 + %s7477_s22]]   ;;  %s7481_s22 = smov 20  }
  0x1b   :  { %s7648_s4 = sld [smem:[%s9117_s0 + %s7478_s28]]   ;;  %s7482_s28 = smov 21  }
  0x1c   :  { %9168 = sst [smem:[#allocation62_spill]] %s7633_s12 }
  0x1d   :  { %s7653_s6 = sld [smem:[%s9117_s0 + %s7479_s7]]   ;;  %s7483_s7 = smov 22  }
  0x1e   :  { %s7658_s30 = sld [smem:[%s9117_s0 + %s7480_s15]]   ;;  %s7484_s15 = smov 23  }
  0x1f   :  { %9169 = sst [smem:[#allocation63_spill]] %s7638_s20 }
  0x20   :  { %s7663_s14 = sld [smem:[%s9117_s0 + %s7481_s22]]   ;;  %s7485_s22 = smov 24  }
  0x21   :  { %9170 = sst [smem:[#allocation64_spill]] %s7648_s4 }
  0x22   :  { %s7668_s8 = sld [smem:[%s9117_s0 + %s7482_s28]]   ;;  %s7486_s28 = smov 25  }
  0x23   :  { %s7673_s25 = sld [smem:[%s9117_s0 + %s7483_s7]]   ;;  %s7487_s7 = smov 26  }
  0x24   :  { %9171 = sst [smem:[#allocation65_spill]] %s7658_s30 }
  0x25   :  { %s7678_s21 = sld [smem:[%s9117_s0 + %s7484_s15]]   ;;  %s7488_s15 = smov 27  }
  0x26   :  { %9172 = sst [smem:[#allocation66_spill]] %s7663_s14 }
  0x27   :  { %s7683_s20 = sld [smem:[%s9117_s0 + %s7485_s22]]   ;;  %s7489_s22 = smov 28  }
  0x28   :  { %9173 = sst [smem:[#allocation67_spill]] %s7668_s8 }
  0x29   :  { %s7688_s30 = sld [smem:[%s9117_s0 + %s7486_s28]]   ;;  %s7490_s28 = smov 29  }
  0x2a   :  { %s7693_s8 = sld [smem:[%s9117_s0 + %s7487_s7]]   ;;  %s7491_s7 = smov 30  }
  0x2b   :  { %9174 = sst [smem:[#allocation68_spill]] %s7678_s21 }
  0x2c   :  { %s7698_s9 = sld [smem:[%s9117_s0 + %s7488_s15]]   ;;  %s7492_s15 = smov 31  }
  0x2d   :  { %s7703_s5 = sld [smem:[%s9117_s0 + %s7489_s22]]   ;;  %s7493_s22 = smov 32  }
  0x2f   :  { %9175 = sst [smem:[#allocation69_spill]] %s7688_s30 }
  0x30   :  { %9176 = sst [smem:[#allocation70_spill]] %s7693_s8 }
  0x31   :  { %s7708_s30 = sld [smem:[%s9117_s0 + %s7490_s28]]   ;;  %s7494_s28 = smov 33  }
  0x32   :  { %9177 = sst [smem:[#allocation71_spill]] %s7698_s9 }
  0x33   :  { %9178 = sst [smem:[#allocation72_spill]] %s7703_s5 }
  0x34   :  { %s7713_s8 = sld [smem:[%s9117_s0 + %s7491_s7]]   ;;  %s7495_s7 = smov 34  }
  0x35   :  { %s7718_s9 = sld [smem:[%s9117_s0 + %s7492_s15]]   ;;  %s7496_s15 = smov 35  }
  0x36   :  { %s7723_s5 = sld [smem:[%s9117_s0 + %s7493_s22]]   ;;  %s7497_s22 = smov 36  }
  0x37   :  { %9179 = sst [smem:[#allocation73_spill]] %s7708_s30 }
  0x38   :  { %s7728_s30 = sld [smem:[%s9117_s0 + %s7494_s28]]   ;;  %s7498_s28 = smov 37  }
  0x3a   :  { %9180 = sst [smem:[#allocation74_spill]] %s7713_s8 }
  0x3b   :  { %9181 = sst [smem:[#allocation75_spill]] %s7718_s9 }
  0x3c   :  { %9182 = sst [smem:[#allocation76_spill]] %s7723_s5 }
  0x3d   :  { %s7733_s8 = sld [smem:[%s9117_s0 + %s7495_s7]]   ;;  %s7499_s7 = smov 38  }
  0x3e   :  { %9183 = sst [smem:[#allocation77_spill]] %s7728_s30 }
  0x3f   :  { %s7738_s9 = sld [smem:[%s9117_s0 + %s7496_s15]]   ;;  %s7500_s15 = smov 39  }
  0x40   :  { %s7743_s5 = sld [smem:[%s9117_s0 + %s7497_s22]]   ;;  %s7501_s22 = smov 40  }
  0x41   :  { %s7748_s30 = sld [smem:[%s9117_s0 + %s7498_s28]]   ;;  %s7502_s28 = smov 41  }
  0x43   :  { %9184 = sst [smem:[#allocation78_spill]] %s7733_s8 }
  0x44   :  { %s7753_s8 = sld [smem:[%s9117_s0 + %s7499_s7]]   ;;  %s7503_s7 = smov 42  }
  0x45   :  { %9185 = sst [smem:[#allocation79_spill]] %s7738_s9 }
  0x46   :  { %9186 = sst [smem:[#allocation80_spill]] %s7743_s5 }
  0x47   :  { %9187 = sst [smem:[#allocation81_spill]] %s7748_s30 }
  0x48   :  { %s7758_s9 = sld [smem:[%s9117_s0 + %s7500_s15]]   ;;  %s7504_s15 = smov 43  }
  0x49   :  { %s7763_s5 = sld [smem:[%s9117_s0 + %s7501_s22]]   ;;  %s7505_s22 = smov 44  }
  0x4a   :  { %9188 = sst [smem:[#allocation82_spill]] %s7753_s8 }
  0x4b   :  { %s7768_s30 = sld [smem:[%s9117_s0 + %s7502_s28]]   ;;  %s7506_s28 = smov 45  }
  0x4c   :  { %s7773_s8 = sld [smem:[%s9117_s0 + %s7503_s7]]   ;;  %s7507_s7 = smov 46  }
  0x4d   :  { %s7793_s21 = sld [smem:[%s9117_s0 + %s7507_s7]]   ;;  %s7511_s7 = smov 50  }
  0x4e   :  { %9189 = sst [smem:[#allocation83_spill]] %s7758_s9 }
  0x4f   :  { %9190 = sst [smem:[#allocation84_spill]] %s7763_s5 }
  0x50   :  { %s7778_s9 = sld [smem:[%s9117_s0 + %s7504_s15]]   ;;  %s7508_s15 = smov 47  }
  0x51   :  { %9191 = sst [smem:[#allocation85_spill]] %s7768_s30 }
  0x52   :  { %s7783_s5 = sld [smem:[%s9117_s0 + %s7505_s22]]   ;;  %s7509_s22 = smov 48  }
  0x53   :  { %s7788_s30 = sld [smem:[%s9117_s0 + %s7506_s28]]   ;;  %s7510_s28 = smov 49  }
  0x54   :  { %s7813_s14 = sld [smem:[%s9117_s0 + %s7511_s7]]   ;;  %s7515_s7 = smov 54  }
  0x56   :  { %9192 = sst [smem:[#allocation86_spill]] %s7778_s9 }
  0x57   :  { %s7798_s9 = sld [smem:[%s9117_s0 + %s7508_s15]]   ;;  %s7512_s15 = smov 51  }
  0x58   :  { %9193 = sst [smem:[#allocation87_spill]] %s7783_s5 }
  0x59   :  { %9194 = sst [smem:[#allocation88_spill]] %s7788_s30 }
  0x5a   :  { %s7803_s5 = sld [smem:[%s9117_s0 + %s7509_s22]]   ;;  %s7513_s22 = smov 52  }
  0x5b   :  { %s7808_s30 = sld [smem:[%s9117_s0 + %s7510_s28]]   ;;  %s7514_s28 = smov 53  }
  0x5c   :  { %9197 = sst [smem:[#allocation91_spill]] %s7813_s14 }
  0x5d   :  { %9195 = sst [smem:[#allocation89_spill]] %s7798_s9 }
  0x5e   :  { %s7818_s9 = sld [smem:[%s9117_s0 + %s7512_s15]]   ;;  %s7516_s15 = smov 55  }
  0x5f   :  { %s7823_s4 = sld [smem:[%s9117_s0 + %s7513_s22]]   ;;  %s7517_s22 = smov 56  }
  0x60   :  { %s7833_s14 = sld [smem:[%s9117_s0 + %s7515_s7]]   ;;  %s7519_s7 = smov 58  }
  0x61   :  { %9196 = sst [smem:[#allocation90_spill]] %s7808_s30 }
  0x62   :  { %s7828_s30 = sld [smem:[%s9117_s0 + %s7514_s28]]   ;;  %s7518_s28 = smov 57  }
  0x64   :  { %9198 = sst [smem:[#allocation92_spill]] %s7818_s9 }
  0x65   :  { %9199 = sst [smem:[#allocation93_spill]] %s7823_s4 }
  0x66   :  { %9201 = sst [smem:[#allocation95_spill]] %s7833_s14 }
  0x67   :  { %s7838_s9 = sld [smem:[%s9117_s0 + %s7516_s15]]   ;;  %s7520_s15 = smov 59  }
  0x68   :  { %9200 = sst [smem:[#allocation94_spill]] %s7828_s30 }
  0x69   :  { %s7843_s4 = sld [smem:[%s9117_s0 + %s7517_s22]]   ;;  %s7521_s22 = smov 60  }
  0x6a   :  { %s7848_s30 = sld [smem:[%s9117_s0 + %s7518_s28]]   ;;  %s7522_s28 = smov 61  }
  0x6b   :  { %s7853_s14 = sld [smem:[%s9117_s0 + %s7519_s7]]   ;;  %s7523_s7 = smov 62  }
  0x6c   :  { %s7863_s12 = sld [smem:[%s9117_s0 + %s7521_s22]]   ;;  %s7525_s22 = smov 64  }
  0x6d   :  { %9202 = sst [smem:[#allocation96_spill]] %s7838_s9 }
  0x6e   :  { %s7858_s9 = sld [smem:[%s9117_s0 + %s7520_s15]]   ;;  %s7524_s15 = smov 63  }
  0x6f   :  { %s7873_s19 = sld [smem:[%s9117_s0 + %s7523_s7]]   ;;  %s7527_s7 = smov 66  }
  0x70   :  { %9203 = sst [smem:[#allocation97_spill]] %s7848_s30 }
  0x71   :  { %s7868_s30 = sld [smem:[%s9117_s0 + %s7522_s28]]   ;;  %s7526_s28 = smov 65  }
  0x72   :  { %9205 = sst [smem:[#allocation99_spill]] %s7863_s12 }
  0x73   :  { %s7883_s12 = sld [smem:[%s9117_s0 + %s7525_s22]]  }
  0x74   :  { %9204 = sst [smem:[#allocation98_spill]] %s7858_s9 }
  0x75   :  { %9207 = sst [smem:[#allocation101_spill]] %s7873_s19 }
  0x76   :  { %s7878_s9 = sld [smem:[%s9117_s0 + %s7524_s15]]  }
  0x77   :  { %9206 = sst [smem:[#allocation100_spill]] %s7868_s30 }
  0x78   :  { %s7888_s30 = sld [smem:[%s9117_s0 + %s7526_s28]]  }
  0x79   :  { %s7893_s19 = sld [smem:[%s9117_s0 + %s7527_s7]]  }
  0x7a   :  { %138 = vsyncpa [#allocation3], 0 }
  0x7b   :  { %139 = vsyncpa [#allocation5], 0 }
  0x7c   :  { %140 = vsyncpa [#allocation8], 0 }
  0x7d   :  { %141 = vsyncpa [#allocation11], 0 }
  0x7e   :  { %142 = vsyncpa [#allocation14], 0 }
  0x7f   :  { %143 = vsyncpa [#allocation17], 0 }
  0x80   :  { %144 = vsyncpa [#allocation20], 0 }
  0x81   :  { %145 = vsyncpa [#allocation23], 0 }
  0x82   :  { %146 = vsyncpa [#allocation26], 0 }
  0x83   :  { %147 = vsyncpa [#allocation29], 0 }
  0x84   :  { %148 = vsyncpa [#allocation32], 0 }
  0x85   :  { %149 = vsyncpa [#allocation35], 0 }
  0x86   :  { %150 = vsyncpa [#allocation38], 0  ;;  %s7528_s15 = smov [#allocation4]   ;;  %s7529_s0 = smov [#allocation7]  }
  0x87   :  { %s171_s16 = sshll.u32 %s7528_s15, 4  ;;  %s195_s18 = sshll.u32 %s7529_s0, 4  ;;  %s172_s16 = int_to_ptr.vmem [resolvable:$true] %s171_s16  ;;  %s196_s18 = int_to_ptr.vmem [resolvable:$true] %s195_s18 }
  0x88   :  { %s6886_s22 = scalar_lea.hbm %s7578_s17, 16 }
  0x89   :  { %p6887_p0 = scmp.ne.s32.totalorder %s7578_s17, %s6886_s22  ;;  %p6890_p1 = scmp.lt.u32.totalorder %s6886_s22, %s7578_s17 }
  0x8b   :  { %p6892_p2 = pnand %p6890_p1, %p6887_p0 }
  0x8d   :  { %6895 = shalt.err (!%p6892_p2)
}
  0x8e   :  { %s6896_s23 = scalar_lea.vmem %s172_s16, 16  ;;  %s6900_s26 = scalar_lea.vmem %s172_s16, 32 }
  0x8f   :  { %p6897_p3 = scmp.ne.s32.totalorder %s172_s16, %s6896_s23  ;;  %p6901_p4 = scmp.lt.s32.totalorder %s172_s16, %s172_s16 }
  0x90   :  { %p6902_p5 = scmp.lt.s32.totalorder %s6900_s26, %s6896_s23 }
  0x92   :  { %p6903_p6 = por %p6902_p5, %p6901_p4 }
  0x94   :  { %p6904_p7 = pnand %p6903_p6, %p6897_p3 }
  0x96   :  { %6907 = shalt.err (!%p6904_p7)
}
  0x97   :  { %174 = dma.hbm_to_vmem [thread:$0]  %s7578_s17, 16, %s172_s16, [#allocation5]  }
  0x98   :  { %s6908_s28 = scalar_lea.hbm %s7598_s3, 16 }
  0x99   :  { %p6909_p8 = scmp.ne.s32.totalorder %s7598_s3, %s6908_s28  ;;  %p6912_p9 = scmp.lt.u32.totalorder %s6908_s28, %s7598_s3 }
  0x9b   :  { %p6914_p10 = pnand %p6912_p9, %p6909_p8 }
  0x9d   :  { %6917 = shalt.err (!%p6914_p10)
}
  0x9e   :  { %s6918_s1 = scalar_lea.vmem %s196_s18, 16  ;;  %s6922_s2 = scalar_lea.vmem %s196_s18, 32 }
  0x9f   :  { %p6919_p11 = scmp.ne.s32.totalorder %s196_s18, %s6918_s1  ;;  %p6923_p12 = scmp.lt.s32.totalorder %s196_s18, %s196_s18 }
  0xa0   :  { %p6924_p13 = scmp.lt.s32.totalorder %s6922_s2, %s6918_s1 }
  0xa2   :  { %p6925_p0 = por %p6924_p13, %p6923_p12 }
  0xa4   :  { %p6926_p1 = pnand %p6925_p0, %p6919_p11 }
  0xa6   :  { %6929 = shalt.err (!%p6926_p1)
}
  0xa7   :  { %198 = dma.hbm_to_vmem [thread:$0]  %s7598_s3, 16, %s196_s18, [#allocation8]  }
  0xa8   :  { %s7530_s7 = smov [#allocation10]   ;;  %s7531_s10 = smov [#allocation13]  }
  0xa9   :  { %s219_s17 = sshll.u32 %s7530_s7, 4  ;;  %s245_s11 = sshll.u32 %s7531_s10, 4  ;;  %s220_s17 = int_to_ptr.vmem [resolvable:$true] %s219_s17  ;;  %s246_s11 = int_to_ptr.vmem [resolvable:$true] %s245_s11 }
  0xaa   :  { %s6930_s15 = scalar_lea.hbm %s7618_s24, 16 }
  0xab   :  { %p6931_p2 = scmp.ne.s32.totalorder %s7618_s24, %s6930_s15  ;;  %p6934_p3 = scmp.lt.u32.totalorder %s6930_s15, %s7618_s24 }
  0xad   :  { %p6936_p4 = pnand %p6934_p3, %p6931_p2 }
  0xaf   :  { %6939 = shalt.err (!%p6936_p4)
}
  0xb0   :  { %s6940_s16 = scalar_lea.vmem %s220_s17, 16  ;;  %s6944_s0 = scalar_lea.vmem %s220_s17, 32 }
  0xb1   :  { %p6941_p5 = scmp.ne.s32.totalorder %s220_s17, %s6940_s16  ;;  %p6945_p6 = scmp.lt.s32.totalorder %s220_s17, %s220_s17 }
  0xb2   :  { %p6946_p7 = scmp.lt.s32.totalorder %s6944_s0, %s6940_s16 }
  0xb4   :  { %p6947_p8 = por %p6946_p7, %p6945_p6 }
  0xb6   :  { %p6948_p9 = pnand %p6947_p8, %p6941_p5 }
  0xb8   :  { %6951 = shalt.err (!%p6948_p9)
}
  0xb9   :  { %222 = dma.hbm_to_vmem [thread:$0]  %s7618_s24, 16, %s220_s17, [#allocation11]  }
  0xba   :  { %s6952_s3 = scalar_lea.hbm %s7643_s27, 16 }
  0xbb   :  { %p6953_p10 = scmp.ne.s32.totalorder %s7643_s27, %s6952_s3  ;;  %p6956_p11 = scmp.lt.u32.totalorder %s6952_s3, %s7643_s27 }
  0xbd   :  { %p6958_p12 = pnand %p6956_p11, %p6953_p10 }
  0xbf   :  { %6961 = shalt.err (!%p6958_p12)
}
  0xc0   :  { %s6962_s18 = scalar_lea.vmem %s246_s11, 16  ;;  %s6966_s22 = scalar_lea.vmem %s246_s11, 32 }
  0xc1   :  { %p6963_p13 = scmp.ne.s32.totalorder %s246_s11, %s6962_s18  ;;  %p6967_p0 = scmp.lt.s32.totalorder %s246_s11, %s246_s11 }
  0xc2   :  { %p6968_p1 = scmp.lt.s32.totalorder %s6966_s22, %s6962_s18 }
  0xc4   :  { %p6969_p2 = por %p6968_p1, %p6967_p0 }
  0xc6   :  { %p6970_p3 = pnand %p6969_p2, %p6963_p13 }
  0xc8   :  { %6973 = shalt.err (!%p6970_p3)
}
  0xc9   :  { %248 = dma.hbm_to_vmem [thread:$0]  %s7643_s27, 16, %s246_s11, [#allocation14]  }
  0xca   :  { %s7532_s23 = smov [#allocation16]   ;;  %s7533_s26 = smov [#allocation19]  }
  0xcb   :  { %s265_s24 = sshll.u32 %s7532_s23, 4  ;;  %s289_s28 = sshll.u32 %s7533_s26, 4  ;;  %s266_s24 = int_to_ptr.vmem [resolvable:$true] %s265_s24  ;;  %s290_s28 = int_to_ptr.vmem [resolvable:$true] %s289_s28 }
  0xcc   :  { %s6974_s1 = scalar_lea.hbm %s7653_s6, 64 }
  0xcd   :  { %p6975_p4 = scmp.ne.s32.totalorder %s7653_s6, %s6974_s1  ;;  %p6978_p5 = scmp.lt.u32.totalorder %s6974_s1, %s7653_s6 }
  0xcf   :  { %p6980_p6 = pnand %p6978_p5, %p6975_p4 }
  0xd1   :  { %6983 = shalt.err (!%p6980_p6)
}
  0xd2   :  { %s6984_s2 = scalar_lea.vmem %s266_s24, 64  ;;  %p6989_p8 = scmp.lt.s32.totalorder %s266_s24, %s266_s24 }
  0xd3   :  { %p6985_p7 = scmp.ne.s32.totalorder %s266_s24, %s6984_s2  ;;  %p6990_p9 = scmp.lt.s32.totalorder %s6984_s2, %s6984_s2 }
  0xd5   :  { %p6991_p10 = por %p6990_p9, %p6989_p8 }
  0xd7   :  { %p6992_p11 = pnand %p6991_p10, %p6985_p7 }
  0xd9   :  { %6995 = shalt.err (!%p6992_p11)
}
  0xda   :  { %268 = dma.hbm_to_vmem [thread:$0]  %s7653_s6, 64, %s266_s24, [#allocation17]  }
  0xdb   :  { %s6996_s27 = scalar_lea.hbm %s7673_s25, 16 }
  0xdc   :  { %p6997_p12 = scmp.ne.s32.totalorder %s7673_s25, %s6996_s27  ;;  %p7000_p13 = scmp.lt.u32.totalorder %s6996_s27, %s7673_s25 }
  0xde   :  { %p7002_p0 = pnand %p7000_p13, %p6997_p12 }
  0xe0   :  { %7005 = shalt.err (!%p7002_p0)
}
  0xe1   :  { %s7006_s7 = scalar_lea.vmem %s290_s28, 16  ;;  %s7010_s17 = scalar_lea.vmem %s290_s28, 32 }
  0xe2   :  { %p7007_p1 = scmp.ne.s32.totalorder %s290_s28, %s7006_s7  ;;  %p7011_p2 = scmp.lt.s32.totalorder %s290_s28, %s290_s28 }
  0xe3   :  { %p7012_p3 = scmp.lt.s32.totalorder %s7010_s17, %s7006_s7 }
  0xe5   :  { %p7013_p4 = por %p7012_p3, %p7011_p2 }
  0xe7   :  { %p7014_p5 = pnand %p7013_p4, %p7007_p1 }
  0xe9   :  { %7017 = shalt.err (!%p7014_p5)
}
  0xea   :  { %292 = dma.hbm_to_vmem [thread:$0]  %s7673_s25, 16, %s290_s28, [#allocation20]  }
  0xeb   :  { %s7534_s10 = smov [#allocation22]   ;;  %s7535_s11 = smov [#allocation25]  }
  0xec   :  { %s309_s6 = sshll.u32 %s7534_s10, 4  ;;  %s361_s15 = sshll.u32 %s7535_s11, 4  ;;  %s310_s6 = int_to_ptr.vmem [resolvable:$true] %s309_s6  ;;  %s362_s15 = int_to_ptr.vmem [resolvable:$true] %s361_s15 }
  0xed   :  { %s7018_s16 = scalar_lea.hbm %s7683_s20, 16 }
  0xee   :  { %p7019_p6 = scmp.ne.s32.totalorder %s7683_s20, %s7018_s16  ;;  %p7022_p7 = scmp.lt.u32.totalorder %s7018_s16, %s7683_s20 }
  0xf0   :  { %p7024_p8 = pnand %p7022_p7, %p7019_p6 }
  0xf2   :  { %7027 = shalt.err (!%p7024_p8)
}
  0xf3   :  { %s7028_s0 = scalar_lea.vmem %s310_s6, 16  ;;  %s7032_s3 = scalar_lea.vmem %s310_s6, 32 }
  0xf4   :  { %p7029_p9 = scmp.ne.s32.totalorder %s310_s6, %s7028_s0  ;;  %p7033_p10 = scmp.lt.s32.totalorder %s310_s6, %s310_s6 }
  0xf5   :  { %p7034_p11 = scmp.lt.s32.totalorder %s7032_s3, %s7028_s0 }
  0xf7   :  { %p7035_p12 = por %p7034_p11, %p7033_p10 }
  0xf9   :  { %p7036_p13 = pnand %p7035_p12, %p7029_p9 }
  0xfb   :  { %7039 = shalt.err (!%p7036_p13)
}
  0xfc   :  { %312 = dma.hbm_to_vmem [thread:$0]  %s7683_s20, 16, %s310_s6, [#allocation23]  }
  0xfd   :  { %s7040_s25 = scalar_lea.hbm %s7773_s8, 16 }
  0xfe   :  { %p7041_p0 = scmp.ne.s32.totalorder %s7773_s8, %s7040_s25  ;;  %p7044_p1 = scmp.lt.u32.totalorder %s7040_s25, %s7773_s8 }
 0x100   :  { %p7046_p2 = pnand %p7044_p1, %p7041_p0 }
 0x102   :  { %7049 = shalt.err (!%p7046_p2)
}
 0x103   :  { %s7050_s18 = scalar_lea.vmem %s362_s15, 16  ;;  %s7054_s22 = scalar_lea.vmem %s362_s15, 32 }
 0x104   :  { %p7051_p3 = scmp.ne.s32.totalorder %s362_s15, %s7050_s18  ;;  %p7055_p4 = scmp.lt.s32.totalorder %s362_s15, %s362_s15 }
 0x105   :  { %p7056_p5 = scmp.lt.s32.totalorder %s7054_s22, %s7050_s18 }
 0x107   :  { %p7057_p6 = por %p7056_p5, %p7055_p4 }
 0x109   :  { %p7058_p7 = pnand %p7057_p6, %p7051_p3 }
 0x10b   :  { %7061 = shalt.err (!%p7058_p7)
}
 0x10c   :  { %364 = dma.hbm_to_vmem [thread:$0]  %s7773_s8, 16, %s362_s15, [#allocation26]  }
 0x10d   :  { %s7536_s23 = smov [#allocation28]   ;;  %s7537_s24 = smov [#allocation31]  }
 0x10e   :  { %s385_s20 = sshll.u32 %s7536_s23, 4  ;;  %s405_s26 = sshll.u32 %s7537_s24, 4  ;;  %s386_s20 = int_to_ptr.vmem [resolvable:$true] %s385_s20  ;;  %s406_s26 = int_to_ptr.vmem [resolvable:$true] %s405_s26 }
 0x10f   :  { %s7062_s28 = scalar_lea.hbm %s7793_s21, 16 }
 0x110   :  { %p7063_p8 = scmp.ne.s32.totalorder %s7793_s21, %s7062_s28  ;;  %p7066_p9 = scmp.lt.u32.totalorder %s7062_s28, %s7793_s21 }
 0x112   :  { %p7068_p10 = pnand %p7066_p9, %p7063_p8 }
 0x114   :  { %7071 = shalt.err (!%p7068_p10)
}
 0x115   :  { %s7072_s1 = scalar_lea.vmem %s386_s20, 16  ;;  %s7076_s2 = scalar_lea.vmem %s386_s20, 32 }
 0x116   :  { %p7073_p11 = scmp.ne.s32.totalorder %s386_s20, %s7072_s1  ;;  %p7077_p12 = scmp.lt.s32.totalorder %s386_s20, %s386_s20 }
 0x117   :  { %p7078_p13 = scmp.lt.s32.totalorder %s7076_s2, %s7072_s1 }
 0x119   :  { %p7079_p0 = por %p7078_p13, %p7077_p12 }
 0x11b   :  { %p7080_p1 = pnand %p7079_p0, %p7073_p11 }
 0x11d   :  { %7083 = shalt.err (!%p7080_p1)
}
 0x11e   :  { %388 = dma.hbm_to_vmem [thread:$0]  %s7793_s21, 16, %s386_s20, [#allocation29]  }
 0x11f   :  { %s7084_s8 = scalar_lea.hbm %s7803_s5, 16 }
 0x120   :  { %p7085_p2 = scmp.ne.s32.totalorder %s7803_s5, %s7084_s8  ;;  %p7088_p3 = scmp.lt.u32.totalorder %s7084_s8, %s7803_s5 }
 0x122   :  { %p7090_p4 = pnand %p7088_p3, %p7085_p2 }
 0x124   :  { %7093 = shalt.err (!%p7090_p4)
}
 0x125   :  { %s7094_s27 = scalar_lea.vmem %s406_s26, 16  ;;  %s7098_s7 = scalar_lea.vmem %s406_s26, 32 }
 0x126   :  { %p7095_p5 = scmp.ne.s32.totalorder %s406_s26, %s7094_s27  ;;  %p7099_p6 = scmp.lt.s32.totalorder %s406_s26, %s406_s26 }
 0x127   :  { %p7100_p7 = scmp.lt.s32.totalorder %s7098_s7, %s7094_s27 }
 0x129   :  { %p7101_p8 = por %p7100_p7, %p7099_p6 }
 0x12b   :  { %p7102_p9 = pnand %p7101_p8, %p7095_p5 }
 0x12d   :  { %7105 = shalt.err (!%p7102_p9)
}
 0x12e   :  { %408 = dma.hbm_to_vmem [thread:$0]  %s7803_s5, 16, %s406_s26, [#allocation32]  }
 0x12f   :  { %s7538_s17 = smov [#allocation34]   ;;  %s7539_s10 = smov [#allocation37]  }
 0x130   :  { %s437_s21 = sshll.u32 %s7538_s17, 4  ;;  %s457_s6 = sshll.u32 %s7539_s10, 4  ;;  %s438_s21 = int_to_ptr.vmem [resolvable:$true] %s437_s21  ;;  %s458_s6 = int_to_ptr.vmem [resolvable:$true] %s457_s6 }
 0x131   :  { %s7106_s11 = scalar_lea.hbm %s7843_s4, 16 }
 0x132   :  { %p7107_p10 = scmp.ne.s32.totalorder %s7843_s4, %s7106_s11  ;;  %p7110_p11 = scmp.lt.u32.totalorder %s7106_s11, %s7843_s4 }
 0x134   :  { %p7112_p12 = pnand %p7110_p11, %p7107_p10 }
 0x136   :  { %7115 = shalt.err (!%p7112_p12)
}
 0x137   :  { %s7116_s15 = scalar_lea.vmem %s438_s21, 16  ;;  %s7120_s16 = scalar_lea.vmem %s438_s21, 32 }
 0x138   :  { %p7117_p13 = scmp.ne.s32.totalorder %s438_s21, %s7116_s15  ;;  %p7121_p0 = scmp.lt.s32.totalorder %s438_s21, %s438_s21 }
 0x139   :  { %p7122_p1 = scmp.lt.s32.totalorder %s7120_s16, %s7116_s15 }
 0x13b   :  { %p7123_p2 = por %p7122_p1, %p7121_p0 }
 0x13d   :  { %p7124_p3 = pnand %p7123_p2, %p7117_p13 }
 0x13f   :  { %7127 = shalt.err (!%p7124_p3)
}
 0x140   :  { %440 = dma.hbm_to_vmem [thread:$0]  %s7843_s4, 16, %s438_s21, [#allocation35]  }
 0x141   :  { %s7128_s5 = scalar_lea.hbm %s7853_s14, 16 }
 0x142   :  { %p7129_p4 = scmp.ne.s32.totalorder %s7853_s14, %s7128_s5  ;;  %p7132_p5 = scmp.lt.u32.totalorder %s7128_s5, %s7853_s14 }
 0x144   :  { %p7134_p6 = pnand %p7132_p5, %p7129_p4 }
 0x146   :  { %7137 = shalt.err (!%p7134_p6)
}
 0x147   :  { %s7138_s0 = scalar_lea.vmem %s458_s6, 16  ;;  %s7142_s3 = scalar_lea.vmem %s458_s6, 32 }
 0x148   :  { %p7139_p7 = scmp.ne.s32.totalorder %s458_s6, %s7138_s0  ;;  %p7143_p8 = scmp.lt.s32.totalorder %s458_s6, %s458_s6 }
 0x149   :  { %p7144_p9 = scmp.lt.s32.totalorder %s7142_s3, %s7138_s0 }
 0x14b   :  { %p7145_p10 = por %p7144_p9, %p7143_p8 }
 0x14d   :  { %p7146_p11 = pnand %p7145_p10, %p7139_p7 }
 0x14f   :  { %7149 = shalt.err (!%p7146_p11)
}
 0x150   :  { %460 = dma.hbm_to_vmem [thread:$0]  %s7853_s14, 16, %s458_s6, [#allocation38]  }
 0x151   :  { %s7540_s25 = smov [#allocation2]   ;;  %s7541_s18 = smov [#allocation6]  }
 0x152   :  { %s161_s4 = sshll.u32 %s7540_s25, 4  ;;  %s185_s22 = sshll.u32 %s7541_s18, 4  ;;  %s162_s4 = int_to_ptr.vmem [resolvable:$true] %s161_s4  ;;  %s186_s22 = int_to_ptr.vmem [resolvable:$true] %s185_s22 }
 0x153   :  { %s7150_s23 = scalar_lea.hbm %s7573_s13, 16 }
 0x154   :  { %p7151_p12 = scmp.ne.s32.totalorder %s7573_s13, %s7150_s23  ;;  %p7154_p13 = scmp.lt.u32.totalorder %s7150_s23, %s7573_s13 }
 0x156   :  { %p7156_p0 = pnand %p7154_p13, %p7151_p12 }
 0x158   :  { %7159 = shalt.err (!%p7156_p0)
}
 0x159   :  { %s7160_s20 = scalar_lea.vmem %s162_s4, 16  ;;  %s7164_s24 = scalar_lea.vmem %s162_s4, 32 }
 0x15a   :  { %p7161_p1 = scmp.ne.s32.totalorder %s162_s4, %s7160_s20  ;;  %p7165_p2 = scmp.lt.s32.totalorder %s162_s4, %s162_s4 }
 0x15b   :  { %p7166_p3 = scmp.lt.s32.totalorder %s7164_s24, %s7160_s20 }
 0x15d   :  { %p7167_p4 = por %p7166_p3, %p7165_p2 }
 0x15f   :  { %p7168_p5 = pnand %p7167_p4, %p7161_p1 }
 0x161   :  { %7171 = shalt.err (!%p7168_p5)
}
 0x162   :  { %164 = dma.hbm_to_vmem [thread:$0]  %s7573_s13, 16, %s162_s4, [#allocation3]  }
 0x163   :  { %s7172_s14 = scalar_lea.hbm %s7593_s29, 16 }
 0x164   :  { %p7173_p6 = scmp.ne.s32.totalorder %s7593_s29, %s7172_s14  ;;  %p7176_p7 = scmp.lt.u32.totalorder %s7172_s14, %s7593_s29 }
 0x166   :  { %p7178_p8 = pnand %p7176_p7, %p7173_p6 }
 0x168   :  { %7181 = shalt.err (!%p7178_p8)
}
 0x169   :  { %s7182_s26 = scalar_lea.vmem %s186_s22, 16  ;;  %s7186_s28 = scalar_lea.vmem %s186_s22, 32 }
 0x16a   :  { %p7183_p9 = scmp.ne.s32.totalorder %s186_s22, %s7182_s26  ;;  %p7187_p10 = scmp.lt.s32.totalorder %s186_s22, %s186_s22 }
 0x16b   :  { %p7188_p11 = scmp.lt.s32.totalorder %s7186_s28, %s7182_s26 }
 0x16d   :  { %p7189_p12 = por %p7188_p11, %p7187_p10 }
 0x16f   :  { %p7190_p13 = pnand %p7189_p12, %p7183_p9 }
 0x171   :  { %7193 = shalt.err (!%p7190_p13)
}
 0x172   :  { %s9208_s1 = sld [smem:[#allocation59_spill]]  ;;  %s7542_s2 = smov [#allocation9]  }
 0x173   :  { %188 = dma.hbm_to_vmem [thread:$0]  %s7593_s29, 16, %s186_s22, [#allocation5]  }
 0x174   :  { %s209_s13 = sshll.u32 %s7542_s2, 4  ;;  %s7543_s8 = smov [#allocation12]   ;;  %s210_s13 = int_to_ptr.vmem [resolvable:$true] %s209_s13 }
 0x175   :  { %s233_s27 = sshll.u32 %s7543_s8, 4  ;;  %s234_s27 = int_to_ptr.vmem [resolvable:$true] %s233_s27 }
 0x178   :  { %s7194_s7 = scalar_lea.hbm %s9208_s1, 16 }
 0x179   :  { %p7195_p0 = scmp.ne.s32.totalorder %s9208_s1, %s7194_s7  ;;  %p7198_p1 = scmp.lt.u32.totalorder %s7194_s7, %s9208_s1 }
 0x17b   :  { %p7200_p2 = pnand %p7198_p1, %p7195_p0 }
 0x17d   :  { %7203 = shalt.err (!%p7200_p2)
}
 0x17e   :  { %s7204_s17 = scalar_lea.vmem %s210_s13, 16  ;;  %s7208_s21 = scalar_lea.vmem %s210_s13, 32 }
 0x17f   :  { %p7205_p3 = scmp.ne.s32.totalorder %s210_s13, %s7204_s17  ;;  %p7209_p4 = scmp.lt.s32.totalorder %s210_s13, %s210_s13 }
 0x180   :  { %p7210_p5 = scmp.lt.s32.totalorder %s7208_s21, %s7204_s17 }
 0x182   :  { %p7211_p6 = por %p7210_p5, %p7209_p4 }
 0x184   :  { %p7212_p7 = pnand %p7211_p6, %p7205_p3 }
 0x186   :  { %7215 = shalt.err (!%p7212_p7)
}
 0x187   :  { %s9209_s29 = sld [smem:[#allocation62_spill]] }
 0x188   :  { %212 = dma.hbm_to_vmem [thread:$0]  %s9208_s1, 16, %s210_s13, [#allocation8]  }
 0x18d   :  { %s7216_s10 = scalar_lea.hbm %s9209_s29, 16 }
 0x18e   :  { %p7217_p8 = scmp.ne.s32.totalorder %s9209_s29, %s7216_s10  ;;  %p7220_p9 = scmp.lt.u32.totalorder %s7216_s10, %s9209_s29 }
 0x190   :  { %p7222_p10 = pnand %p7220_p9, %p7217_p8 }
 0x192   :  { %7225 = shalt.err (!%p7222_p10)
}
 0x193   :  { %s7226_s6 = scalar_lea.vmem %s234_s27, 16  ;;  %s7230_s11 = scalar_lea.vmem %s234_s27, 32 }
 0x194   :  { %p7227_p11 = scmp.ne.s32.totalorder %s234_s27, %s7226_s6  ;;  %p7231_p12 = scmp.lt.s32.totalorder %s234_s27, %s234_s27 }
 0x195   :  { %p7232_p13 = scmp.lt.s32.totalorder %s7230_s11, %s7226_s6 }
 0x197   :  { %p7233_p0 = por %p7232_p13, %p7231_p12 }
 0x199   :  { %p7234_p1 = pnand %p7233_p0, %p7227_p11 }
 0x19b   :  { %7237 = shalt.err (!%p7234_p1)
}
 0x19c   :  { %s9210_s15 = sld [smem:[#allocation64_spill]]  ;;  %s7544_s16 = smov [#allocation15]  }
 0x19d   :  { %236 = dma.hbm_to_vmem [thread:$0]  %s9209_s29, 16, %s234_s27, [#allocation11]  }
 0x19e   :  { %s255_s5 = sshll.u32 %s7544_s16, 4  ;;  %s7545_s0 = smov [#allocation18]   ;;  %s256_s5 = int_to_ptr.vmem [resolvable:$true] %s255_s5 }
 0x19f   :  { %s277_s3 = sshll.u32 %s7545_s0, 4  ;;  %s278_s3 = int_to_ptr.vmem [resolvable:$true] %s277_s3 }
 0x1a2   :  { %s7238_s25 = scalar_lea.hbm %s9210_s15, 16 }
 0x1a3   :  { %p7239_p2 = scmp.ne.s32.totalorder %s9210_s15, %s7238_s25  ;;  %p7242_p3 = scmp.lt.u32.totalorder %s7238_s25, %s9210_s15 }
 0x1a5   :  { %p7244_p4 = pnand %p7242_p3, %p7239_p2 }
 0x1a7   :  { %7247 = shalt.err (!%p7244_p4)
}
 0x1a8   :  { %s7248_s4 = scalar_lea.vmem %s256_s5, 16  ;;  %s7252_s18 = scalar_lea.vmem %s256_s5, 32 }
 0x1a9   :  { %p7249_p5 = scmp.ne.s32.totalorder %s256_s5, %s7248_s4  ;;  %p7253_p6 = scmp.lt.s32.totalorder %s256_s5, %s256_s5 }
 0x1aa   :  { %p7254_p7 = scmp.lt.s32.totalorder %s7252_s18, %s7248_s4 }
 0x1ac   :  { %p7255_p8 = por %p7254_p7, %p7253_p6 }
 0x1ae   :  { %p7256_p9 = pnand %p7255_p8, %p7249_p5 }
 0x1b0   :  { %7259 = shalt.err (!%p7256_p9)
}
 0x1b1   :  { %s9211_s22 = sld [smem:[#allocation66_spill]] }
 0x1b2   :  { %258 = dma.hbm_to_vmem [thread:$0]  %s9210_s15, 16, %s256_s5, [#allocation14]  }
 0x1b7   :  { %s7260_s23 = scalar_lea.hbm %s9211_s22, 64 }
 0x1b8   :  { %p7261_p10 = scmp.ne.s32.totalorder %s9211_s22, %s7260_s23  ;;  %p7264_p11 = scmp.lt.u32.totalorder %s7260_s23, %s9211_s22 }
 0x1ba   :  { %p7266_p12 = pnand %p7264_p11, %p7261_p10 }
 0x1bc   :  { %7269 = shalt.err (!%p7266_p12)
}
 0x1bd   :  { %s7270_s20 = scalar_lea.vmem %s278_s3, 64  ;;  %p7275_p0 = scmp.lt.s32.totalorder %s278_s3, %s278_s3 }
 0x1be   :  { %p7271_p13 = scmp.ne.s32.totalorder %s278_s3, %s7270_s20  ;;  %p7276_p1 = scmp.lt.s32.totalorder %s7270_s20, %s7270_s20 }
 0x1c0   :  { %p7277_p2 = por %p7276_p1, %p7275_p0 }
 0x1c2   :  { %p7278_p3 = pnand %p7277_p2, %p7271_p13 }
 0x1c4   :  { %7281 = shalt.err (!%p7278_p3)
}
 0x1c5   :  { %s9212_s24 = sld [smem:[#allocation68_spill]]  ;;  %s7546_s14 = smov [#allocation21]  }
 0x1c6   :  { %280 = dma.hbm_to_vmem [thread:$0]  %s9211_s22, 64, %s278_s3, [#allocation17]  }
 0x1c7   :  { %s299_s26 = sshll.u32 %s7546_s14, 4  ;;  %s7547_s28 = smov [#allocation24]   ;;  %s300_s26 = int_to_ptr.vmem [resolvable:$true] %s299_s26 }
 0x1c8   :  { %s319_s1 = sshll.u32 %s7547_s28, 4  ;;  %s320_s1 = int_to_ptr.vmem [resolvable:$true] %s319_s1 }
 0x1cb   :  { %s7282_s2 = scalar_lea.hbm %s9212_s24, 16 }
 0x1cc   :  { %p7283_p4 = scmp.ne.s32.totalorder %s9212_s24, %s7282_s2  ;;  %p7286_p5 = scmp.lt.u32.totalorder %s7282_s2, %s9212_s24 }
 0x1ce   :  { %p7288_p6 = pnand %p7286_p5, %p7283_p4 }
 0x1d0   :  { %7291 = shalt.err (!%p7288_p6)
}
 0x1d1   :  { %s7292_s13 = scalar_lea.vmem %s300_s26, 16  ;;  %s7296_s8 = scalar_lea.vmem %s300_s26, 32 }
 0x1d2   :  { %p7293_p7 = scmp.ne.s32.totalorder %s300_s26, %s7292_s13  ;;  %p7297_p8 = scmp.lt.s32.totalorder %s300_s26, %s300_s26 }
 0x1d3   :  { %p7298_p9 = scmp.lt.s32.totalorder %s7296_s8, %s7292_s13 }
 0x1d5   :  { %p7299_p10 = por %p7298_p9, %p7297_p8 }
 0x1d7   :  { %p7300_p11 = pnand %p7299_p10, %p7293_p7 }
 0x1d9   :  { %7303 = shalt.err (!%p7300_p11)
}
 0x1da   :  { %s9213_s27 = sld [smem:[#allocation69_spill]] }
 0x1db   :  { %302 = dma.hbm_to_vmem [thread:$0]  %s9212_s24, 16, %s300_s26, [#allocation20]  }
 0x1e0   :  { %s7304_s7 = scalar_lea.hbm %s9213_s27, 16 }
 0x1e1   :  { %p7305_p12 = scmp.ne.s32.totalorder %s9213_s27, %s7304_s7  ;;  %p7308_p13 = scmp.lt.u32.totalorder %s7304_s7, %s9213_s27 }
 0x1e3   :  { %p7310_p0 = pnand %p7308_p13, %p7305_p12 }
 0x1e5   :  { %7313 = shalt.err (!%p7310_p0)
}
 0x1e6   :  { %s7314_s17 = scalar_lea.vmem %s320_s1, 16  ;;  %s7318_s21 = scalar_lea.vmem %s320_s1, 32 }
 0x1e7   :  { %p7315_p1 = scmp.ne.s32.totalorder %s320_s1, %s7314_s17  ;;  %p7319_p2 = scmp.lt.s32.totalorder %s320_s1, %s320_s1 }
 0x1e8   :  { %p7320_p3 = scmp.lt.s32.totalorder %s7318_s21, %s7314_s17 }
 0x1ea   :  { %p7321_p4 = por %p7320_p3, %p7319_p2 }
 0x1ec   :  { %p7322_p5 = pnand %p7321_p4, %p7315_p1 }
 0x1ee   :  { %7325 = shalt.err (!%p7322_p5)
}
 0x1ef   :  { %s9214_s29 = sld [smem:[#allocation86_spill]]  ;;  %s7548_s10 = smov [#allocation27]  }
 0x1f0   :  { %322 = dma.hbm_to_vmem [thread:$0]  %s9213_s27, 16, %s320_s1, [#allocation23]  }
 0x1f1   :  { %s371_s6 = sshll.u32 %s7548_s10, 4  ;;  %s7549_s11 = smov [#allocation30]   ;;  %s372_s6 = int_to_ptr.vmem [resolvable:$true] %s371_s6 }
 0x1f2   :  { %s395_s15 = sshll.u32 %s7549_s11, 4  ;;  %s396_s15 = int_to_ptr.vmem [resolvable:$true] %s395_s15 }
 0x1f5   :  { %s7326_s16 = scalar_lea.hbm %s9214_s29, 16 }
 0x1f6   :  { %p7327_p6 = scmp.ne.s32.totalorder %s9214_s29, %s7326_s16  ;;  %p7330_p7 = scmp.lt.u32.totalorder %s7326_s16, %s9214_s29 }
 0x1f8   :  { %p7332_p8 = pnand %p7330_p7, %p7327_p6 }
 0x1fa   :  { %7335 = shalt.err (!%p7332_p8)
}
 0x1fb   :  { %s7336_s5 = scalar_lea.vmem %s372_s6, 16  ;;  %s7340_s0 = scalar_lea.vmem %s372_s6, 32 }
 0x1fc   :  { %p7337_p9 = scmp.ne.s32.totalorder %s372_s6, %s7336_s5  ;;  %p7341_p10 = scmp.lt.s32.totalorder %s372_s6, %s372_s6 }
 0x1fd   :  { %p7342_p11 = scmp.lt.s32.totalorder %s7340_s0, %s7336_s5 }
 0x1ff   :  { %p7343_p12 = por %p7342_p11, %p7341_p10 }
 0x201   :  { %p7344_p13 = pnand %p7343_p12, %p7337_p9 }
 0x203   :  { %7347 = shalt.err (!%p7344_p13)
}
 0x204   :  { %s9215_s3 = sld [smem:[#allocation89_spill]] }
 0x205   :  { %374 = dma.hbm_to_vmem [thread:$0]  %s9214_s29, 16, %s372_s6, [#allocation26]  }
 0x20a   :  { %s7348_s25 = scalar_lea.hbm %s9215_s3, 16 }
 0x20b   :  { %p7349_p0 = scmp.ne.s32.totalorder %s9215_s3, %s7348_s25  ;;  %p7352_p1 = scmp.lt.u32.totalorder %s7348_s25, %s9215_s3 }
 0x20d   :  { %p7354_p2 = pnand %p7352_p1, %p7349_p0 }
 0x20f   :  { %7357 = shalt.err (!%p7354_p2)
}
 0x210   :  { %s7358_s4 = scalar_lea.vmem %s396_s15, 16  ;;  %s7362_s18 = scalar_lea.vmem %s396_s15, 32 }
 0x211   :  { %p7359_p3 = scmp.ne.s32.totalorder %s396_s15, %s7358_s4  ;;  %p7363_p4 = scmp.lt.s32.totalorder %s396_s15, %s396_s15 }
 0x212   :  { %p7364_p5 = scmp.lt.s32.totalorder %s7362_s18, %s7358_s4 }
 0x214   :  { %p7365_p6 = por %p7364_p5, %p7363_p4 }
 0x216   :  { %p7366_p7 = pnand %p7365_p6, %p7359_p3 }
 0x218   :  { %7369 = shalt.err (!%p7366_p7)
}
 0x219   :  { %s9216_s22 = sld [smem:[#allocation90_spill]]  ;;  %s7550_s23 = smov [#allocation33]  }
 0x21a   :  { %398 = dma.hbm_to_vmem [thread:$0]  %s9215_s3, 16, %s396_s15, [#allocation29]  }
 0x21b   :  { %s415_s20 = sshll.u32 %s7550_s23, 4  ;;  %s7551_s24 = smov [#allocation36]   ;;  %s416_s20 = int_to_ptr.vmem [resolvable:$true] %s415_s20 }
 0x21c   :  { %s447_s14 = sshll.u32 %s7551_s24, 4  ;;  %s448_s14 = int_to_ptr.vmem [resolvable:$true] %s447_s14 }
 0x21f   :  { %s7370_s26 = scalar_lea.hbm %s9216_s22, 16 }
 0x220   :  { %p7371_p8 = scmp.ne.s32.totalorder %s9216_s22, %s7370_s26  ;;  %p7374_p9 = scmp.lt.u32.totalorder %s7370_s26, %s9216_s22 }
 0x222   :  { %p7376_p10 = pnand %p7374_p9, %p7371_p8 }
 0x224   :  { %7379 = shalt.err (!%p7376_p10)
}
 0x225   :  { %s7380_s28 = scalar_lea.vmem %s416_s20, 16  ;;  %s7384_s1 = scalar_lea.vmem %s416_s20, 32 }
 0x226   :  { %p7381_p11 = scmp.ne.s32.totalorder %s416_s20, %s7380_s28  ;;  %p7385_p12 = scmp.lt.s32.totalorder %s416_s20, %s416_s20 }
 0x227   :  { %p7386_p13 = scmp.lt.s32.totalorder %s7384_s1, %s7380_s28 }
 0x229   :  { %p7387_p0 = por %p7386_p13, %p7385_p12 }
 0x22b   :  { %p7388_p1 = pnand %p7387_p0, %p7381_p11 }
 0x22d   :  { %7391 = shalt.err (!%p7388_p1)
}
 0x22e   :  { %s9217_s2 = sld [smem:[#allocation97_spill]] }
 0x22f   :  { %418 = dma.hbm_to_vmem [thread:$0]  %s9216_s22, 16, %s416_s20, [#allocation32]  }
 0x234   :  { %s7392_s13 = scalar_lea.hbm %s9217_s2, 16 }
 0x235   :  { %p7393_p2 = scmp.ne.s32.totalorder %s9217_s2, %s7392_s13  ;;  %p7396_p3 = scmp.lt.u32.totalorder %s7392_s13, %s9217_s2 }
 0x237   :  { %p7398_p4 = pnand %p7396_p3, %p7393_p2 }
 0x239   :  { %7401 = shalt.err (!%p7398_p4)
}
 0x23a   :  { %s7402_s8 = scalar_lea.vmem %s448_s14, 16  ;;  %s7406_s27 = scalar_lea.vmem %s448_s14, 32 }
 0x23b   :  { %p7403_p5 = scmp.ne.s32.totalorder %s448_s14, %s7402_s8  ;;  %p7407_p6 = scmp.lt.s32.totalorder %s448_s14, %s448_s14 }
 0x23c   :  { %p7408_p7 = scmp.lt.s32.totalorder %s7406_s27, %s7402_s8 }
 0x23e   :  { %p7409_p8 = por %p7408_p7, %p7407_p6 }
 0x240   :  { %p7410_p9 = pnand %p7409_p8, %p7403_p5 }
 0x242   :  { %7413 = shalt.err (!%p7410_p9)
}
 0x243   :  { %s9218_s7 = sld [smem:[#allocation98_spill]]  ;;  %s7552_s17 = smov [#allocation39]  }
 0x244   :  { %450 = dma.hbm_to_vmem [thread:$0]  %s9217_s2, 16, %s448_s14, [#allocation35]  }
 0x245   :  { %s467_s21 = sshll.u32 %s7552_s17, 4  ;;  %s468_s21 = int_to_ptr.vmem [resolvable:$true] %s467_s21 }
 0x249   :  { %s7414_s29 = scalar_lea.hbm %s9218_s7, 16 }
 0x24a   :  { %p7415_p10 = scmp.ne.s32.totalorder %s9218_s7, %s7414_s29  ;;  %p7418_p11 = scmp.lt.u32.totalorder %s7414_s29, %s9218_s7 }
 0x24c   :  { %p7420_p12 = pnand %p7418_p11, %p7415_p10 }
 0x24e   :  { %7423 = shalt.err (!%p7420_p12)
}
 0x24f   :  { %s7424_s10 = scalar_lea.vmem %s468_s21, 16  ;;  %s7428_s6 = scalar_lea.vmem %s468_s21, 32 }
 0x250   :  { %p7425_p13 = scmp.ne.s32.totalorder %s468_s21, %s7424_s10  ;;  %p7429_p0 = scmp.lt.s32.totalorder %s468_s21, %s468_s21 }
 0x251   :  { %p7430_p1 = scmp.lt.s32.totalorder %s7428_s6, %s7424_s10 }
 0x253   :  { %p7431_p2 = por %p7430_p1, %p7429_p0 }
 0x255   :  { %p7432_p3 = pnand %p7431_p2, %p7425_p13 }
 0x257   :  { %7435 = shalt.err (!%p7432_p3)
}
 0x258   :  { %470 = dma.hbm_to_vmem [thread:$0]  %s9218_s7, 16, %s468_s21, [#allocation38]  }
 0x259   :  { %7436 = dma.done.wait [#allocation3], 16  }
 0x25a   :  { %7437 = vsyncadd [#allocation3], 4294967280 }
 0x25b   :  { %7438 = dma.done.wait [#allocation5], 32  }
 0x25c   :  { %7439 = vsyncadd [#allocation5], 4294967264 }
 0x25d   :  { %7440 = dma.done.wait [#allocation8], 32  }
 0x25e   :  { %7441 = vsyncadd [#allocation8], 4294967264 }
 0x25f   :  { %7442 = dma.done.wait [#allocation11], 32  }
 0x260   :  { %7443 = vsyncadd [#allocation11], 4294967264 }
 0x261   :  { %7444 = dma.done.wait [#allocation14], 32  }
 0x262   :  { %7445 = vsyncadd [#allocation14], 4294967264 }
 0x263   :  { %7446 = dma.done.wait [#allocation17], 128  }
 0x264   :  { %7447 = vsyncadd [#allocation17], 4294967168 }
 0x265   :  { %7448 = dma.done.wait [#allocation20], 32  }
 0x266   :  { %7449 = vsyncadd [#allocation20], 4294967264 }
 0x267   :  { %7450 = dma.done.wait [#allocation23], 32  }
 0x268   :  { %7451 = vsyncadd [#allocation23], 4294967264 }
 0x269   :  { %7452 = dma.done.wait [#allocation26], 32  }
 0x26a   :  { %7453 = vsyncadd [#allocation26], 4294967264 }
 0x26b   :  { %7454 = dma.done.wait [#allocation29], 32  }
 0x26c   :  { %7455 = vsyncadd [#allocation29], 4294967264 }
 0x26d   :  { %7456 = dma.done.wait [#allocation32], 32  }
 0x26e   :  { %7457 = vsyncadd [#allocation32], 4294967264 }
 0x26f   :  { %7458 = dma.done.wait [#allocation35], 32  }
 0x270   :  { %7459 = vsyncadd [#allocation35], 4294967264 }
 0x271   :  { %7460 = dma.done.wait [#allocation38], 32  }
 0x272   :  { %7461 = vsyncadd [#allocation38], 4294967264  ;;  %s9219_s11 = sld [smem:[#allocation87_spill]]  ;;  %s9220_s15 = sld [smem:[#allocation53_spill]]  ;;  %v7553_v0 = vmov 0.0   ;;  %vm7554_vm0 = vmmov 0  }
 0x273   :  { %5687 = vmatprep.subr.bf16.mxu0 %v7553_v0  ;;  %s9221_s16 = sld [smem:[#allocation88_spill]]  ;;  %5691 = vmatprep.mubr.msk.bf16.mxu0 %vm7554_vm0, %v7553_v0  ;;  %vm584_vm1 = vcmask 261120   ;;  %s9222_s5 = sld [smem:[#allocation54_spill]]  ;;  %v778_v13 = vld [vmem:[#allocation16] sm:$0xf]  ;;  %vm790_vm2 = vcmask 1043456  }
 0x274   :  { %5695 = vmatprep.subr.bf16.mxu1 %v7553_v0  ;;  %5711 = vmatprep.mubr.msk.bf16.mxu1 %vm7554_vm0, %v7553_v0  ;;  %v792_v15 = vsel %vm790_vm2, %v778_v13, 0  ;;  %vm786_vm3 = vcmask 64512   ;;  %v5120_v17 = vld [vmem:[#allocation25] ss:$0 sm:$0xff]  ;;  %s9223_s0 = sld [smem:[#allocation67_spill]]  ;;  %s9224_s3 = sld [smem:[#allocation73_spill]] }
 0x275   :  { %v1004_v42 = vld [vmem:[#allocation18] sm:$0xf]  ;;  %v5124_v52 = vld [vmem:[#allocation27] ss:$0 sm:$0xff]  ;;  %s9225_s25 = sld [smem:[#allocation65_spill]]  ;;  %s9226_s4 = sld [smem:[#allocation70_spill]] }
 0x276   :  { %v8042_v43 = vsel %vm790_vm2, %v1004_v42, 0  ;;  %s9227_s18 = sld [smem:[#allocation72_spill]]  ;;  %s9228_s22 = sld [smem:[#allocation63_spill]]  ;;  %vm1412_vm12 = vcmask 523264  }
 0x277   :  { %s9229_s23 = sld [smem:[#allocation71_spill]]  ;;  %s9230_s20 = sld [smem:[#allocation81_spill]] }
 0x278   :  { %v6584_v1 = vld [vmem:[%s9219_s11] sm:$0xff]   ;;  %v6585_v2 = vld [vmem:[%s9219_s11 + $0x8] sm:$0xff]   ;;  %s9231_s24 = sld [smem:[#allocation78_spill]]  ;;  %s9232_s14 = sld [smem:[#allocation80_spill]] }
 0x279   :  { %5688 = vmatpush3.bf16.msra.mxu0 %v6584_v1  ;;  %v559_v3 = vld [vmem:[%s9220_s15] sm:$0x3]  ;;  %v6587_v6 = vld [vmem:[%s9221_s16 + $0x8] sm:$0xff]   ;;  %v6588_v7 = vld [vmem:[%s9221_s16 + $0x10] sm:$0xff]   ;;  %s9233_s26 = sld [smem:[#allocation79_spill]]  ;;  %s9235_s1 = sld [smem:[#allocation74_spill]] }
 0x27a   :  { %5689 = vmatprep.subr.bf16.mxu0 %v7553_v0  ;;  %v560_v4 = vpack.c.bf16 %v559_v3, %v559_v3  ;;  %v6586_v5 = vld [vmem:[%s9221_s16] sm:$0xff]   ;;  %v6589_v8 = vld [vmem:[%s9221_s16 + $0x18] sm:$0xff]   ;;  %v6591_v10 = vld [vmem:[%s9221_s16 + $0x28] sm:$0xff]   ;;  %s9234_s28 = sld [smem:[#allocation55_spill]]  ;;  %s9236_s2 = sld [smem:[#allocation77_spill]] }
 0x27b   :  { %5696 = vmatpush3.bf16.msra.mxu1 %v6586_v5  ;;  %v6590_v9 = vld [vmem:[%s9221_s16 + $0x20] sm:$0xff]   ;;  %v6592_v11 = vld [vmem:[%s9221_s16 + $0x30] sm:$0xff]   ;;  %v6593_v12 = vld [vmem:[%s9221_s16 + $0x38] sm:$0xff]   ;;  %s9237_s13 = sld [smem:[#allocation56_spill]]  ;;  %s9238_s8 = sld [smem:[#allocation75_spill]] }
 0x27c   :  { %5697 = vmatprep.subr.bf16.mxu1 %v7553_v0  ;;  %v774_v14 = vld [vmem:[%s9222_s5] sm:$0x3]  ;;  %v5133_v40 = vld [vmem:[%s9222_s5 + $0x2] sm:$0x3]  ;;  %v6596_v46 = vld [vmem:[%s9223_s0 + $0x8] sm:$0xff]   ;;  %s9239_s27 = sld [smem:[#allocation76_spill]] }
 0x27d   :  { %5690 = vmatpush3.bf16.msra.mxu0 %v6585_v2  ;;  %v8027_v16 = vpack.c.bf16 %v774_v14, %v774_v14  ;;  %v1057_v41 = vpack.c.bf16 %v5133_v40, %v5133_v40  ;;  %v6594_v44 = vld [vmem:[%s9223_s0] sm:$0xff]   ;;  %v6597_v47 = vld [vmem:[%s9224_s3 + $0x8] sm:$0xff]   ;;  %s9240_s7 = sld [smem:[#allocation57_spill]]  ;;  %s9241_s17 = sld [smem:[#allocation58_spill]] }
 0x27e   :  { %5715 = vmatprep.subr.bf16.mxu0 %v7553_v0  ;;  %v6595_v45 = vld [vmem:[%s9224_s3] sm:$0xff]   ;;  %s9242_s21 = sld [smem:[#allocation92_spill]]  ;;  %s9243_s29 = sld [smem:[#allocation91_spill]] }
 0x27f   :  { %5698 = vmatpush3.bf16.msra.mxu1 %v6587_v6  ;;  %s9244_s10 = sld [smem:[#allocation95_spill]]  ;;  %s9245_s6 = sld [smem:[#allocation96_spill]] }
 0x280   :  { %5692 = vmatmul.mubr.msk.bf16.vlgmr.msra.gmra.mrb[0].mxu0 %vm584_vm1, %v560_v4  ;;  %5699 = vmatprep.subr.bf16.mxu1 %v7553_v0  ;;  %s9246_s11 = sld [smem:[#allocation93_spill]]  ;;  %s9247_s15 = sld [smem:[#allocation94_spill]] }
 0x281   :  { %5717 = vmatprep.mubr.msk.bf16.mxu0 %vm7554_vm0, %v7553_v0  ;;  %5716 = vmatpush3.bf16.msra.mxu0 %v792_v15  ;;  %s9248_s16 = sld [smem:[#allocation60_spill]]  ;;  %s9249_s5 = sld [smem:[#allocation61_spill]] }
 0x282   :  { %5721 = vmatprep.subr.bf16.mxu0 %v7553_v0  ;;  %s9252_s0 = sld [smem:[#allocation101_spill]] }
 0x283   :  { %5700 = vmatpush3.bf16.msra.mxu1 %v6588_v7  ;;  %s9254_s3 = sld [smem:[#allocation85_spill]] }
 0x284   :  { %5701 = vmatprep.subr.bf16.mxu1 %v7553_v0 }
 0x287   :  { %5702 = vmatpush3.bf16.msra.mxu1 %v6589_v8 }
 0x288   :  { %5703 = vmatprep.subr.bf16.mxu1 %v7553_v0  ;;  %5718 = vmatmul.mubr.msk.bf16.vlgmr.msra.gmra.mrb[4].mxu0 %vm786_vm3, %v8027_v16 }
 0x289   :  { %5725 = vmatprep.mubr.msk.bf16.mxu0 %vm7554_vm0, %v7553_v0  ;;  %5722 = vmatpush3.bf16.msra.mxu0 %v6594_v44 }
 0x28a   :  { %5723 = vmatprep.subr.bf16.mxu0 %v7553_v0 }
 0x28b   :  { %5704 = vmatpush3.bf16.msra.mxu1 %v6590_v9 }
 0x28c   :  { %5705 = vmatprep.subr.bf16.mxu1 %v7553_v0 }
 0x28d   :  { %5724 = vmatpush3.bf16.msra.mxu0 %v6596_v46 }
 0x28e   :  { %5729 = vmatprep.subr.bf16.mxu0 %v7553_v0 }
 0x28f   :  { %5706 = vmatpush3.bf16.msra.mxu1 %v6591_v10 }
 0x290   :  { %5707 = vmatprep.subr.bf16.mxu1 %v7553_v0 }
 0x293   :  { %5708 = vmatpush3.bf16.msra.mxu1 %v6592_v11 }
 0x294   :  { %5709 = vmatprep.subr.bf16.mxu1 %v7553_v0 }
 0x297   :  { %5710 = vmatpush3.bf16.msra.mxu1 %v6593_v12 }
 0x298   :  { %5743 = vmatprep.subr.bf16.mxu1 %v7553_v0 }
 0x353   :  { %v622_v18 = vpop.f32.mrb[0].mxu0 }
 0x354   :  { %v623_v19 = vadd.f32 %v5120_v17, %v622_v18  ;;  %v5693_v20 = vpop.f32.mrb[1].mxu0 }
 0x355   :  { %v625_v21 = vpop.f32.mrb[2].mxu0 }
 0x356   :  { %v629_v22 = vand.u32 2147483647, %v623_v19  ;;  %v5694_v23 = vpop.f32.mrb[3].mxu0  ;;  %v628_v34 = vmax.f32 %v623_v19, 0.0 }
 0x357   :  { %v5134_v23 = vld [vmem:[#allocation12] ss:$0 sm:$0xff] }
 0x358   :  { %v630_v24 = vsub.f32 0.0, %v629_v22  ;;  %v8075_v22 = vld [vmem:[%s9225_s25 + $0x8] sm:$0xff]  }
 0x35a   :  { %v631_v25 = vmul.f32 1.442695, %v630_v24 }
 0x35b   :  { %v828_v48 = vpop.f32.mrb[4].mxu0 }
 0x35c   :  { %6736 = vpow2.f32 %v631_v25  ;;  %v5719_v49 = vpop.f32.mrb[5].mxu0  ;;  %v829_v24 = vadd.f32 %v5134_v23, %v828_v48 }
 0x35d   :  { %v831_v50 = vpop.f32.mrb[6].mxu0 }
 0x35e   :  { %v5720_v51 = vpop.f32.mrb[7].mxu0  ;;  %v834_v49 = vmax.f32 %v829_v24, 0.0 }
 0x366   :  { %v6737_v26 = vpop.eup %6736 }
 0x367   :  { %v633_v27 = vadd.f32 1.0, %v6737_v26  ;;  %v636_v28 = vmul.f32 -0.5, %v6737_v26  ;;  %v639_v30 = vand.u32 2147483647, %v6737_v26 }
 0x369   :  { %6738 = vlog2.f32 %v633_v27  ;;  %v637_v29 = vadd.f32 1.0, %v636_v28  ;;  %vm640_vm4 = vcmp.lt.f32.partialorder %v639_v30, 0.0004427343 }
 0x36b   :  { %v638_v33 = vmul.f32 %v6737_v26, %v637_v29  ;;  %v835_v26 = vand.u32 2147483647, %v829_v24 }
 0x36d   :  { %v836_v28 = vsub.f32 0.0, %v835_v26 }
 0x36f   :  { %v837_v30 = vmul.f32 1.442695, %v836_v28 }
 0x373   :  { %v6739_v31 = vpop.eup %6738 }
 0x374   :  { %v635_v32 = vmul.f32 0.6931472, %v6739_v31 }
 0x376   :  { %v641_v35 = vsel %vm640_vm4, %v638_v33, %v635_v32 }
 0x377   :  { %v642_v36 = vadd.f32 %v641_v35, %v628_v34 }
 0x379   :  { %6740 = vtanh.f32 %v642_v36 }
 0x383   :  { %v6741_v37 = vpop.eup %6740 }
 0x384   :  { %v644_v38 = vmul.f32 %v6741_v37, %v623_v19 }
 0x386   :  { %v645_v39 = vpack.c.bf16 %v644_v38, %v644_v38 }
 0x388   :  { %5712 = vmatmul.mubr.bf16.vlgmr.msra.gmra.mrb[0].mxu1 %v645_v39 }
 0x389   :  { %5744 = vmatpush3.bf16.msra.mxu1 %v792_v15  ;;  %5745 = vmatprep.mubr.msk.bf16.mxu1 %vm7554_vm0, %v7553_v0  ;;  %v8058_v15 = vld [vmem:[%s9225_s25] sm:$0xff]   ;;  %s9255_s25 = sld [smem:[#allocation82_spill]] }
 0x38a   :  { %5757 = vmatprep.subr.bf16.mxu1 %v7553_v0 }
 0x390   :  { %5746 = vmatmul.mubr.msk.bf16.vlgmr.msra.gmra.mrb[4].mxu1 %vm786_vm3, %v1057_v41 }
 0x391   :  { %5759 = vmatprep.mubr.msk.bf16.mxu1 %vm7554_vm0, %v7553_v0  ;;  %5758 = vmatpush3.bf16.msra.mxu1 %v8042_v43 }
 0x392   :  { %5771 = vmatprep.subr.bf16.mxu1 %v7553_v0 }
 0x398   :  { %5760 = vmatmul.mubr.msk.bf16.vlgmr.msra.gmra.mrb[8].mxu1 %vm786_vm3, %v1057_v41 }
 0x399   :  { %5772 = vmatpush3.bf16.msra.mxu1 %v6595_v45  ;;  %5775 = vmatprep.mubr.msk.bf16.mxu1 %vm7554_vm0, %v7553_v0 }
 0x39a   :  { %5773 = vmatprep.subr.bf16.mxu1 %v7553_v0 }
 0x39d   :  { %5774 = vmatpush3.bf16.msra.mxu1 %v6597_v47 }
 0x39e   :  { %5791 = vmatprep.subr.bf16.mxu1 %v7553_v0 }
 0x45b   :  { %v751_v53 = vpop.f32.mrb[0].mxu1 }
 0x45c   :  { %v752_v54 = vadd.f32 %v5124_v52, %v751_v53  ;;  %v5713_v55 = vpop.f32.mrb[1].mxu1 }
 0x45d   :  { %v754_v56 = vpop.f32.mrb[2].mxu1 }
 0x45e   :  { %v758_v57 = vand.u32 2147483647, %v752_v54  ;;  %v5714_v58 = vpop.f32.mrb[3].mxu1  ;;  %v757_v10 = vmax.f32 %v752_v54, 0.0 }
 0x460   :  { %v759_v59 = vsub.f32 0.0, %v758_v57 }
 0x462   :  { %v760_v60 = vmul.f32 1.442695, %v759_v59 }
 0x463   :  { %v1095_v61 = vpop.f32.mrb[4].mxu1 }
 0x464   :  { %6742 = vpow2.f32 %v760_v60  ;;  %v5747_v62 = vpop.f32.mrb[5].mxu1  ;;  %v1096_v25 = vadd.f32 %v5134_v23, %v1095_v61  ;;  %v5139_v60 = vld [vmem:[#allocation15] ss:$0 sm:$0xff] }
 0x465   :  { %v1098_v63 = vpop.f32.mrb[6].mxu1 }
 0x466   :  { %v5748_v1 = vpop.f32.mrb[7].mxu1  ;;  %v1102_v27 = vand.u32 2147483647, %v1096_v25  ;;  %v1101_v51 = vmax.f32 %v1096_v25, 0.0 }
 0x468   :  { %v1103_v29 = vsub.f32 0.0, %v1102_v27 }
 0x46a   :  { %v1104_v31 = vmul.f32 1.442695, %v1103_v29 }
 0x46b   :  { %v8072_v18 = vpop.f32.mrb[8].mxu1 }
 0x46c   :  { %v5761_v19 = vpop.f32.mrb[9].mxu1 }
 0x46d   :  { %v1218_v20 = vpop.f32.mrb[10].mxu1 }
 0x46e   :  { %v6743_v2 = vpop.eup %6742  ;;  %v5762_v21 = vpop.f32.mrb[11].mxu1 }
 0x46f   :  { %v762_v3 = vadd.f32 1.0, %v6743_v2  ;;  %v765_v4 = vmul.f32 -0.5, %v6743_v2  ;;  %v768_v6 = vand.u32 2147483647, %v6743_v2 }
 0x471   :  { %6744 = vlog2.f32 %v762_v3  ;;  %v766_v5 = vadd.f32 1.0, %v765_v4  ;;  %vm769_vm5 = vcmp.lt.f32.partialorder %v768_v6, 0.0004427343 }
 0x473   :  { %v767_v9 = vmul.f32 %v6743_v2, %v766_v5 }
 0x47b   :  { %v6745_v7 = vpop.eup %6744 }
 0x47c   :  { %v764_v8 = vmul.f32 0.6931472, %v6745_v7 }
 0x47e   :  { %v770_v11 = vsel %vm769_vm5, %v767_v9, %v764_v8 }
 0x47f   :  { %v771_v12 = vadd.f32 %v770_v11, %v757_v10  ;;  %v8101_v10 = vld [vmem:[%s9227_s18] sm:$0xff]   ;;  %v8108_v11 = vld [vmem:[%s9226_s4 + $0x8] sm:$0xff]  }
 0x481   :  { %6746 = vtanh.f32 %v771_v12  ;;  %v8111_v12 = vld [vmem:[%s9227_s18 + $0x8] sm:$0xff]  }
 0x482   :  { %6748 = vpow2.f32 %v837_v30 }
 0x483   :  { %6750 = vpow2.f32 %v1104_v31 }
 0x48b   :  { %v6747_v13 = vpop.eup %6746 }
 0x48c   :  { %v773_v14 = vmul.f32 %v6747_v13, %v752_v54  ;;  %v6749_v32 = vpop.eup %6748  ;;  %v5140_v13 = vld [vmem:[%s9228_s22] ss:$0 sm:$0xff] }
 0x48d   :  { %v6751_v33 = vpop.eup %6750  ;;  %v839_v34 = vadd.f32 1.0, %v6749_v32  ;;  %v842_v36 = vmul.f32 -0.5, %v6749_v32  ;;  %v845_v40 = vand.u32 2147483647, %v6749_v32 }
 0x48e   :  { %v8060_v17 = vpack.c.bf16 %v773_v14, %v773_v14  ;;  %v1106_v35 = vadd.f32 1.0, %v6751_v33  ;;  %v1109_v37 = vmul.f32 -0.5, %v6751_v33  ;;  %v1112_v44 = vand.u32 2147483647, %v6751_v33 }
 0x48f   :  { %6752 = vlog2.f32 %v839_v34  ;;  %v843_v38 = vadd.f32 1.0, %v842_v36  ;;  %vm846_vm6 = vcmp.lt.f32.partialorder %v845_v40, 0.0004427343 }
 0x490   :  { %5726 = vmatmul.mubr.msk.bf16.vlgmr.msra.gmra.mrb[8].mxu0 %vm584_vm1, %v8060_v17  ;;  %5776 = vmatmul.mubr.msk.bf16.vlgmr.msra.gmra.mrb[12].mxu1 %vm584_vm1, %v8060_v17  ;;  %6754 = vlog2.f32 %v1106_v35  ;;  %v1110_v41 = vadd.f32 1.0, %v1109_v37  ;;  %vm1113_vm7 = vcmp.lt.f32.partialorder %v1112_v44, 0.0004427343 }
 0x491   :  { %5730 = vmatpush3.bf16.msra.mxu0 %v8058_v15  ;;  %5733 = vmatprep.mubr.msk.bf16.mxu0 %vm7554_vm0, %v7553_v0  ;;  %v844_v46 = vmul.f32 %v6749_v32, %v843_v38 }
 0x492   :  { %5731 = vmatprep.subr.bf16.mxu0 %v7553_v0  ;;  %5795 = vmatprep.mubr.msk.bf16.mxu1 %vm7554_vm0, %v7553_v0  ;;  %v1111_v48 = vmul.f32 %v6751_v33, %v1110_v41 }
 0x493   :  { %5792 = vmatpush3.bf16.msra.mxu1 %v8101_v10 }
 0x494   :  { %5793 = vmatprep.subr.bf16.mxu1 %v7553_v0 }
 0x495   :  { %5732 = vmatpush3.bf16.msra.mxu0 %v8075_v22 }
 0x496   :  { %5737 = vmatprep.subr.bf16.mxu0 %v7553_v0 }
 0x497   :  { %5794 = vmatpush3.bf16.msra.mxu1 %v8111_v12 }
 0x498   :  { %5799 = vmatprep.subr.bf16.mxu1 %v7553_v0 }
 0x499   :  { %v6753_v39 = vpop.eup %6752 }
 0x49a   :  { %v6755_v42 = vpop.eup %6754  ;;  %v841_v45 = vmul.f32 0.6931472, %v6753_v39 }
 0x49b   :  { %v1108_v47 = vmul.f32 0.6931472, %v6755_v42 }
 0x49c   :  { %v847_v50 = vsel %vm846_vm6, %v844_v46, %v841_v45 }
 0x49d   :  { %v1114_v52 = vsel %vm1113_vm7, %v1111_v48, %v1108_v47  ;;  %v848_v53 = vadd.f32 %v847_v50, %v834_v49 }
 0x49e   :  { %v1115_v54 = vadd.f32 %v1114_v52, %v1101_v51 }
 0x49f   :  { %6756 = vtanh.f32 %v848_v53 }
 0x4a0   :  { %6758 = vtanh.f32 %v1115_v54 }
 0x4a9   :  { %v6757_v55 = vpop.eup %6756 }
 0x4aa   :  { %v6759_v56 = vpop.eup %6758  ;;  %v850_v57 = vmul.f32 %v6757_v55, %v829_v24 }
 0x4ab   :  { %v1117_v58 = vmul.f32 %v6759_v56, %v1096_v25 }
 0x563   :  { %v905_v59 = vpop.f32.mrb[8].mxu0  ;;  %v8079_v61 = vpop.f32.mrb[12].mxu1 }
 0x564   :  { %v911_v62 = vadd.f32 %v905_v59, %v850_v57  ;;  %v1118_v63 = vadd.f32 %v1117_v58, %v905_v59  ;;  %v5727_v1 = vpop.f32.mrb[9].mxu0  ;;  %v5777_v2 = vpop.f32.mrb[13].mxu1  ;;  %v5145_v57 = vld [vmem:[#allocation13] ss:$0 sm:$0xff] }
 0x565   :  { %v908_v3 = vpop.f32.mrb[10].mxu0  ;;  %v1360_v4 = vpop.f32.mrb[14].mxu1 }
 0x566   :  { %v919_v5 = vadd.f32 %v5139_v60, %v911_v62  ;;  %v5728_v6 = vpop.f32.mrb[11].mxu0  ;;  %v5778_v7 = vpop.f32.mrb[15].mxu1  ;;  %v1119_v9 = vadd.f32 %v5139_v60, %v1118_v63 }
 0x568   :  { %v920_v8 = vpack.c.bf16 %v919_v5, %v919_v5 }
 0x56a   :  { %5734 = vmatmul.mubr.msk.bf16.vlgmr.msra.gmra.mrb[12].mxu0 %vm584_vm1, %v920_v8 }
 0x56b   :  { %5738 = vmatpush3.bf16.msra.mxu0 %v8042_v43  ;;  %5739 = vmatprep.mubr.msk.bf16.mxu0 %vm7554_vm0, %v7553_v0  ;;  %v1120_v43 = vpack.c.bf16 %v1119_v9, %v1119_v9  ;;  %v8145_v9 = vld [vmem:[%s9229_s23 + $0x8] sm:$0xff]  }
 0x56c   :  { %5749 = vmatprep.subr.bf16.mxu0 %v7553_v0 }
 0x572   :  { %5740 = vmatmul.mubr.msk.bf16.vlgmr.msra.gmra.mrb[16].mxu0 %vm786_vm3, %v8027_v16  ;;  %v8098_v16 = vld [vmem:[%s9226_s4] sm:$0xff]   ;;  %s9256_s4 = sld [smem:[#allocation83_spill]] }
 0x573   :  { %5750 = vmatpush3.bf16.msra.mxu0 %v8058_v15  ;;  %5753 = vmatprep.mubr.msk.bf16.mxu0 %vm7554_vm0, %v7553_v0 }
 0x574   :  { %5751 = vmatprep.subr.bf16.mxu0 %v7553_v0 }
 0x577   :  { %5752 = vmatpush3.bf16.msra.mxu0 %v8075_v22 }
 0x578   :  { %5763 = vmatprep.subr.bf16.mxu0 %v7553_v0 }
 0x57a   :  { %5754 = vmatmul.mubr.msk.bf16.vlgmr.msra.gmra.mrb[20].mxu0 %vm584_vm1, %v1120_v43  ;;  %v8150_v43 = vld [vmem:[%s9229_s23 + $0x10] sm:$0xff]  }
 0x57b   :  { %5767 = vmatprep.mubr.msk.bf16.mxu0 %vm7554_vm0, %v7553_v0  ;;  %5764 = vmatpush3.bf16.msra.mxu0 %v8098_v16 }
 0x57c   :  { %5765 = vmatprep.subr.bf16.mxu0 %v7553_v0 }
 0x57f   :  { %5766 = vmatpush3.bf16.msra.mxu0 %v8108_v11 }
 0x580   :  { %5779 = vmatprep.subr.bf16.mxu0 %v7553_v0 }
 0x63d   :  { %v981_v14 = vpop.f32.mrb[12].mxu0 }
 0x63e   :  { %v982_v15 = vadd.f32 %v5140_v13, %v981_v14  ;;  %v5735_v19 = vpop.f32.mrb[13].mxu0 }
 0x63f   :  { %v984_v20 = vpop.f32.mrb[14].mxu0 }
 0x640   :  { %v988_v21 = vand.u32 2147483647, %v982_v15  ;;  %v5736_v22 = vpop.f32.mrb[15].mxu0  ;;  %v987_v46 = vmax.f32 %v982_v15, 0.0 }
 0x642   :  { %v989_v23 = vsub.f32 0.0, %v988_v21 }
 0x644   :  { %v990_v24 = vmul.f32 1.442695, %v989_v23 }
 0x645   :  { %v1042_v25 = vpop.f32.mrb[16].mxu0 }
 0x646   :  { %6760 = vpow2.f32 %v990_v24  ;;  %v5741_v26 = vpop.f32.mrb[17].mxu0 }
 0x647   :  { %v1045_v27 = vpop.f32.mrb[18].mxu0 }
 0x648   :  { %v5742_v28 = vpop.f32.mrb[19].mxu0 }
 0x64d   :  { %v1158_v29 = vpop.f32.mrb[20].mxu0 }
 0x64e   :  { %v1159_v30 = vadd.f32 %v5140_v13, %v1158_v29  ;;  %v5755_v31 = vpop.f32.mrb[21].mxu0 }
 0x64f   :  { %v1161_v32 = vpop.f32.mrb[22].mxu0 }
 0x650   :  { %v6761_v33 = vpop.eup %6760  ;;  %v1165_v34 = vand.u32 2147483647, %v1159_v30  ;;  %v5756_v35 = vpop.f32.mrb[23].mxu0  ;;  %v1164_v62 = vmax.f32 %v1159_v30, 0.0 }
 0x651   :  { %v992_v36 = vadd.f32 1.0, %v6761_v33  ;;  %v995_v39 = vmul.f32 -0.5, %v6761_v33  ;;  %v998_v41 = vand.u32 2147483647, %v6761_v33 }
 0x652   :  { %v1166_v37 = vsub.f32 0.0, %v1165_v34 }
 0x653   :  { %6762 = vlog2.f32 %v992_v36  ;;  %v996_v40 = vadd.f32 1.0, %v995_v39  ;;  %vm999_vm8 = vcmp.lt.f32.partialorder %v998_v41, 0.0004427343 }
 0x654   :  { %v1167_v38 = vmul.f32 1.442695, %v1166_v37 }
 0x655   :  { %v997_v45 = vmul.f32 %v6761_v33, %v996_v40 }
 0x656   :  { %6764 = vpow2.f32 %v1167_v38 }
 0x65d   :  { %v6763_v42 = vpop.eup %6762 }
 0x65e   :  { %v994_v44 = vmul.f32 0.6931472, %v6763_v42 }
 0x660   :  { %v6765_v47 = vpop.eup %6764  ;;  %v1000_v48 = vsel %vm999_vm8, %v997_v45, %v994_v44 }
 0x661   :  { %v1001_v49 = vadd.f32 %v1000_v48, %v987_v46  ;;  %v1169_v50 = vadd.f32 1.0, %v6765_v47  ;;  %v1172_v51 = vmul.f32 -0.5, %v6765_v47  ;;  %v1175_v53 = vand.u32 2147483647, %v6765_v47 }
 0x663   :  { %6766 = vtanh.f32 %v1001_v49  ;;  %v1173_v52 = vadd.f32 1.0, %v1172_v51  ;;  %vm1176_vm9 = vcmp.lt.f32.partialorder %v1175_v53, 0.0004427343 }
 0x664   :  { %6768 = vlog2.f32 %v1169_v50 }
 0x665   :  { %v1174_v59 = vmul.f32 %v6765_v47, %v1173_v52 }
 0x66d   :  { %v6767_v54 = vpop.eup %6766 }
 0x66e   :  { %v6769_v55 = vpop.eup %6768  ;;  %v1003_v56 = vmul.f32 %v6767_v54, %v982_v15 }
 0x66f   :  { %v1171_v58 = vmul.f32 0.6931472, %v6769_v55 }
 0x670   :  { %v1048_v60 = vadd.f32 %v1042_v25, %v1003_v56 }
 0x671   :  { %v1177_v63 = vsel %vm1176_vm9, %v1174_v59, %v1171_v58  ;;  %v5156_v58 = vld [vmem:[#allocation24] ss:$0 sm:$0xff] }
 0x672   :  { %v1056_v1 = vadd.f32 %v5145_v57, %v1048_v60  ;;  %v1178_v2 = vadd.f32 %v1177_v63, %v1164_v62 }
 0x674   :  { %v1223_v3 = vpack.c.bf16 %v1056_v1, %v1056_v1  ;;  %6770 = vtanh.f32 %v1178_v2 }
 0x676   :  { %5768 = vmatmul.mubr.msk.bf16.vlgmr.msra.gmra.mrb[24].mxu0 %vm584_vm1, %v1223_v3  ;;  %5796 = vmatmul.mubr.msk.bf16.vlgmr.msra.gmra.mrb[16].mxu1 %vm584_vm1, %v1223_v3 }
 0x677   :  { %5800 = vmatpush3.bf16.msra.mxu1 %v8098_v16  ;;  %5803 = vmatprep.mubr.msk.bf16.mxu1 %vm7554_vm0, %v7553_v0  ;;  %v8155_v16 = vld [vmem:[%s9229_s23 + $0x18] sm:$0xff]  }
 0x678   :  { %5801 = vmatprep.subr.bf16.mxu1 %v7553_v0  ;;  %5787 = vmatprep.mubr.msk.bf16.mxu0 %vm7554_vm0, %v7553_v0 }
 0x67b   :  { %5802 = vmatpush3.bf16.msra.mxu1 %v8108_v11 }
 0x67c   :  { %5819 = vmatprep.subr.bf16.mxu1 %v7553_v0 }
 0x67e   :  { %v6771_v4 = vpop.eup %6770 }
 0x67f   :  { %v1180_v5 = vmul.f32 %v6771_v4, %v1159_v30 }
 0x681   :  { %v1221_v6 = vadd.f32 %v8072_v18, %v1180_v5  ;;  %v8140_v18 = vld [vmem:[%s9229_s23] sm:$0xff]  }
 0x682   :  { %5780 = vmatpush3.bf16.msra.mxu0 %v8140_v18 }
 0x683   :  { %v1222_v7 = vadd.f32 %v5145_v57, %v1221_v6  ;;  %5781 = vmatprep.subr.bf16.mxu0 %v7553_v0 }
 0x685   :  { %v1538_v8 = vpack.c.bf16 %v1222_v7, %v1222_v7 }
 0x686   :  { %5782 = vmatpush3.bf16.msra.mxu0 %v8145_v9 }
 0x687   :  { %5804 = vmatmul.mubr.msk.bf16.vlgmr.msra.gmra.mrb[20].mxu1 %vm584_vm1, %v1538_v8  ;;  %5783 = vmatprep.subr.bf16.mxu0 %v7553_v0 }
 0x688   :  { %5820 = vmatpush3.bf16.msra.mxu1 %v8101_v10  ;;  %5823 = vmatprep.mubr.msk.bf16.mxu1 %vm7554_vm0, %v7553_v0  ;;  %v5149_v10 = vld [vmem:[#allocation19] ss:$0 sm:$0xff] }
 0x689   :  { %5821 = vmatprep.subr.bf16.mxu1 %v7553_v0 }
 0x68a   :  { %5784 = vmatpush3.bf16.msra.mxu0 %v8150_v43 }
 0x68b   :  { %5785 = vmatprep.subr.bf16.mxu0 %v7553_v0 }
 0x68c   :  { %5822 = vmatpush3.bf16.msra.mxu1 %v8111_v12 }
 0x68d   :  { %5827 = vmatprep.subr.bf16.mxu1 %v7553_v0 }
 0x68e   :  { %5786 = vmatpush3.bf16.msra.mxu0 %v8155_v16 }
 0x68f   :  { %5824 = vmatmul.mubr.msk.bf16.vlgmr.msra.gmra.mrb[24].mxu1 %vm584_vm1, %v1538_v8  ;;  %5807 = vmatprep.subr.bf16.mxu0 %v7553_v0 }
 0x690   :  { %5835 = vmatprep.mubr.msk.bf16.mxu1 %vm7554_vm0, %v7553_v0 }
 0x749   :  { %v1284_v11 = vpop.f32.mrb[24].mxu0  ;;  %v8159_v12 = vpop.f32.mrb[16].mxu1 }
 0x74a   :  { %v1285_v13 = vadd.f32 %v5149_v10, %v1284_v11  ;;  %v5769_v14 = vpop.f32.mrb[25].mxu0  ;;  %v5797_v15 = vpop.f32.mrb[17].mxu1  ;;  %v8203_v11 = vld [vmem:[%s9231_s24 + $0x18] sm:$0xff]  }
 0x74b   :  { %v1287_v19 = vpop.f32.mrb[26].mxu0  ;;  %v1526_v20 = vpop.f32.mrb[18].mxu1 }
 0x74c   :  { %v1291_v21 = vand.u32 2147483647, %v1285_v13  ;;  %v5770_v22 = vpop.f32.mrb[27].mxu0  ;;  %v5798_v23 = vpop.f32.mrb[19].mxu1  ;;  %v1290_v47 = vmax.f32 %v1285_v13, 0.0 }
 0x74e   :  { %v1292_v24 = vsub.f32 0.0, %v1291_v21 }
 0x750   :  { %v1293_v25 = vmul.f32 1.442695, %v1292_v24 }
 0x752   :  { %6772 = vpow2.f32 %v1293_v25 }
 0x75a   :  { %v1576_v26 = vpop.f32.mrb[20].mxu1 }
 0x75b   :  { %v1577_v27 = vadd.f32 %v5149_v10, %v1576_v26  ;;  %v5805_v28 = vpop.f32.mrb[21].mxu1 }
 0x75c   :  { %v6773_v29 = vpop.eup %6772  ;;  %v1579_v30 = vpop.f32.mrb[22].mxu1 }
 0x75d   :  { %v1295_v31 = vadd.f32 1.0, %v6773_v29  ;;  %v5806_v32 = vpop.f32.mrb[23].mxu1  ;;  %v1583_v33 = vand.u32 2147483647, %v1577_v27  ;;  %v1298_v35 = vmul.f32 -0.5, %v6773_v29  ;;  %v1582_v63 = vmax.f32 %v1577_v27, 0.0 }
 0x75e   :  { %v1301_v42 = vand.u32 2147483647, %v6773_v29 }
 0x75f   :  { %6774 = vlog2.f32 %v1295_v31  ;;  %v1584_v34 = vsub.f32 0.0, %v1583_v33  ;;  %v1299_v41 = vadd.f32 1.0, %v1298_v35 }
 0x760   :  { %vm1302_vm10 = vcmp.lt.f32.partialorder %v1301_v42, 0.0004427343 }
 0x761   :  { %v1585_v36 = vmul.f32 1.442695, %v1584_v34  ;;  %v1300_v46 = vmul.f32 %v6773_v29, %v1299_v41 }
 0x762   :  { %v8161_v37 = vpop.f32.mrb[24].mxu1 }
 0x763   :  { %v5825_v38 = vpop.f32.mrb[25].mxu1  ;;  %6776 = vpow2.f32 %v1585_v36 }
 0x764   :  { %v1699_v39 = vpop.f32.mrb[26].mxu1 }
 0x765   :  { %v5826_v40 = vpop.f32.mrb[27].mxu1 }
 0x769   :  { %v6775_v44 = vpop.eup %6774 }
 0x76a   :  { %v1297_v45 = vmul.f32 0.6931472, %v6775_v44 }
 0x76c   :  { %v1303_v48 = vsel %vm1302_vm10, %v1300_v46, %v1297_v45 }
 0x76d   :  { %v1304_v49 = vadd.f32 %v1303_v48, %v1290_v47  ;;  %v6777_v50 = vpop.eup %6776 }
 0x76e   :  { %v1587_v51 = vadd.f32 1.0, %v6777_v50  ;;  %v1590_v52 = vmul.f32 -0.5, %v6777_v50  ;;  %v1593_v55 = vand.u32 2147483647, %v6777_v50 }
 0x76f   :  { %6778 = vtanh.f32 %v1304_v49 }
 0x770   :  { %6780 = vlog2.f32 %v1587_v51  ;;  %v1591_v53 = vadd.f32 1.0, %v1590_v52  ;;  %vm1594_vm11 = vcmp.lt.f32.partialorder %v1593_v55, 0.0004427343 }
 0x772   :  { %v1592_v62 = vmul.f32 %v6777_v50, %v1591_v53 }
 0x779   :  { %v6779_v54 = vpop.eup %6778 }
 0x77a   :  { %v1306_v56 = vmul.f32 %v6779_v54, %v1285_v13  ;;  %v6781_v57 = vpop.eup %6780  ;;  %v5157_v13 = vld [vmem:[#allocation21] ss:$0 sm:$0xff] }
 0x77b   :  { %v1589_v60 = vmul.f32 0.6931472, %v6781_v57 }
 0x77c   :  { %v1363_v59 = vadd.f32 %v8079_v61, %v1306_v56 }
 0x77d   :  { %v1595_v2 = vsel %vm1594_vm11, %v1592_v62, %v1589_v60 }
 0x77e   :  { %v1371_v1 = vadd.f32 %v5156_v58, %v1363_v59  ;;  %v1596_v3 = vadd.f32 %v1595_v2, %v1582_v63 }
 0x780   :  { %v1372_v4 = vpack.c.bf16 %v1371_v1, %v1371_v1  ;;  %6782 = vtanh.f32 %v1596_v3 }
 0x782   :  { %5788 = vmatmul.mubr.msk.bf16.vlgmr.msra.gmra.mrb[28].mxu0 %vm1412_vm12, %v1372_v4  ;;  %v6614_v4 = vld [vmem:[%s9232_s14] sm:$0xff]  }
 0x783   :  { %5808 = vmatpush3.bf16.msra.mxu0 %v8140_v18  ;;  %5815 = vmatprep.mubr.msk.bf16.mxu0 %vm7554_vm0, %v7553_v0  ;;  %v6608_v18 = vld [vmem:[%s9230_s20] sm:$0xff]  }
 0x784   :  { %5809 = vmatprep.subr.bf16.mxu0 %v7553_v0 }
 0x787   :  { %5810 = vmatpush3.bf16.msra.mxu0 %v8145_v9  ;;  %v6609_v9 = vld [vmem:[%s9230_s20 + $0x8] sm:$0xff]  }
 0x788   :  { %5811 = vmatprep.subr.bf16.mxu0 %v7553_v0 }
 0x78a   :  { %v6783_v5 = vpop.eup %6782 }
 0x78b   :  { %5812 = vmatpush3.bf16.msra.mxu0 %v8150_v43  ;;  %v1598_v6 = vmul.f32 %v6783_v5, %v1577_v27  ;;  %v8193_v43 = vld [vmem:[%s9231_s24 + $0x8] sm:$0xff]  }
 0x78c   :  { %5813 = vmatprep.subr.bf16.mxu0 %v7553_v0 }
 0x78d   :  { %v1599_v7 = vadd.f32 %v1598_v6, %v8079_v61  ;;  %v8188_v61 = vld [vmem:[%s9231_s24] sm:$0xff]   ;;  %v6616_v6 = vld [vmem:[%s9232_s14 + $0x10] sm:$0xff]  }
 0x78e   :  { %5828 = vmatpush3.bf16.msra.mxu1 %v8188_v61 }
 0x78f   :  { %5814 = vmatpush3.bf16.msra.mxu0 %v8155_v16  ;;  %v1600_v8 = vadd.f32 %v5156_v58, %v1599_v7  ;;  %5829 = vmatprep.subr.bf16.mxu1 %v7553_v0  ;;  %v8198_v16 = vld [vmem:[%s9231_s24 + $0x10] sm:$0xff]   ;;  %v5166_v58 = vld [vmem:[#allocation22] ss:$0 sm:$0xff] }
 0x790   :  { %5839 = vmatprep.subr.bf16.mxu0 %v7553_v0 }
 0x791   :  { %v1601_v10 = vpack.c.bf16 %v1600_v8, %v1600_v8  ;;  %v6617_v8 = vld [vmem:[%s9232_s14 + $0x18] sm:$0xff]  }
 0x792   :  { %5830 = vmatpush3.bf16.msra.mxu1 %v8193_v43 }
 0x793   :  { %5816 = vmatmul.mubr.msk.bf16.vlgmr.msra.gmra.mrb[32].mxu0 %vm1412_vm12, %v1601_v10  ;;  %5831 = vmatprep.subr.bf16.mxu1 %v7553_v0 }
 0x794   :  { %5840 = vmatpush3.bf16.msra.mxu0 %v6608_v18  ;;  %5843 = vmatprep.mubr.msk.bf16.mxu0 %vm7554_vm0, %v7553_v0 }
 0x795   :  { %5841 = vmatprep.subr.bf16.mxu0 %v7553_v0 }
 0x796   :  { %5832 = vmatpush3.bf16.msra.mxu1 %v8198_v16 }
 0x797   :  { %5833 = vmatprep.subr.bf16.mxu1 %v7553_v0 }
 0x798   :  { %5842 = vmatpush3.bf16.msra.mxu0 %v6609_v9 }
 0x799   :  { %5847 = vmatprep.subr.bf16.mxu0 %v7553_v0 }
 0x79a   :  { %5834 = vmatpush3.bf16.msra.mxu1 %v8203_v11 }
 0x79b   :  { %5844 = vmatmul.mubr.msk.bf16.vlgmr.msra.gmra.mrb[36].mxu0 %vm584_vm1, %v8060_v17  ;;  %5867 = vmatprep.subr.bf16.mxu1 %v7553_v0 }
 0x79c   :  { %5863 = vmatprep.mubr.msk.bf16.mxu0 %vm7554_vm0, %v7553_v0 }
 0x855   :  { %v1450_v14 = vpop.f32.mrb[28].mxu0 }
 0x856   :  { %v1451_v15 = vadd.f32 %v5157_v13, %v1450_v14  ;;  %v5789_v19 = vpop.f32.mrb[29].mxu0  ;;  %v8285_v14 = vld [vmem:[%s9233_s26 + $0x28] sm:$0xff]  }
 0x857   :  { %v1453_v20 = vpop.f32.mrb[30].mxu0  ;;  %v8295_v19 = vld [vmem:[%s9233_s26 + $0x38] sm:$0xff]  }
 0x858   :  { %v1457_v21 = vand.u32 2147483647, %v1451_v15  ;;  %v5790_v22 = vpop.f32.mrb[31].mxu0  ;;  %v1456_v47 = vmax.f32 %v1451_v15, 0.0  ;;  %v8300_v20 = vld [vmem:[%s9234_s28] sm:$0xff]  }
 0x859   :  { %v8309_v22 = vld [vmem:[%s9234_s28 + $0x10] sm:$0xff]  }
 0x85a   :  { %v1458_v23 = vsub.f32 0.0, %v1457_v21  ;;  %v8304_v21 = vld [vmem:[%s9234_s28 + $0x8] sm:$0xff]  }
 0x85c   :  { %v1459_v24 = vmul.f32 1.442695, %v1458_v23  ;;  %v8314_v23 = vld [vmem:[%s9234_s28 + $0x18] sm:$0xff]  }
 0x85e   :  { %6784 = vpow2.f32 %v1459_v24  ;;  %v8319_v24 = vld [vmem:[%s9234_s28 + $0x20] sm:$0xff]  }
 0x866   :  { %v1639_v25 = vpop.f32.mrb[32].mxu0 }
 0x867   :  { %v1640_v27 = vadd.f32 %v5157_v13, %v1639_v25  ;;  %v5817_v28 = vpop.f32.mrb[33].mxu0  ;;  %v8280_v13 = vld [vmem:[%s9233_s26 + $0x20] sm:$0xff]   ;;  %v8324_v25 = vld [vmem:[%s9234_s28 + $0x28] sm:$0xff]  }
 0x868   :  { %v6785_v26 = vpop.eup %6784  ;;  %v1642_v30 = vpop.f32.mrb[34].mxu0 }
 0x869   :  { %v1461_v29 = vadd.f32 1.0, %v6785_v26  ;;  %v1646_v31 = vand.u32 2147483647, %v1640_v27  ;;  %v5818_v32 = vpop.f32.mrb[35].mxu0  ;;  %v1464_v34 = vmul.f32 -0.5, %v6785_v26  ;;  %v1645_v63 = vmax.f32 %v1640_v27, 0.0 }
 0x86a   :  { %v1467_v42 = vand.u32 2147483647, %v6785_v26 }
 0x86b   :  { %6786 = vlog2.f32 %v1461_v29  ;;  %v1647_v33 = vsub.f32 0.0, %v1646_v31  ;;  %v1465_v40 = vadd.f32 1.0, %v1464_v34 }
 0x86c   :  { %vm1468_vm13 = vcmp.lt.f32.partialorder %v1467_v42, 0.0004427343 }
 0x86d   :  { %v1648_v35 = vmul.f32 1.442695, %v1647_v33  ;;  %v1466_v46 = vmul.f32 %v6785_v26, %v1465_v40  ;;  %v5170_v26 = vld [vmem:[%s9235_s1] ss:$0 sm:$0xff] }
 0x86e   :  { %v8207_v36 = vpop.f32.mrb[36].mxu0 }
 0x86f   :  { %6788 = vpow2.f32 %v1648_v35  ;;  %v5845_v38 = vpop.f32.mrb[37].mxu0 }
 0x870   :  { %v1857_v39 = vpop.f32.mrb[38].mxu0 }
 0x871   :  { %v5846_v41 = vpop.f32.mrb[39].mxu0 }
 0x875   :  { %v6787_v44 = vpop.eup %6786 }
 0x876   :  { %v1463_v45 = vmul.f32 0.6931472, %v6787_v44 }
 0x878   :  { %v1469_v48 = vsel %vm1468_vm13, %v1466_v46, %v1463_v45 }
 0x879   :  { %v1470_v49 = vadd.f32 %v1469_v48, %v1456_v47  ;;  %v6789_v50 = vpop.eup %6788 }
 0x87a   :  { %v1650_v51 = vadd.f32 1.0, %v6789_v50  ;;  %v1653_v52 = vmul.f32 -0.5, %v6789_v50  ;;  %v1656_v55 = vand.u32 2147483647, %v6789_v50 }
 0x87b   :  { %6790 = vtanh.f32 %v1470_v49 }
 0x87c   :  { %6792 = vlog2.f32 %v1650_v51  ;;  %v1654_v53 = vadd.f32 1.0, %v1653_v52  ;;  %vm1657_vm14 = vcmp.lt.f32.partialorder %v1656_v55, 0.0004427343 }
 0x87e   :  { %v1655_v62 = vmul.f32 %v6789_v50, %v1654_v53 }
 0x885   :  { %v6791_v54 = vpop.eup %6790 }
 0x886   :  { %v1472_v56 = vmul.f32 %v6791_v54, %v1451_v15  ;;  %v6793_v57 = vpop.eup %6792  ;;  %v8290_v15 = vld [vmem:[%s9233_s26 + $0x30] sm:$0xff]  }
 0x887   :  { %v1652_v60 = vmul.f32 0.6931472, %v6793_v57 }
 0x888   :  { %v1529_v59 = vadd.f32 %v8159_v12, %v1472_v56  ;;  %v6615_v12 = vld [vmem:[%s9232_s14 + $0x8] sm:$0xff]  }
 0x889   :  { %v1658_v2 = vsel %vm1657_vm14, %v1655_v62, %v1652_v60 }
 0x88a   :  { %v8210_v1 = vadd.f32 %v5166_v58, %v1529_v59  ;;  %v1659_v3 = vadd.f32 %v1658_v2, %v1645_v63 }
 0x88c   :  { %v8215_v5 = vpack.c.bf16 %v8210_v1, %v8210_v1  ;;  %6794 = vtanh.f32 %v1659_v3 }
 0x88e   :  { %5836 = vmatmul.mubr.msk.bf16.vlgmr.msra.gmra.mrb[28].mxu1 %vm1412_vm12, %v8215_v5 }
 0x88f   :  { %5868 = vmatpush3.bf16.msra.mxu1 %v6614_v4  ;;  %5875 = vmatprep.mubr.msk.bf16.mxu1 %vm7554_vm0, %v7553_v0 }
 0x890   :  { %5869 = vmatprep.subr.bf16.mxu1 %v7553_v0 }
 0x893   :  { %5870 = vmatpush3.bf16.msra.mxu1 %v6615_v12 }
 0x894   :  { %5871 = vmatprep.subr.bf16.mxu1 %v7553_v0 }
 0x896   :  { %v6795_v7 = vpop.eup %6794 }
 0x897   :  { %5872 = vmatpush3.bf16.msra.mxu1 %v6616_v6  ;;  %v1661_v18 = vmul.f32 %v6795_v7, %v1640_v27 }
 0x898   :  { %5873 = vmatprep.subr.bf16.mxu1 %v7553_v0 }
 0x899   :  { %v1702_v10 = vadd.f32 %v8161_v37, %v1661_v18 }
 0x89b   :  { %5874 = vmatpush3.bf16.msra.mxu1 %v6617_v8  ;;  %v8238_v37 = vadd.f32 %v5166_v58, %v1702_v10 }
 0x89c   :  { %5879 = vmatprep.subr.bf16.mxu1 %v7553_v0 }
 0x89d   :  { %v8244_v9 = vpack.c.bf16 %v8238_v37, %v8238_v37 }
 0x89e   :  { %5876 = vmatmul.mubr.msk.bf16.vlgmr.msra.gmra.mrb[32].mxu1 %vm1412_vm12, %v8215_v5 }
 0x89f   :  { %5880 = vmatpush3.bf16.msra.mxu1 %v8188_v61  ;;  %5887 = vmatprep.mubr.msk.bf16.mxu1 %vm7554_vm0, %v7553_v0  ;;  %v8260_v61 = vld [vmem:[%s9233_s26] sm:$0xff]  }
 0x8a0   :  { %5881 = vmatprep.subr.bf16.mxu1 %v7553_v0  ;;  %5848 = vmatpush3.bf16.msra.mxu0 %v8260_v61 }
 0x8a1   :  { %5849 = vmatprep.subr.bf16.mxu0 %v7553_v0 }
 0x8a3   :  { %5882 = vmatpush3.bf16.msra.mxu1 %v8193_v43  ;;  %v8265_v43 = vld [vmem:[%s9233_s26 + $0x8] sm:$0xff]  }
 0x8a4   :  { %5883 = vmatprep.subr.bf16.mxu1 %v7553_v0  ;;  %5850 = vmatpush3.bf16.msra.mxu0 %v8265_v43 }
 0x8a5   :  { %5851 = vmatprep.subr.bf16.mxu0 %v7553_v0 }
 0x8a7   :  { %5884 = vmatpush3.bf16.msra.mxu1 %v8198_v16  ;;  %v8270_v16 = vld [vmem:[%s9233_s26 + $0x10] sm:$0xff]  }
 0x8a8   :  { %5885 = vmatprep.subr.bf16.mxu1 %v7553_v0  ;;  %5852 = vmatpush3.bf16.msra.mxu0 %v8270_v16 }
 0x8a9   :  { %5853 = vmatprep.subr.bf16.mxu0 %v7553_v0 }
 0x8ab   :  { %5886 = vmatpush3.bf16.msra.mxu1 %v8203_v11  ;;  %v8275_v11 = vld [vmem:[%s9233_s26 + $0x18] sm:$0xff]  }
 0x8ac   :  { %5911 = vmatprep.subr.bf16.mxu1 %v7553_v0  ;;  %5854 = vmatpush3.bf16.msra.mxu0 %v8275_v11 }
 0x8ad   :  { %5855 = vmatprep.subr.bf16.mxu0 %v7553_v0 }
 0x8ae   :  { %5888 = vmatmul.mubr.msk.bf16.vlgmr.msra.gmra.mrb[36].mxu1 %vm1412_vm12, %v8244_v9 }
 0x8af   :  { %5912 = vmatpush3.bf16.msra.mxu1 %v6614_v4  ;;  %5919 = vmatprep.mubr.msk.bf16.mxu1 %vm7554_vm0, %v7553_v0 }
 0x8b0   :  { %5913 = vmatprep.subr.bf16.mxu1 %v7553_v0  ;;  %5856 = vmatpush3.bf16.msra.mxu0 %v8280_v13 }
 0x8b1   :  { %5857 = vmatprep.subr.bf16.mxu0 %v7553_v0 }
 0x8b3   :  { %5914 = vmatpush3.bf16.msra.mxu1 %v6615_v12  ;;  %v5179_v12 = vld [vmem:[%s9236_s2] ss:$0 sm:$0xff] }
 0x8b4   :  { %5915 = vmatprep.subr.bf16.mxu1 %v7553_v0  ;;  %5858 = vmatpush3.bf16.msra.mxu0 %v8285_v14 }
 0x8b5   :  { %5859 = vmatprep.subr.bf16.mxu0 %v7553_v0 }
 0x8b7   :  { %5916 = vmatpush3.bf16.msra.mxu1 %v6616_v6 }
 0x8b8   :  { %5917 = vmatprep.subr.bf16.mxu1 %v7553_v0  ;;  %5860 = vmatpush3.bf16.msra.mxu0 %v8290_v15 }
 0x8b9   :  { %5861 = vmatprep.subr.bf16.mxu0 %v7553_v0 }
 0x8bb   :  { %5918 = vmatpush3.bf16.msra.mxu1 %v6617_v8 }
 0x8bc   :  { %5923 = vmatprep.subr.bf16.mxu1 %v7553_v0  ;;  %5862 = vmatpush3.bf16.msra.mxu0 %v8295_v19 }
 0x8bd   :  { %5891 = vmatprep.subr.bf16.mxu0 %v7553_v0 }
 0x8be   :  { %5920 = vmatmul.mubr.msk.bf16.vlgmr.msra.gmra.mrb[40].mxu1 %vm1412_vm12, %v8244_v9 }
 0x8bf   :  { %5939 = vmatprep.mubr.msk.bf16.mxu1 %vm7554_vm0, %v7553_v0  ;;  %5924 = vmatpush3.bf16.msra.mxu1 %v8300_v20 }
 0x8c0   :  { %5925 = vmatprep.subr.bf16.mxu1 %v7553_v0 }
 0x8c3   :  { %5926 = vmatpush3.bf16.msra.mxu1 %v8304_v21 }
 0x8c4   :  { %5927 = vmatprep.subr.bf16.mxu1 %v7553_v0 }
 0x8c7   :  { %5928 = vmatpush3.bf16.msra.mxu1 %v8309_v22 }
 0x8c8   :  { %5929 = vmatprep.subr.bf16.mxu1 %v7553_v0 }
 0x8cb   :  { %5930 = vmatpush3.bf16.msra.mxu1 %v8314_v23 }
 0x8cc   :  { %5931 = vmatprep.subr.bf16.mxu1 %v7553_v0 }
 0x8cf   :  { %5932 = vmatpush3.bf16.msra.mxu1 %v8319_v24 }
 0x8d0   :  { %5933 = vmatprep.subr.bf16.mxu1 %v7553_v0 }
 0x8d3   :  { %5934 = vmatpush3.bf16.msra.mxu1 %v8324_v25 }
 0x8d4   :  { %5935 = vmatprep.subr.bf16.mxu1 %v7553_v0 }
 0x961   :  { %v1781_v27 = vpop.f32.mrb[28].mxu1 }
 0x962   :  { %v1782_v28 = vadd.f32 %v5170_v26, %v1781_v27  ;;  %v5837_v29 = vpop.f32.mrb[29].mxu1 }
 0x963   :  { %v1784_v30 = vpop.f32.mrb[30].mxu1 }
 0x964   :  { %v1788_v31 = vand.u32 2147483647, %v1782_v28  ;;  %v5838_v32 = vpop.f32.mrb[31].mxu1  ;;  %v1787_v53 = vmax.f32 %v1782_v28, 0.0 }
 0x966   :  { %v1789_v33 = vsub.f32 0.0, %v1788_v31 }
 0x968   :  { %v1790_v34 = vmul.f32 1.442695, %v1789_v33 }
 0x96a   :  { %6796 = vpow2.f32 %v1790_v34 }
 0x971   :  { %v8330_v35 = vpop.f32.mrb[32].mxu1 }
 0x972   :  { %v5877_v38 = vpop.f32.mrb[33].mxu1 }
 0x973   :  { %v2050_v39 = vpop.f32.mrb[34].mxu1 }
 0x974   :  { %v6797_v40 = vpop.eup %6796  ;;  %v5878_v41 = vpop.f32.mrb[35].mxu1  ;;  %v8371_v39 = vld [vmem:[%s9237_s13 + $0x10] sm:$0xff]  }
 0x975   :  { %v1792_v42 = vadd.f32 1.0, %v6797_v40  ;;  %v1795_v44 = vmul.f32 -0.5, %v6797_v40  ;;  %v1798_v46 = vand.u32 2147483647, %v6797_v40  ;;  %v8381_v41 = vld [vmem:[%s9237_s13 + $0x20] sm:$0xff]  }
 0x977   :  { %6798 = vlog2.f32 %v1792_v42  ;;  %v1796_v45 = vadd.f32 1.0, %v1795_v44  ;;  %vm1799_vm15 = vcmp.lt.f32.partialorder %v1798_v46, 0.0004427343  ;;  %v8386_v42 = vld [vmem:[%s9237_s13 + $0x28] sm:$0xff]   ;;  %v5180_v44 = vld [vmem:[%s9238_s8] ss:$0 sm:$0xff] }
 0x979   :  { %v1797_v50 = vmul.f32 %v6797_v40, %v1796_v45  ;;  %v8376_v40 = vld [vmem:[%s9237_s13 + $0x18] sm:$0xff]   ;;  %v8392_v45 = vld [vmem:[%s9237_s13 + $0x30] sm:$0xff]  }
 0x981   :  { %v6799_v47 = vpop.eup %6798  ;;  %v2100_v48 = vpop.f32.mrb[36].mxu1 }
 0x982   :  { %v1794_v49 = vmul.f32 0.6931472, %v6799_v47  ;;  %v2101_v51 = vadd.f32 %v5170_v26, %v2100_v48  ;;  %v5889_v52 = vpop.f32.mrb[37].mxu1 }
 0x983   :  { %v2103_v54 = vpop.f32.mrb[38].mxu1 }
 0x984   :  { %v1800_v55 = vsel %vm1799_vm15, %v1797_v50, %v1794_v49  ;;  %v2107_v56 = vand.u32 2147483647, %v2101_v51  ;;  %v5890_v57 = vpop.f32.mrb[39].mxu1  ;;  %v2106_v33 = vmax.f32 %v2101_v51, 0.0  ;;  %v5194_v49 = vld [vmem:[%s9239_s27] ss:$0 sm:$0xff] }
 0x985   :  { %v1801_v58 = vadd.f32 %v1800_v55, %v1787_v53  ;;  %v6635_v57 = vld [vmem:[%s9240_s7 + $0x8] sm:$0xff]  }
 0x986   :  { %v2108_v59 = vsub.f32 0.0, %v2107_v56 }
 0x987   :  { %6800 = vtanh.f32 %v1801_v58  ;;  %v6636_v58 = vld [vmem:[%s9240_s7 + $0x10] sm:$0xff]  }
 0x988   :  { %v2109_v60 = vmul.f32 1.442695, %v2108_v59  ;;  %v6637_v59 = vld [vmem:[%s9240_s7 + $0x18] sm:$0xff]  }
 0x98a   :  { %6802 = vpow2.f32 %v2109_v60  ;;  %v6638_v60 = vld [vmem:[%s9240_s7 + $0x20] sm:$0xff]  }
 0x991   :  { %v6801_v62 = vpop.eup %6800  ;;  %v8332_v63 = vpop.f32.mrb[40].mxu1 }
 0x992   :  { %v1803_v2 = vmul.f32 %v6801_v62, %v1782_v28  ;;  %v5921_v3 = vpop.f32.mrb[41].mxu1  ;;  %v6639_v62 = vld [vmem:[%s9240_s7 + $0x28] sm:$0xff]  }
 0x993   :  { %v2203_v4 = vpop.f32.mrb[42].mxu1  ;;  %v6649_v3 = vld [vmem:[%s9237_s13 + $0x38] sm:$0xff]  }
 0x994   :  { %v6803_v6 = vpop.eup %6802  ;;  %v1860_v7 = vadd.f32 %v8207_v36, %v1803_v2  ;;  %v5922_v8 = vpop.f32.mrb[43].mxu1  ;;  %v6641_v2 = vld [vmem:[%s9240_s7 + $0x38] sm:$0xff]   ;;  %v5197_v4 = vld [vmem:[#allocation2] ss:$0 sm:$0xff] }
 0x995   :  { %v2111_v18 = vadd.f32 1.0, %v6803_v6  ;;  %v2114_v27 = vmul.f32 -0.5, %v6803_v6  ;;  %v2117_v29 = vand.u32 2147483647, %v6803_v6 }
 0x996   :  { %v1868_v10 = vadd.f32 %v5179_v12, %v1860_v7 }
 0x997   :  { %6804 = vlog2.f32 %v2111_v18  ;;  %v2115_v28 = vadd.f32 1.0, %v2114_v27  ;;  %vm2118_vm2 = vcmp.lt.f32.partialorder %v2117_v29, 0.0004427343 }
 0x998   :  { %v1869_v26 = vpack.c.bf16 %v1868_v10, %v1868_v10 }
 0x999   :  { %v2116_v32 = vmul.f32 %v6803_v6, %v2115_v28 }
 0x99a   :  { %5864 = vmatmul.mubr.bf16.vlgmr.msra.gmra.mrb[40].mxu0 %v1869_v26 }
 0x99b   :  { %5892 = vmatpush3.bf16.msra.mxu0 %v8260_v61  ;;  %5907 = vmatprep.mubr.msk.bf16.mxu0 %vm7554_vm0, %v7553_v0 }
 0x99c   :  { %5893 = vmatprep.subr.bf16.mxu0 %v7553_v0 }
 0x99f   :  { %5894 = vmatpush3.bf16.msra.mxu0 %v8265_v43 }
 0x9a0   :  { %5895 = vmatprep.subr.bf16.mxu0 %v7553_v0 }
 0x9a1   :  { %v6805_v30 = vpop.eup %6804 }
 0x9a2   :  { %v2113_v31 = vmul.f32 0.6931472, %v6805_v30 }
 0x9a3   :  { %5896 = vmatpush3.bf16.msra.mxu0 %v8270_v16 }
 0x9a4   :  { %v2119_v34 = vsel %vm2118_vm2, %v2116_v32, %v2113_v31  ;;  %5897 = vmatprep.subr.bf16.mxu0 %v7553_v0 }
 0x9a5   :  { %v2120_v61 = vadd.f32 %v2119_v34, %v2106_v33  ;;  %v6650_v33 = vld [vmem:[%s9241_s17] sm:$0xff]  }
 0x9a7   :  { %6806 = vtanh.f32 %v2120_v61  ;;  %5898 = vmatpush3.bf16.msra.mxu0 %v8275_v11  ;;  %v6651_v61 = vld [vmem:[%s9241_s17 + $0x8] sm:$0xff]  }
 0x9a8   :  { %5899 = vmatprep.subr.bf16.mxu0 %v7553_v0 }
 0x9ab   :  { %5900 = vmatpush3.bf16.msra.mxu0 %v8280_v13 }
 0x9ac   :  { %5901 = vmatprep.subr.bf16.mxu0 %v7553_v0 }
 0x9af   :  { %5902 = vmatpush3.bf16.msra.mxu0 %v8285_v14  ;;  %v6632_v14 = vld [vmem:[%s9234_s28 + $0x30] sm:$0xff]  }
 0x9b0   :  { %5903 = vmatprep.subr.bf16.mxu0 %v7553_v0  ;;  %5936 = vmatpush3.bf16.msra.mxu1 %v6632_v14 }
 0x9b1   :  { %v6807_v43 = vpop.eup %6806  ;;  %5937 = vmatprep.subr.bf16.mxu1 %v7553_v0 }
 0x9b2   :  { %v2122_v16 = vmul.f32 %v6807_v43, %v2101_v51  ;;  %v6652_v43 = vld [vmem:[%s9241_s17 + $0x10] sm:$0xff]  }
 0x9b3   :  { %5904 = vmatpush3.bf16.msra.mxu0 %v8290_v15  ;;  %v8362_v15 = vld [vmem:[%s9237_s13] sm:$0xff]  }
 0x9b4   :  { %v2123_v38 = vadd.f32 %v2122_v16, %v8207_v36  ;;  %5905 = vmatprep.subr.bf16.mxu0 %v7553_v0  ;;  %v6633_v36 = vld [vmem:[%s9234_s28 + $0x38] sm:$0xff]  }
 0x9b5   :  { %5938 = vmatpush3.bf16.msra.mxu1 %v6633_v36  ;;  %v6653_v16 = vld [vmem:[%s9241_s17 + $0x18] sm:$0xff]  }
 0x9b6   :  { %v2124_v11 = vadd.f32 %v5179_v12, %v2123_v38  ;;  %5963 = vmatprep.subr.bf16.mxu1 %v7553_v0  ;;  %v6654_v38 = vld [vmem:[%s9241_s17 + $0x20] sm:$0xff]  }
 0x9b7   :  { %5906 = vmatpush3.bf16.msra.mxu0 %v8295_v19  ;;  %v8366_v19 = vld [vmem:[%s9237_s13 + $0x8] sm:$0xff]  }
 0x9b8   :  { %v2125_v13 = vpack.c.bf16 %v2124_v11, %v2124_v11  ;;  %5943 = vmatprep.subr.bf16.mxu0 %v7553_v0  ;;  %v6655_v11 = vld [vmem:[%s9241_s17 + $0x28] sm:$0xff]  }
 0x9ba   :  { %5908 = vmatmul.mubr.bf16.vlgmr.msra.gmra.mrb[44].mxu0 %v2125_v13  ;;  %v6656_v13 = vld [vmem:[%s9241_s17 + $0x30] sm:$0xff]  }
 0x9bb   :  { %5959 = vmatprep.mubr.msk.bf16.mxu0 %vm7554_vm0, %v7553_v0  ;;  %5944 = vmatpush3.bf16.msra.mxu0 %v8362_v15 }
 0x9bc   :  { %5945 = vmatprep.subr.bf16.mxu0 %v7553_v0 }
 0x9bf   :  { %5946 = vmatpush3.bf16.msra.mxu0 %v8366_v19 }
 0x9c0   :  { %5947 = vmatprep.subr.bf16.mxu0 %v7553_v0 }
 0x9c3   :  { %5948 = vmatpush3.bf16.msra.mxu0 %v8371_v39 }
 0x9c4   :  { %5949 = vmatprep.subr.bf16.mxu0 %v7553_v0 }
 0x9c7   :  { %5950 = vmatpush3.bf16.msra.mxu0 %v8376_v40 }
 0x9c8   :  { %5951 = vmatprep.subr.bf16.mxu0 %v7553_v0 }
 0x9cb   :  { %5952 = vmatpush3.bf16.msra.mxu0 %v8381_v41 }
 0x9cc   :  { %5953 = vmatprep.subr.bf16.mxu0 %v7553_v0 }
 0x9cf   :  { %5954 = vmatpush3.bf16.msra.mxu0 %v8386_v42 }
 0x9d0   :  { %5955 = vmatprep.subr.bf16.mxu0 %v7553_v0 }
 0x9d3   :  { %5956 = vmatpush3.bf16.msra.mxu0 %v8392_v45 }
 0x9d4   :  { %5957 = vmatprep.subr.bf16.mxu0 %v7553_v0 }
 0x9d7   :  { %5958 = vmatpush3.bf16.msra.mxu0 %v6649_v3 }
 0x9d8   :  { %5983 = vmatprep.subr.bf16.mxu0 %v7553_v0 }
 0xa6d   :  { %v1975_v46 = vpop.f32.mrb[40].mxu0 }
 0xa6e   :  { %v1976_v47 = vadd.f32 %v5180_v44, %v1975_v46  ;;  %v5865_v48 = vpop.f32.mrb[41].mxu0 }
 0xa6f   :  { %v1978_v50 = vpop.f32.mrb[42].mxu0 }
 0xa70   :  { %v2053_v51 = vadd.f32 %v8330_v35, %v1976_v47  ;;  %v5866_v52 = vpop.f32.mrb[43].mxu0 }
 0xa71   :  { %v8504_v52 = vld [vmem:[%s9242_s21] sm:$0xff]  }
 0xa72   :  { %v8399_v53 = vadd.f32 %v5194_v49, %v2053_v51 }
 0xa74   :  { %v2208_v54 = vpack.c.bf16 %v8399_v53, %v8399_v53 }
 0xa76   :  { %5940 = vmatmul.mubr.bf16.vlgmr.msra.gmra.mrb[44].mxu1 %v2208_v54 }
 0xa77   :  { %5964 = vmatpush3.bf16.msra.mxu1 %v8300_v20  ;;  %5979 = vmatprep.mubr.msk.bf16.mxu1 %vm7554_vm0, %v7553_v0 }
 0xa78   :  { %5965 = vmatprep.subr.bf16.mxu1 %v7553_v0 }
 0xa7b   :  { %5966 = vmatpush3.bf16.msra.mxu1 %v8304_v21 }
 0xa7c   :  { %5967 = vmatprep.subr.bf16.mxu1 %v7553_v0 }
 0xa7f   :  { %5968 = vmatpush3.bf16.msra.mxu1 %v8309_v22 }
 0xa80   :  { %5969 = vmatprep.subr.bf16.mxu1 %v7553_v0 }
 0xa83   :  { %5970 = vmatpush3.bf16.msra.mxu1 %v8314_v23 }
 0xa84   :  { %5971 = vmatprep.subr.bf16.mxu1 %v7553_v0 }
 0xa87   :  { %5972 = vmatpush3.bf16.msra.mxu1 %v8319_v24 }
 0xa88   :  { %5973 = vmatprep.subr.bf16.mxu1 %v7553_v0 }
 0xa8b   :  { %5974 = vmatpush3.bf16.msra.mxu1 %v8324_v25  ;;  %v6634_v25 = vld [vmem:[%s9240_s7] sm:$0xff]  }
 0xa8c   :  { %5975 = vmatprep.subr.bf16.mxu1 %v7553_v0 }
 0xa8d   :  { %v2160_v20 = vpop.f32.mrb[44].mxu0 }
 0xa8e   :  { %v2161_v21 = vadd.f32 %v5180_v44, %v2160_v20  ;;  %v5909_v35 = vpop.f32.mrb[45].mxu0  ;;  %v8514_v20 = vld [vmem:[%s9242_s21 + $0x10] sm:$0xff]  }
 0xa8f   :  { %v2163_v22 = vpop.f32.mrb[46].mxu0  ;;  %5976 = vmatpush3.bf16.msra.mxu1 %v6632_v14  ;;  %v5215_v14 = vld [vmem:[#allocation6] ss:$0 sm:$0xff] }
 0xa90   :  { %v2206_v23 = vadd.f32 %v8332_v63, %v2161_v21  ;;  %v5910_v55 = vpop.f32.mrb[47].mxu0  ;;  %5977 = vmatprep.subr.bf16.mxu1 %v7553_v0  ;;  %v6640_v63 = vld [vmem:[%s9240_s7 + $0x30] sm:$0xff]   ;;  %v8519_v21 = vld [vmem:[%s9242_s21 + $0x18] sm:$0xff]   ;;  %v8524_v35 = vld [vmem:[%s9242_s21 + $0x20] sm:$0xff]  }
 0xa91   :  { %v8528_v22 = vld [vmem:[%s9242_s21 + $0x28] sm:$0xff]   ;;  %v8539_v55 = vld [vmem:[%s9242_s21 + $0x38] sm:$0xff]  }
 0xa92   :  { %v8419_v24 = vadd.f32 %v5194_v49, %v2206_v23  ;;  %v8533_v23 = vld [vmem:[%s9242_s21 + $0x30] sm:$0xff]  }
 0xa93   :  { %5978 = vmatpush3.bf16.msra.mxu1 %v6633_v36 }
 0xa94   :  { %v2433_v56 = vpack.c.bf16 %v8419_v24, %v8419_v24  ;;  %6003 = vmatprep.subr.bf16.mxu1 %v7553_v0 }
 0xa96   :  { %5980 = vmatmul.mubr.bf16.vlgmr.msra.gmra.mrb[48].mxu1 %v2433_v56 }
 0xa97   :  { %6004 = vmatpush3.bf16.msra.mxu1 %v6634_v25  ;;  %6019 = vmatprep.mubr.msk.bf16.mxu1 %vm7554_vm0, %v7553_v0 }
 0xa98   :  { %6005 = vmatprep.subr.bf16.mxu1 %v7553_v0 }
 0xa9b   :  { %6006 = vmatpush3.bf16.msra.mxu1 %v6635_v57 }
 0xa9c   :  { %6007 = vmatprep.subr.bf16.mxu1 %v7553_v0 }
 0xa9f   :  { %6008 = vmatpush3.bf16.msra.mxu1 %v6636_v58 }
 0xaa0   :  { %6009 = vmatprep.subr.bf16.mxu1 %v7553_v0 }
 0xaa3   :  { %6010 = vmatpush3.bf16.msra.mxu1 %v6637_v59 }
 0xaa4   :  { %6011 = vmatprep.subr.bf16.mxu1 %v7553_v0 }
 0xaa7   :  { %6012 = vmatpush3.bf16.msra.mxu1 %v6638_v60 }
 0xaa8   :  { %6013 = vmatprep.subr.bf16.mxu1 %v7553_v0 }
 0xaab   :  { %6014 = vmatpush3.bf16.msra.mxu1 %v6639_v62 }
 0xaac   :  { %6015 = vmatprep.subr.bf16.mxu1 %v7553_v0 }
 0xaaf   :  { %6016 = vmatpush3.bf16.msra.mxu1 %v6640_v63 }
 0xab0   :  { %6017 = vmatprep.subr.bf16.mxu1 %v7553_v0 }
 0xab3   :  { %6018 = vmatpush3.bf16.msra.mxu1 %v6641_v2 }
 0xab4   :  { %6043 = vmatprep.subr.bf16.mxu1 %v7553_v0 }
 0xab6   :  { %6020 = vmatmul.mubr.bf16.vlgmr.msra.gmra.mrb[52].mxu1 %v2208_v54  ;;  %v8509_v54 = vld [vmem:[%s9242_s21 + $0x8] sm:$0xff]  }
 0xab7   :  { %6044 = vmatpush3.bf16.msra.mxu1 %v6634_v25  ;;  %6059 = vmatprep.mubr.msk.bf16.mxu1 %vm7554_vm0, %v7553_v0  ;;  %v8544_v25 = vld [vmem:[%s9243_s29] sm:$0xff]  }
 0xab8   :  { %6045 = vmatprep.subr.bf16.mxu1 %v7553_v0 }
 0xabb   :  { %6046 = vmatpush3.bf16.msra.mxu1 %v6635_v57  ;;  %v8554_v57 = vld [vmem:[%s9243_s29 + $0x10] sm:$0xff]  }
 0xabc   :  { %6047 = vmatprep.subr.bf16.mxu1 %v7553_v0 }
 0xabf   :  { %6048 = vmatpush3.bf16.msra.mxu1 %v6636_v58  ;;  %v8559_v58 = vld [vmem:[%s9243_s29 + $0x18] sm:$0xff]  }
 0xac0   :  { %6049 = vmatprep.subr.bf16.mxu1 %v7553_v0 }
 0xac3   :  { %6050 = vmatpush3.bf16.msra.mxu1 %v6637_v59  ;;  %v8564_v59 = vld [vmem:[%s9243_s29 + $0x20] sm:$0xff]  }
 0xac4   :  { %6051 = vmatprep.subr.bf16.mxu1 %v7553_v0 }
 0xac7   :  { %6052 = vmatpush3.bf16.msra.mxu1 %v6638_v60  ;;  %v8568_v60 = vld [vmem:[%s9243_s29 + $0x28] sm:$0xff]  }
 0xac8   :  { %6053 = vmatprep.subr.bf16.mxu1 %v7553_v0 }
 0xacb   :  { %6054 = vmatpush3.bf16.msra.mxu1 %v6639_v62  ;;  %v8573_v62 = vld [vmem:[%s9243_s29 + $0x30] sm:$0xff]  }
 0xacc   :  { %6055 = vmatprep.subr.bf16.mxu1 %v7553_v0 }
 0xacf   :  { %6056 = vmatpush3.bf16.msra.mxu1 %v6640_v63 }
 0xad0   :  { %6057 = vmatprep.subr.bf16.mxu1 %v7553_v0 }
 0xad3   :  { %6058 = vmatpush3.bf16.msra.mxu1 %v6641_v2 }
 0xad4   :  { %6083 = vmatprep.subr.bf16.mxu1 %v7553_v0 }
 0xad6   :  { %6060 = vmatmul.mubr.bf16.vlgmr.msra.gmra.mrb[56].mxu1 %v2433_v56  ;;  %v8549_v56 = vld [vmem:[%s9243_s29 + $0x8] sm:$0xff]  }
 0xad7   :  { %6099 = vmatprep.mubr.msk.bf16.mxu1 %vm7554_vm0, %v7553_v0  ;;  %6084 = vmatpush3.bf16.msra.mxu1 %v8544_v25 }
 0xad8   :  { %6085 = vmatprep.subr.bf16.mxu1 %v7553_v0 }
 0xadb   :  { %6086 = vmatpush3.bf16.msra.mxu1 %v8549_v56 }
 0xadc   :  { %6087 = vmatprep.subr.bf16.mxu1 %v7553_v0 }
 0xadf   :  { %6088 = vmatpush3.bf16.msra.mxu1 %v8554_v57 }
 0xae0   :  { %6089 = vmatprep.subr.bf16.mxu1 %v7553_v0 }
 0xae3   :  { %6090 = vmatpush3.bf16.msra.mxu1 %v8559_v58 }
 0xae4   :  { %6091 = vmatprep.subr.bf16.mxu1 %v7553_v0 }
 0xae7   :  { %6092 = vmatpush3.bf16.msra.mxu1 %v8564_v59 }
 0xae8   :  { %6093 = vmatprep.subr.bf16.mxu1 %v7553_v0 }
 0xaeb   :  { %6094 = vmatpush3.bf16.msra.mxu1 %v8568_v60 }
 0xaec   :  { %6095 = vmatprep.subr.bf16.mxu1 %v7553_v0 }
 0xaef   :  { %6096 = vmatpush3.bf16.msra.mxu1 %v8573_v62 }
 0xaf0   :  { %6097 = vmatprep.subr.bf16.mxu1 %v7553_v0 }
 0xb49   :  { %v2314_v12 = vpop.f32.mrb[44].mxu1 }
 0xb4a   :  { %v2315_v6 = vadd.f32 %v5197_v4, %v2314_v12  ;;  %v5941_v7 = vpop.f32.mrb[45].mxu1 }
 0xb4b   :  { %v2317_v8 = vpop.f32.mrb[46].mxu1 }
 0xb4c   :  { %v2320_v18 = vmax.f32 %v2315_v6, 0.0  ;;  %v5942_v10 = vpop.f32.mrb[47].mxu1  ;;  %v5206_v6 = vld [vmem:[#allocation4] ss:$0 sm:$0xff] }
 0xb4e   :  { %v2321_v26 = vpack.c.bf16 %v2320_v18, %v2320_v18 }
 0xb50   :  { %5960 = vmatmul.mubr.bf16.vlgmr.msra.gmra.mrb[48].mxu0 %v2321_v26 }
 0xb51   :  { %5984 = vmatpush3.bf16.msra.mxu0 %v8362_v15  ;;  %5999 = vmatprep.mubr.msk.bf16.mxu0 %vm7554_vm0, %v7553_v0  ;;  %v6657_v15 = vld [vmem:[%s9241_s17 + $0x38] sm:$0xff]  }
 0xb52   :  { %5985 = vmatprep.subr.bf16.mxu0 %v7553_v0 }
 0xb55   :  { %5986 = vmatpush3.bf16.msra.mxu0 %v8366_v19 }
 0xb56   :  { %5987 = vmatprep.subr.bf16.mxu0 %v7553_v0 }
 0xb59   :  { %5988 = vmatpush3.bf16.msra.mxu0 %v8371_v39 }
 0xb5a   :  { %5989 = vmatprep.subr.bf16.mxu0 %v7553_v0 }
 0xb5d   :  { %5990 = vmatpush3.bf16.msra.mxu0 %v8376_v40 }
 0xb5e   :  { %5991 = vmatprep.subr.bf16.mxu0 %v7553_v0 }
 0xb61   :  { %5992 = vmatpush3.bf16.msra.mxu0 %v8381_v41 }
 0xb62   :  { %5993 = vmatprep.subr.bf16.mxu0 %v7553_v0 }
 0xb65   :  { %5994 = vmatpush3.bf16.msra.mxu0 %v8386_v42 }
 0xb66   :  { %5995 = vmatprep.subr.bf16.mxu0 %v7553_v0 }
 0xb69   :  { %v2468_v27 = vpop.f32.mrb[48].mxu1  ;;  %5996 = vmatpush3.bf16.msra.mxu0 %v8392_v45 }
 0xb6a   :  { %v2469_v28 = vadd.f32 %v5197_v4, %v2468_v27  ;;  %v5981_v29 = vpop.f32.mrb[49].mxu1  ;;  %5997 = vmatprep.subr.bf16.mxu0 %v7553_v0  ;;  %v8578_v4 = vld [vmem:[%s9243_s29 + $0x38] sm:$0xff]  }
 0xb6b   :  { %v2471_v30 = vpop.f32.mrb[50].mxu1  ;;  %6098 = vmatpush3.bf16.msra.mxu1 %v8578_v4 }
 0xb6c   :  { %v2474_v31 = vmax.f32 %v2469_v28, 0.0  ;;  %v5982_v32 = vpop.f32.mrb[51].mxu1  ;;  %6123 = vmatprep.subr.bf16.mxu1 %v7553_v0 }
 0xb6d   :  { %5998 = vmatpush3.bf16.msra.mxu0 %v6649_v3 }
 0xb6e   :  { %v2475_v34 = vpack.c.bf16 %v2474_v31, %v2474_v31  ;;  %6023 = vmatprep.subr.bf16.mxu0 %v7553_v0 }
 0xb70   :  { %6000 = vmatmul.mubr.bf16.vlgmr.msra.gmra.mrb[52].mxu0 %v2475_v34 }
 0xb71   :  { %6024 = vmatpush3.bf16.msra.mxu0 %v6650_v33  ;;  %6039 = vmatprep.mubr.msk.bf16.mxu0 %vm7554_vm0, %v7553_v0 }
 0xb72   :  { %6025 = vmatprep.subr.bf16.mxu0 %v7553_v0 }
 0xb75   :  { %6026 = vmatpush3.bf16.msra.mxu0 %v6651_v61 }
 0xb76   :  { %6027 = vmatprep.subr.bf16.mxu0 %v7553_v0 }
 0xb79   :  { %6028 = vmatpush3.bf16.msra.mxu0 %v6652_v43 }
 0xb7a   :  { %6029 = vmatprep.subr.bf16.mxu0 %v7553_v0 }
 0xb7d   :  { %6030 = vmatpush3.bf16.msra.mxu0 %v6653_v16 }
 0xb7e   :  { %6031 = vmatprep.subr.bf16.mxu0 %v7553_v0 }
 0xb81   :  { %6032 = vmatpush3.bf16.msra.mxu0 %v6654_v38 }
 0xb82   :  { %6033 = vmatprep.subr.bf16.mxu0 %v7553_v0 }
 0xb85   :  { %6034 = vmatpush3.bf16.msra.mxu0 %v6655_v11 }
 0xb86   :  { %6035 = vmatprep.subr.bf16.mxu0 %v7553_v0 }
 0xb89   :  { %v2634_v36 = vpop.f32.mrb[52].mxu1  ;;  %6036 = vmatpush3.bf16.msra.mxu0 %v6656_v13 }
 0xb8a   :  { %v2635_v19 = vadd.f32 %v5215_v14, %v2634_v36  ;;  %v6021_v39 = vpop.f32.mrb[53].mxu1  ;;  %6037 = vmatprep.subr.bf16.mxu0 %v7553_v0 }
 0xb8b   :  { %v2637_v40 = vpop.f32.mrb[54].mxu1 }
 0xb8c   :  { %v2640_v41 = vmax.f32 %v2635_v19, 0.0  ;;  %v6022_v42 = vpop.f32.mrb[55].mxu1  ;;  %v8587_v19 = vld [vmem:[%s9244_s10] sm:$0xff]   ;;  %v8591_v40 = vld [vmem:[%s9244_s10 + $0x8] sm:$0xff]  }
 0xb8d   :  { %6038 = vmatpush3.bf16.msra.mxu0 %v6657_v15  ;;  %v8603_v42 = vld [vmem:[%s9244_s10 + $0x18] sm:$0xff]  }
 0xb8e   :  { %v2641_v44 = vpack.c.bf16 %v2640_v41, %v2640_v41  ;;  %6063 = vmatprep.subr.bf16.mxu0 %v7553_v0  ;;  %v8598_v41 = vld [vmem:[%s9244_s10 + $0x10] sm:$0xff]  }
 0xb90   :  { %6040 = vmatmul.mubr.bf16.vlgmr.msra.gmra.mrb[56].mxu0 %v2641_v44  ;;  %v8608_v44 = vld [vmem:[%s9244_s10 + $0x20] sm:$0xff]  }
 0xb91   :  { %6064 = vmatpush3.bf16.msra.mxu0 %v6650_v33  ;;  %6079 = vmatprep.mubr.msk.bf16.mxu0 %vm7554_vm0, %v7553_v0 }
 0xb92   :  { %6065 = vmatprep.subr.bf16.mxu0 %v7553_v0 }
 0xb95   :  { %6066 = vmatpush3.bf16.msra.mxu0 %v6651_v61 }
 0xb96   :  { %6067 = vmatprep.subr.bf16.mxu0 %v7553_v0 }
 0xb99   :  { %6068 = vmatpush3.bf16.msra.mxu0 %v6652_v43 }
 0xb9a   :  { %6069 = vmatprep.subr.bf16.mxu0 %v7553_v0 }
 0xb9d   :  { %6070 = vmatpush3.bf16.msra.mxu0 %v6653_v16 }
 0xb9e   :  { %6071 = vmatprep.subr.bf16.mxu0 %v7553_v0 }
 0xba1   :  { %6072 = vmatpush3.bf16.msra.mxu0 %v6654_v38 }
 0xba2   :  { %6073 = vmatprep.subr.bf16.mxu0 %v7553_v0 }
 0xba5   :  { %6074 = vmatpush3.bf16.msra.mxu0 %v6655_v11 }
 0xba6   :  { %6075 = vmatprep.subr.bf16.mxu0 %v7553_v0 }
 0xba9   :  { %v2787_v45 = vpop.f32.mrb[56].mxu1  ;;  %6076 = vmatpush3.bf16.msra.mxu0 %v6656_v13 }
 0xbaa   :  { %v2788_v46 = vadd.f32 %v5215_v14, %v2787_v45  ;;  %v6061_v47 = vpop.f32.mrb[57].mxu1  ;;  %6077 = vmatprep.subr.bf16.mxu0 %v7553_v0  ;;  %v8613_v45 = vld [vmem:[%s9244_s10 + $0x28] sm:$0xff]  }
 0xbab   :  { %v2790_v48 = vpop.f32.mrb[58].mxu1  ;;  %v5224_v47 = vld [vmem:[#allocation7] ss:$0 sm:$0xff] }
 0xbac   :  { %v2793_v49 = vmax.f32 %v2788_v46, 0.0  ;;  %v6062_v50 = vpop.f32.mrb[59].mxu1  ;;  %v8618_v46 = vld [vmem:[%s9244_s10 + $0x30] sm:$0xff]  }
 0xbad   :  { %6078 = vmatpush3.bf16.msra.mxu0 %v6657_v15 }
 0xbae   :  { %v2794_v51 = vpack.c.bf16 %v2793_v49, %v2793_v49  ;;  %6103 = vmatprep.subr.bf16.mxu0 %v7553_v0 }
 0xbb0   :  { %6080 = vmatmul.mubr.bf16.vlgmr.msra.gmra.mrb[60].mxu0 %v2794_v51 }
 0xbb1   :  { %6119 = vmatprep.mubr.msk.bf16.mxu0 %vm7554_vm0, %v7553_v0  ;;  %6104 = vmatpush3.bf16.msra.mxu0 %v8504_v52 }
 0xbb2   :  { %6105 = vmatprep.subr.bf16.mxu0 %v7553_v0 }
 0xbb5   :  { %6106 = vmatpush3.bf16.msra.mxu0 %v8509_v54 }
 0xbb6   :  { %6107 = vmatprep.subr.bf16.mxu0 %v7553_v0 }
 0xbb9   :  { %6108 = vmatpush3.bf16.msra.mxu0 %v8514_v20 }
 0xbba   :  { %6109 = vmatprep.subr.bf16.mxu0 %v7553_v0 }
 0xbbd   :  { %6110 = vmatpush3.bf16.msra.mxu0 %v8519_v21 }
 0xbbe   :  { %6111 = vmatprep.subr.bf16.mxu0 %v7553_v0 }
 0xbc1   :  { %6112 = vmatpush3.bf16.msra.mxu0 %v8524_v35 }
 0xbc2   :  { %6113 = vmatprep.subr.bf16.mxu0 %v7553_v0 }
 0xbc5   :  { %6114 = vmatpush3.bf16.msra.mxu0 %v8528_v22 }
 0xbc6   :  { %6115 = vmatprep.subr.bf16.mxu0 %v7553_v0 }
 0xbc9   :  { %6116 = vmatpush3.bf16.msra.mxu0 %v8533_v23 }
 0xbca   :  { %6117 = vmatprep.subr.bf16.mxu0 %v7553_v0 }
 0xbcd   :  { %6118 = vmatpush3.bf16.msra.mxu0 %v8539_v55 }
 0xbce   :  { %6143 = vmatprep.subr.bf16.mxu0 %v7553_v0 }
 0xc23   :  { %v2427_v63 = vpop.f32.mrb[48].mxu0 }
 0xc24   :  { %v5961_v2 = vpop.f32.mrb[49].mxu0  ;;  %v2428_v8 = vadd.f32 %v5206_v6, %v2427_v63  ;;  %v8623_v63 = vld [vmem:[%s9244_s10 + $0x38] sm:$0xff]  }
 0xc25   :  { %v2430_v3 = vpop.f32.mrb[50].mxu0 }
 0xc26   :  { %v5962_v12 = vpop.f32.mrb[51].mxu0 }
 0xc43   :  { %v2510_v7 = vpop.f32.mrb[52].mxu0 }
 0xc44   :  { %v2511_v18 = vadd.f32 %v5206_v6, %v2510_v7  ;;  %v6001_v10 = vpop.f32.mrb[53].mxu0 }
 0xc45   :  { %v2513_v26 = vpop.f32.mrb[54].mxu0 }
 0xc46   :  { %v2516_v27 = vmax.f32 %v2428_v8, %v2511_v18  ;;  %v6002_v28 = vpop.f32.mrb[55].mxu0 }
 0xc48   :  { %v2517_v29 = vsub.f32 %v2428_v8, %v2516_v27  ;;  %v2520_v30 = vsub.f32 %v2511_v18, %v2516_v27 }
 0xc4a   :  { %v2518_v31 = vmul.f32 1.442695, %v2517_v29  ;;  %v2521_v32 = vmul.f32 1.442695, %v2520_v30  ;;  %v6686_v30 = vld [vmem:[%s9246_s11 + $0x10] sm:$0xff]  }
 0xc4c   :  { %6808 = vpow2.f32 %v2518_v31  ;;  %v6687_v31 = vld [vmem:[%s9246_s11 + $0x18] sm:$0xff]  }
 0xc4d   :  { %6810 = vpow2.f32 %v2521_v32 }
 0xc56   :  { %v6809_v33 = vpop.eup %6808 }
 0xc57   :  { %v6811_v34 = vpop.eup %6810 }
 0xc58   :  { %v2523_v61 = vadd.f32 %v6811_v34, %v6809_v33 }
 0xc5a   :  { %6812 = vrcp.f32 %v2523_v61 }
 0xc63   :  { %v2747_v43 = vpop.f32.mrb[56].mxu0 }
 0xc64   :  { %v6813_v16 = vpop.eup %6812  ;;  %v6041_v38 = vpop.f32.mrb[57].mxu0  ;;  %v2748_v49 = vadd.f32 %v5224_v47, %v2747_v43 }
 0xc65   :  { %v2750_v11 = vpop.f32.mrb[58].mxu0  ;;  %v2525_v13 = vmul.f32 %v6813_v16, %v6809_v33  ;;  %v8583_v14 = vmul.f32 %v6813_v16, %v6811_v34 }
 0xc66   :  { %v6042_v36 = vpop.f32.mrb[59].mxu0 }
 0xc67   :  { %v2526_v15 = vmul.f32 %v2525_v13, %v8399_v53  ;;  %v8680_v36 = vld [vmem:[#allocation28] ss:$0 sm:$0xff] }
 0xc69   :  { %v2848_v39 = vpack.c.bf16 %v2526_v15, %v2526_v15 }
 0xc6b   :  { %6120 = vmatmul.mubr.bf16.vlgmr.msra.gmra.mrb[64].mxu0 %v2848_v39 }
 0xc6c   :  { %6144 = vmatpush3.bf16.msra.mxu0 %v8587_v19  ;;  %6159 = vmatprep.mubr.msk.bf16.mxu0 %vm7554_vm0, %v7553_v0 }
 0xc6d   :  { %6145 = vmatprep.subr.bf16.mxu0 %v7553_v0 }
 0xc70   :  { %6146 = vmatpush3.bf16.msra.mxu0 %v8591_v40 }
 0xc71   :  { %6147 = vmatprep.subr.bf16.mxu0 %v7553_v0 }
 0xc74   :  { %6148 = vmatpush3.bf16.msra.mxu0 %v8598_v41 }
 0xc75   :  { %6149 = vmatprep.subr.bf16.mxu0 %v7553_v0 }
 0xc78   :  { %6150 = vmatpush3.bf16.msra.mxu0 %v8603_v42 }
 0xc79   :  { %6151 = vmatprep.subr.bf16.mxu0 %v7553_v0 }
 0xc7c   :  { %6152 = vmatpush3.bf16.msra.mxu0 %v8608_v44 }
 0xc7d   :  { %6153 = vmatprep.subr.bf16.mxu0 %v7553_v0 }
 0xc80   :  { %6154 = vmatpush3.bf16.msra.mxu0 %v8613_v45 }
 0xc81   :  { %6155 = vmatprep.subr.bf16.mxu0 %v7553_v0 }
 0xc83   :  { %v2829_v48 = vpop.f32.mrb[60].mxu0 }
 0xc84   :  { %6156 = vmatpush3.bf16.msra.mxu0 %v8618_v46  ;;  %v2830_v50 = vadd.f32 %v5224_v47, %v2829_v48  ;;  %v6081_v51 = vpop.f32.mrb[61].mxu0 }
 0xc85   :  { %v2832_v2 = vpop.f32.mrb[62].mxu0  ;;  %6157 = vmatprep.subr.bf16.mxu0 %v7553_v0 }
 0xc86   :  { %v2835_v3 = vmax.f32 %v2748_v49, %v2830_v50  ;;  %v6082_v12 = vpop.f32.mrb[63].mxu0 }
 0xc88   :  { %v2836_v6 = vsub.f32 %v2748_v49, %v2835_v3  ;;  %v2839_v7 = vsub.f32 %v2830_v50, %v2835_v3  ;;  %6158 = vmatpush3.bf16.msra.mxu0 %v8623_v63 }
 0xc89   :  { %6183 = vmatprep.subr.bf16.mxu0 %v7553_v0 }
 0xc8a   :  { %v2837_v8 = vmul.f32 1.442695, %v2836_v6  ;;  %v2840_v18 = vmul.f32 1.442695, %v2839_v7 }
 0xc8b   :  { %6160 = vmatmul.mubr.bf16.vlgmr.msra.gmra.mrb[68].mxu0 %v2848_v39 }
 0xc8c   :  { %6814 = vpow2.f32 %v2837_v8  ;;  %6184 = vmatpush3.bf16.msra.mxu0 %v8544_v25  ;;  %6199 = vmatprep.mubr.msk.bf16.mxu0 %vm7554_vm0, %v7553_v0 }
 0xc8d   :  { %6816 = vpow2.f32 %v2840_v18  ;;  %6185 = vmatprep.subr.bf16.mxu0 %v7553_v0 }
 0xc90   :  { %6186 = vmatpush3.bf16.msra.mxu0 %v8549_v56 }
 0xc91   :  { %6187 = vmatprep.subr.bf16.mxu0 %v7553_v0 }
 0xc94   :  { %6188 = vmatpush3.bf16.msra.mxu0 %v8554_v57 }
 0xc95   :  { %6189 = vmatprep.subr.bf16.mxu0 %v7553_v0 }
 0xc96   :  { %v6815_v10 = vpop.eup %6814 }
 0xc97   :  { %v6817_v26 = vpop.eup %6816 }
 0xc98   :  { %v2842_v27 = vadd.f32 %v6817_v26, %v6815_v10  ;;  %6190 = vmatpush3.bf16.msra.mxu0 %v8559_v58 }
 0xc99   :  { %6191 = vmatprep.subr.bf16.mxu0 %v7553_v0 }
 0xc9a   :  { %6818 = vrcp.f32 %v2842_v27 }
 0xc9c   :  { %6192 = vmatpush3.bf16.msra.mxu0 %v8564_v59  ;;  %v6682_v59 = vld [vmem:[%s9245_s6] sm:$0xff]  }
 0xc9d   :  { %6193 = vmatprep.subr.bf16.mxu0 %v7553_v0 }
 0xca0   :  { %6194 = vmatpush3.bf16.msra.mxu0 %v8568_v60 }
 0xca1   :  { %6195 = vmatprep.subr.bf16.mxu0 %v7553_v0 }
 0xca4   :  { %v6819_v25 = vpop.eup %6818  ;;  %6196 = vmatpush3.bf16.msra.mxu0 %v8573_v62  ;;  %v6683_v62 = vld [vmem:[%s9245_s6 + $0x8] sm:$0xff]  }
 0xca5   :  { %6197 = vmatprep.subr.bf16.mxu0 %v7553_v0  ;;  %v2844_v56 = vmul.f32 %v6819_v25, %v6815_v10  ;;  %v2846_v57 = vmul.f32 %v6819_v25, %v6817_v26 }
 0xca7   :  { %v2845_v58 = vmul.f32 %v2844_v56, %v8399_v53  ;;  %v2847_v28 = vmul.f32 %v2846_v57, %v8419_v24  ;;  %v6684_v53 = vld [vmem:[%s9246_s11] sm:$0xff]  }
 0xca8   :  { %6198 = vmatpush3.bf16.msra.mxu0 %v8578_v4  ;;  %v6685_v4 = vld [vmem:[%s9246_s11 + $0x8] sm:$0xff]  }
 0xca9   :  { %v8648_v29 = vpack.c.bf16 %v2845_v58, %v2845_v58  ;;  %v8650_v60 = vpack.c.bf16 %v2847_v28, %v2847_v28  ;;  %6223 = vmatprep.subr.bf16.mxu0 %v7553_v0 }
 0xcab   :  { %6100 = vmatmul.mubr.bf16.vlgmr.msra.gmra.mrb[60].mxu1 %v8648_v29  ;;  %6200 = vmatmul.mubr.bf16.vlgmr.msra.gmra.mrb[72].mxu0 %v8650_v60 }
 0xcac   :  { %6124 = vmatpush3.bf16.msra.mxu1 %v6682_v59  ;;  %6127 = vmatprep.mubr.msk.bf16.mxu1 %vm7554_vm0, %v7553_v0 }
 0xcad   :  { %6125 = vmatprep.subr.bf16.mxu1 %v7553_v0  ;;  %6231 = vmatprep.mubr.msk.bf16.mxu0 %vm7554_vm0, %v7553_v0 }
 0xcae   :  { %6224 = vmatpush3.bf16.msra.mxu0 %v6684_v53 }
 0xcaf   :  { %6225 = vmatprep.subr.bf16.mxu0 %v7553_v0 }
 0xcb0   :  { %6126 = vmatpush3.bf16.msra.mxu1 %v6683_v62 }
 0xcb1   :  { %6131 = vmatprep.subr.bf16.mxu1 %v7553_v0 }
 0xcb2   :  { %6226 = vmatpush3.bf16.msra.mxu0 %v6685_v4 }
 0xcb3   :  { %6128 = vmatmul.mubr.msk.bf16.vlgmr.msra.gmra.mrb[64].mxu1 %vm584_vm1, %v8060_v17  ;;  %6227 = vmatprep.subr.bf16.mxu0 %v7553_v0 }
 0xcb4   :  { %6139 = vmatprep.mubr.msk.bf16.mxu1 %vm7554_vm0, %v7553_v0  ;;  %6132 = vmatpush3.bf16.msra.mxu1 %v6684_v53 }
 0xcb5   :  { %6133 = vmatprep.subr.bf16.mxu1 %v7553_v0 }
 0xcb6   :  { %6228 = vmatpush3.bf16.msra.mxu0 %v6686_v30 }
 0xcb7   :  { %6229 = vmatprep.subr.bf16.mxu0 %v7553_v0 }
 0xcb8   :  { %6134 = vmatpush3.bf16.msra.mxu1 %v6685_v4 }
 0xcb9   :  { %6135 = vmatprep.subr.bf16.mxu1 %v7553_v0 }
 0xcba   :  { %6230 = vmatpush3.bf16.msra.mxu0 %v6687_v31 }
 0xcbb   :  { %6255 = vmatprep.subr.bf16.mxu0 %v7553_v0 }
 0xcbc   :  { %6136 = vmatpush3.bf16.msra.mxu1 %v6686_v30 }
 0xcbd   :  { %6137 = vmatprep.subr.bf16.mxu1 %v7553_v0 }
 0xcc0   :  { %6138 = vmatpush3.bf16.msra.mxu1 %v6687_v31 }
 0xcc1   :  { %6163 = vmatprep.subr.bf16.mxu1 %v7553_v0 }
 0xd3e   :  { %v3052_v32 = vpop.f32.mrb[64].mxu0 }
 0xd3f   :  { %v6121_v33 = vpop.f32.mrb[65].mxu0 }
 0xd40   :  { %v3055_v34 = vpop.f32.mrb[66].mxu0  ;;  %v8687_v33 = vld [vmem:[#allocation33] ss:$0 sm:$0xff] }
 0xd41   :  { %v6122_v61 = vpop.f32.mrb[67].mxu0 }
 0xd5e   :  { %v8678_v43 = vpop.f32.mrb[68].mxu0 }
 0xd5f   :  { %v6161_v16 = vpop.f32.mrb[69].mxu0 }
 0xd60   :  { %v3349_v38 = vpop.f32.mrb[70].mxu0  ;;  %v8692_v16 = vld [vmem:[%s9247_s15] sm:$0xff]  }
 0xd61   :  { %v6162_v11 = vpop.f32.mrb[71].mxu0 }
 0xd62   :  { %v8697_v11 = vld [vmem:[%s9247_s15 + $0x8] sm:$0xff]  }
 0xd7e   :  { %v2964_v13 = vpop.f32.mrb[60].mxu1  ;;  %v8682_v15 = vpop.f32.mrb[72].mxu0 }
 0xd7f   :  { %v3053_v39 = vadd.f32 %v3052_v32, %v2964_v13  ;;  %v6101_v47 = vpop.f32.mrb[61].mxu1  ;;  %v6201_v48 = vpop.f32.mrb[73].mxu0  ;;  %v8704_v13 = vld [vmem:[%s9247_s15 + $0x10] sm:$0xff]  }
 0xd80   :  { %v2967_v49 = vpop.f32.mrb[62].mxu1  ;;  %v3505_v50 = vpop.f32.mrb[74].mxu0  ;;  %v8714_v47 = vld [vmem:[%s9247_s15 + $0x20] sm:$0xff]   ;;  %v8719_v48 = vld [vmem:[%s9247_s15 + $0x28] sm:$0xff]  }
 0xd81   :  { %v3065_v51 = vadd.f32 %v8680_v36, %v3053_v39  ;;  %v6102_v2 = vpop.f32.mrb[63].mxu1  ;;  %v6202_v3 = vpop.f32.mrb[75].mxu0  ;;  %v8709_v39 = vld [vmem:[%s9247_s15 + $0x18] sm:$0xff]   ;;  %v8724_v49 = vld [vmem:[%s9247_s15 + $0x30] sm:$0xff]  }
 0xd82   :  { %v8729_v50 = vld [vmem:[%s9247_s15 + $0x38] sm:$0xff]  }
 0xd83   :  { %v3067_v12 = vand.u32 2147483647, %v3065_v51  ;;  %v3066_v53 = vmax.f32 %v3065_v51, 0.0 }
 0xd85   :  { %v3068_v6 = vsub.f32 0.0, %v3067_v12 }
 0xd86   :  { %v8685_v7 = vpop.f32.mrb[64].mxu1 }
 0xd87   :  { %v3069_v8 = vmul.f32 1.442695, %v3068_v6  ;;  %v6129_v18 = vpop.f32.mrb[65].mxu1 }
 0xd88   :  { %v3136_v10 = vpop.f32.mrb[66].mxu1 }
 0xd89   :  { %6820 = vpow2.f32 %v3069_v8  ;;  %v6130_v26 = vpop.f32.mrb[67].mxu1 }
 0xd93   :  { %v6821_v27 = vpop.eup %6820 }
 0xd94   :  { %v3071_v25 = vadd.f32 1.0, %v6821_v27  ;;  %v3074_v56 = vmul.f32 -0.5, %v6821_v27  ;;  %v3077_v58 = vand.u32 2147483647, %v6821_v27 }
 0xd96   :  { %6822 = vlog2.f32 %v3071_v25  ;;  %v3075_v57 = vadd.f32 1.0, %v3074_v56  ;;  %vm3078_vm3 = vcmp.lt.f32.partialorder %v3077_v58, 0.0004427343 }
 0xd98   :  { %v3076_v62 = vmul.f32 %v6821_v27, %v3075_v57 }
 0xda0   :  { %v6823_v28 = vpop.eup %6822 }
 0xda1   :  { %v3073_v59 = vmul.f32 0.6931472, %v6823_v28 }
 0xda3   :  { %v3079_v4 = vsel %vm3078_vm3, %v3076_v62, %v3073_v59 }
 0xda4   :  { %v3080_v30 = vadd.f32 %v3079_v4, %v3066_v53 }
 0xda6   :  { %6824 = vtanh.f32 %v3080_v30 }
 0xdb0   :  { %v6825_v31 = vpop.eup %6824 }
 0xdb1   :  { %v3082_v32 = vmul.f32 %v6825_v31, %v3065_v51 }
 0xdb3   :  { %v3139_v34 = vadd.f32 %v8685_v7, %v3082_v32 }
 0xdb5   :  { %v3147_v61 = vadd.f32 %v8687_v33, %v3139_v34 }
 0xdb7   :  { %v3148_v38 = vpack.c.bf16 %v3147_v61, %v3147_v61 }
 0xdb9   :  { %6140 = vmatmul.mubr.msk.bf16.vlgmr.msra.gmra.mrb[68].mxu1 %vm1412_vm12, %v3148_v38 }
 0xdba   :  { %6164 = vmatpush3.bf16.msra.mxu1 %v8692_v16  ;;  %6179 = vmatprep.mubr.msk.bf16.mxu1 %vm7554_vm0, %v7553_v0 }
 0xdbb   :  { %6165 = vmatprep.subr.bf16.mxu1 %v7553_v0 }
 0xdbe   :  { %6166 = vmatpush3.bf16.msra.mxu1 %v8697_v11 }
 0xdbf   :  { %6167 = vmatprep.subr.bf16.mxu1 %v7553_v0 }
 0xdc2   :  { %6168 = vmatpush3.bf16.msra.mxu1 %v8704_v13 }
 0xdc3   :  { %6169 = vmatprep.subr.bf16.mxu1 %v7553_v0 }
 0xdc6   :  { %6170 = vmatpush3.bf16.msra.mxu1 %v8709_v39 }
 0xdc7   :  { %6171 = vmatprep.subr.bf16.mxu1 %v7553_v0 }
 0xdca   :  { %6172 = vmatpush3.bf16.msra.mxu1 %v8714_v47 }
 0xdcb   :  { %6173 = vmatprep.subr.bf16.mxu1 %v7553_v0 }
 0xdce   :  { %6174 = vmatpush3.bf16.msra.mxu1 %v8719_v48 }
 0xdcf   :  { %6175 = vmatprep.subr.bf16.mxu1 %v7553_v0 }
 0xdd2   :  { %6176 = vmatpush3.bf16.msra.mxu1 %v8724_v49 }
 0xdd3   :  { %6177 = vmatprep.subr.bf16.mxu1 %v7553_v0 }
 0xdd6   :  { %6178 = vmatpush3.bf16.msra.mxu1 %v8729_v50 }
 0xdd7   :  { %6203 = vmatprep.subr.bf16.mxu1 %v7553_v0 }
 0xdd9   :  { %6180 = vmatmul.mubr.bf16.vlgmr.msra.gmra.mrb[72].mxu1 %v8648_v29 }
 0xdda   :  { %6204 = vmatpush3.bf16.msra.mxu1 %v8504_v52  ;;  %6219 = vmatprep.mubr.msk.bf16.mxu1 %vm7554_vm0, %v7553_v0  ;;  %v2528_v52 = vmul.f32 %v8583_v14, %v8419_v24  ;;  %v6696_v24 = vld [vmem:[%s9248_s16] sm:$0xff]   ;;  %v8821_v14 = vld [vmem:[%s9249_s5 + $0x28] sm:$0xff]  }
 0xddb   :  { %6205 = vmatprep.subr.bf16.mxu1 %v7553_v0 }
 0xdde   :  { %6206 = vmatpush3.bf16.msra.mxu1 %v8509_v54  ;;  %v3466_v54 = vpack.c.bf16 %v2528_v52, %v2528_v52 }
 0xddf   :  { %6207 = vmatprep.subr.bf16.mxu1 %v7553_v0 }
 0xde2   :  { %6208 = vmatpush3.bf16.msra.mxu1 %v8514_v20  ;;  %v6697_v20 = vld [vmem:[%s9248_s16 + $0x8] sm:$0xff]  }
 0xde3   :  { %6209 = vmatprep.subr.bf16.mxu1 %v7553_v0 }
 0xde6   :  { %6210 = vmatpush3.bf16.msra.mxu1 %v8519_v21  ;;  %v6698_v21 = vld [vmem:[%s9248_s16 + $0x10] sm:$0xff]  }
 0xde7   :  { %6211 = vmatprep.subr.bf16.mxu1 %v7553_v0 }
 0xdea   :  { %6212 = vmatpush3.bf16.msra.mxu1 %v8524_v35  ;;  %v6699_v35 = vld [vmem:[%s9248_s16 + $0x18] sm:$0xff]  }
 0xdeb   :  { %6213 = vmatprep.subr.bf16.mxu1 %v7553_v0 }
 0xdee   :  { %6214 = vmatpush3.bf16.msra.mxu1 %v8528_v22  ;;  %v8801_v22 = vld [vmem:[%s9249_s5 + $0x8] sm:$0xff]  }
 0xdef   :  { %6215 = vmatprep.subr.bf16.mxu1 %v7553_v0 }
 0xdf2   :  { %6216 = vmatpush3.bf16.msra.mxu1 %v8533_v23  ;;  %v8806_v23 = vld [vmem:[%s9249_s5 + $0x10] sm:$0xff]  }
 0xdf3   :  { %6217 = vmatprep.subr.bf16.mxu1 %v7553_v0 }
 0xdf6   :  { %6218 = vmatpush3.bf16.msra.mxu1 %v8539_v55  ;;  %v8816_v55 = vld [vmem:[%s9249_s5 + $0x20] sm:$0xff]  }
 0xdf7   :  { %6235 = vmatprep.subr.bf16.mxu1 %v7553_v0 }
 0xdf9   :  { %6220 = vmatmul.mubr.bf16.vlgmr.msra.gmra.mrb[76].mxu1 %v3466_v54 }
 0xdfa   :  { %6236 = vmatpush3.bf16.msra.mxu1 %v8587_v19  ;;  %6251 = vmatprep.mubr.msk.bf16.mxu1 %vm7554_vm0, %v7553_v0  ;;  %v8825_v19 = vld [vmem:[#allocation30] ss:$0 sm:$0xff] }
 0xdfb   :  { %6237 = vmatprep.subr.bf16.mxu1 %v7553_v0 }
 0xdfe   :  { %6238 = vmatpush3.bf16.msra.mxu1 %v8591_v40  ;;  %v8828_v40 = vld [vmem:[%s9249_s5 + $0x30] sm:$0xff]  }
 0xdff   :  { %6239 = vmatprep.subr.bf16.mxu1 %v7553_v0 }
 0xe02   :  { %6240 = vmatpush3.bf16.msra.mxu1 %v8598_v41 }
 0xe03   :  { %6241 = vmatprep.subr.bf16.mxu1 %v7553_v0 }
 0xe06   :  { %6242 = vmatpush3.bf16.msra.mxu1 %v8603_v42 }
 0xe07   :  { %6243 = vmatprep.subr.bf16.mxu1 %v7553_v0 }
 0xe0a   :  { %6244 = vmatpush3.bf16.msra.mxu1 %v8608_v44 }
 0xe0b   :  { %6245 = vmatprep.subr.bf16.mxu1 %v7553_v0 }
 0xe0e   :  { %6246 = vmatpush3.bf16.msra.mxu1 %v8613_v45 }
 0xe0f   :  { %6247 = vmatprep.subr.bf16.mxu1 %v7553_v0 }
 0xe12   :  { %6248 = vmatpush3.bf16.msra.mxu1 %v8618_v46  ;;  %v8834_v46 = vld [vmem:[%s9249_s5 + $0x38] sm:$0xff]  }
 0xe13   :  { %6249 = vmatprep.subr.bf16.mxu1 %v7553_v0 }
 0xe16   :  { %6250 = vmatpush3.bf16.msra.mxu1 %v8623_v63 }
 0xe17   :  { %6275 = vmatprep.subr.bf16.mxu1 %v7553_v0 }
 0xe19   :  { %6252 = vmatmul.mubr.bf16.vlgmr.msra.gmra.mrb[80].mxu1 %v3466_v54 }
 0xe1a   :  { %6276 = vmatpush3.bf16.msra.mxu1 %v6696_v24  ;;  %6283 = vmatprep.mubr.msk.bf16.mxu1 %vm7554_vm0, %v7553_v0 }
 0xe1b   :  { %6277 = vmatprep.subr.bf16.mxu1 %v7553_v0 }
 0xe1e   :  { %6278 = vmatpush3.bf16.msra.mxu1 %v6697_v20 }
 0xe1f   :  { %6279 = vmatprep.subr.bf16.mxu1 %v7553_v0 }
 0xe22   :  { %6280 = vmatpush3.bf16.msra.mxu1 %v6698_v21 }
 0xe23   :  { %6281 = vmatprep.subr.bf16.mxu1 %v7553_v0 }
 0xe26   :  { %6282 = vmatpush3.bf16.msra.mxu1 %v6699_v35 }
 0xe27   :  { %6307 = vmatprep.subr.bf16.mxu1 %v7553_v0 }
 0xe29   :  { %6284 = vmatmul.mubr.msk.bf16.vlgmr.msra.gmra.mrb[84].mxu1 %vm1412_vm12, %v8215_v5  ;;  %v8796_v5 = vld [vmem:[%s9249_s5] sm:$0xff]  }
 0xe2a   :  { %6308 = vmatpush3.bf16.msra.mxu1 %v6696_v24  ;;  %6315 = vmatprep.mubr.msk.bf16.mxu1 %vm7554_vm0, %v7553_v0 }
 0xe2b   :  { %6309 = vmatprep.subr.bf16.mxu1 %v7553_v0 }
 0xe2e   :  { %6310 = vmatpush3.bf16.msra.mxu1 %v6697_v20 }
 0xe2f   :  { %6311 = vmatprep.subr.bf16.mxu1 %v7553_v0 }
 0xe32   :  { %6312 = vmatpush3.bf16.msra.mxu1 %v6698_v21 }
 0xe33   :  { %6313 = vmatprep.subr.bf16.mxu1 %v7553_v0 }
 0xe36   :  { %6314 = vmatpush3.bf16.msra.mxu1 %v6699_v35 }
 0xe37   :  { %6319 = vmatprep.subr.bf16.mxu1 %v7553_v0 }
 0xe39   :  { %6316 = vmatmul.mubr.msk.bf16.vlgmr.msra.gmra.mrb[88].mxu1 %vm1412_vm12, %v8244_v9  ;;  %v8811_v9 = vld [vmem:[%s9249_s5 + $0x18] sm:$0xff]  }
 0xe3a   :  { %6335 = vmatprep.mubr.msk.bf16.mxu1 %vm7554_vm0, %v7553_v0  ;;  %6320 = vmatpush3.bf16.msra.mxu1 %v8796_v5 }
 0xe3b   :  { %6321 = vmatprep.subr.bf16.mxu1 %v7553_v0 }
 0xe3e   :  { %6322 = vmatpush3.bf16.msra.mxu1 %v8801_v22 }
 0xe3f   :  { %6323 = vmatprep.subr.bf16.mxu1 %v7553_v0 }
 0xe42   :  { %6324 = vmatpush3.bf16.msra.mxu1 %v8806_v23 }
 0xe43   :  { %6325 = vmatprep.subr.bf16.mxu1 %v7553_v0 }
 0xe46   :  { %6326 = vmatpush3.bf16.msra.mxu1 %v8811_v9 }
 0xe47   :  { %6327 = vmatprep.subr.bf16.mxu1 %v7553_v0 }
 0xe4a   :  { %6328 = vmatpush3.bf16.msra.mxu1 %v8816_v55 }
 0xe4b   :  { %6329 = vmatprep.subr.bf16.mxu1 %v7553_v0 }
 0xe4e   :  { %6330 = vmatpush3.bf16.msra.mxu1 %v8821_v14 }
 0xe4f   :  { %6331 = vmatprep.subr.bf16.mxu1 %v7553_v0 }
 0xe52   :  { %6332 = vmatpush3.bf16.msra.mxu1 %v8828_v40 }
 0xe53   :  { %6333 = vmatprep.subr.bf16.mxu1 %v7553_v0 }
 0xe56   :  { %6334 = vmatpush3.bf16.msra.mxu1 %v8834_v46 }
 0xe57   :  { %6363 = vmatprep.subr.bf16.mxu1 %v7553_v0 }
 0xe8c   :  { %v3225_v41 = vpop.f32.mrb[68].mxu1 }
 0xe8d   :  { %v3226_v42 = vadd.f32 %v8825_v19, %v3225_v41  ;;  %v6141_v44 = vpop.f32.mrb[69].mxu1 }
 0xe8e   :  { %v3228_v45 = vpop.f32.mrb[70].mxu1 }
 0xe8f   :  { %v3232_v63 = vand.u32 2147483647, %v3226_v42  ;;  %v6142_v29 = vpop.f32.mrb[71].mxu1  ;;  %v3231_v57 = vmax.f32 %v3226_v42, 0.0 }
 0xe91   :  { %v3233_v51 = vsub.f32 0.0, %v3232_v63 }
 0xe93   :  { %v3234_v2 = vmul.f32 1.442695, %v3233_v51 }
 0xe95   :  { %6826 = vpow2.f32 %v3234_v2 }
 0xe9f   :  { %v6827_v3 = vpop.eup %6826 }
 0xea0   :  { %v3236_v12 = vadd.f32 1.0, %v6827_v3  ;;  %v3239_v6 = vmul.f32 -0.5, %v6827_v3  ;;  %v3242_v18 = vand.u32 2147483647, %v6827_v3 }
 0xea2   :  { %6828 = vlog2.f32 %v3236_v12  ;;  %v3240_v8 = vadd.f32 1.0, %v3239_v6  ;;  %vm3243_vm4 = vcmp.lt.f32.partialorder %v3242_v18, 0.0004427343 }
 0xea4   :  { %v3241_v25 = vmul.f32 %v6827_v3, %v3240_v8 }
 0xeac   :  { %v6829_v10 = vpop.eup %6828  ;;  %v3451_v26 = vpop.f32.mrb[72].mxu1 }
 0xead   :  { %v3238_v27 = vmul.f32 0.6931472, %v6829_v10  ;;  %v6181_v56 = vpop.f32.mrb[73].mxu1 }
 0xeae   :  { %v3454_v58 = vpop.f32.mrb[74].mxu1 }
 0xeaf   :  { %v3244_v28 = vsel %vm3243_vm4, %v3241_v25, %v3238_v27  ;;  %v6182_v59 = vpop.f32.mrb[75].mxu1 }
 0xeb0   :  { %v3245_v62 = vadd.f32 %v3244_v28, %v3231_v57  ;;  %v5278_v28 = vld [vmem:[#allocation9] ss:$0 sm:$0xff] }
 0xeb2   :  { %6830 = vtanh.f32 %v3245_v62 }
 0xebc   :  { %v6831_v53 = vpop.eup %6830 }
 0xebd   :  { %v3247_v4 = vmul.f32 %v6831_v53, %v3226_v42 }
 0xebf   :  { %v3352_v30 = vadd.f32 %v8678_v43, %v3247_v4 }
 0xec1   :  { %v8839_v31 = vadd.f32 %v3451_v26, %v3352_v30 }
 0xecc   :  { %v3542_v32 = vpop.f32.mrb[76].mxu1 }
 0xecd   :  { %v3543_v34 = vadd.f32 %v3542_v32, %v8682_v15  ;;  %v6221_v61 = vpop.f32.mrb[77].mxu1 }
 0xece   :  { %v3545_v38 = vpop.f32.mrb[78].mxu1 }
 0xecf   :  { %v3548_v52 = vadd.f32 %v8680_v36, %v3543_v34  ;;  %v6222_v54 = vpop.f32.mrb[79].mxu1 }
 0xed1   :  { %v3550_v24 = vand.u32 2147483647, %v3548_v52  ;;  %v3549_v36 = vmax.f32 %v3548_v52, 0.0 }
 0xed3   :  { %v3551_v20 = vsub.f32 0.0, %v3550_v24 }
 0xed5   :  { %v3552_v21 = vmul.f32 1.442695, %v3551_v20 }
 0xed7   :  { %6832 = vpow2.f32 %v3552_v21 }
 0xee1   :  { %v6833_v35 = vpop.eup %6832 }
 0xee2   :  { %v3554_v41 = vadd.f32 1.0, %v6833_v35  ;;  %v3557_v42 = vmul.f32 -0.5, %v6833_v35  ;;  %v3560_v43 = vand.u32 2147483647, %v6833_v35 }
 0xee4   :  { %6834 = vlog2.f32 %v3554_v41  ;;  %v3558_v44 = vadd.f32 1.0, %v3557_v42  ;;  %vm3561_vm5 = vcmp.lt.f32.partialorder %v3560_v43, 0.0004427343 }
 0xee6   :  { %v3559_v2 = vmul.f32 %v6833_v35, %v3558_v44 }
 0xeec   :  { %v8843_v45 = vpop.f32.mrb[80].mxu1 }
 0xeed   :  { %v6253_v63 = vpop.f32.mrb[81].mxu1 }
 0xeee   :  { %v6835_v29 = vpop.eup %6834  ;;  %v3666_v15 = vpop.f32.mrb[82].mxu1 }
 0xeef   :  { %v3556_v51 = vmul.f32 0.6931472, %v6835_v29  ;;  %v6254_v3 = vpop.f32.mrb[83].mxu1 }
 0xef1   :  { %v3562_v12 = vsel %vm3561_vm5, %v3559_v2, %v3556_v51 }
 0xef2   :  { %v3563_v6 = vadd.f32 %v3562_v12, %v3549_v36 }
 0xef4   :  { %6836 = vtanh.f32 %v3563_v6 }
 0xefc   :  { %v8845_v8 = vpop.f32.mrb[84].mxu1 }
 0xefd   :  { %v6285_v18 = vpop.f32.mrb[85].mxu1 }
 0xefe   :  { %v6837_v10 = vpop.eup %6836  ;;  %v3788_v26 = vpop.f32.mrb[86].mxu1 }
 0xeff   :  { %v3565_v27 = vmul.f32 %v6837_v10, %v3548_v52  ;;  %v6286_v25 = vpop.f32.mrb[87].mxu1 }
 0xf01   :  { %v3566_v56 = vadd.f32 %v3565_v27, %v8685_v7 }
 0xf03   :  { %v3567_v57 = vadd.f32 %v8687_v33, %v3566_v56 }
 0xf05   :  { %v3568_v58 = vpack.c.bf16 %v3567_v57, %v3567_v57 }
 0xf07   :  { %6232 = vmatmul.mubr.msk.bf16.vlgmr.msra.gmra.mrb[76].mxu0 %vm1412_vm12, %v3568_v58 }
 0xf08   :  { %6256 = vmatpush3.bf16.msra.mxu0 %v8692_v16  ;;  %6271 = vmatprep.mubr.msk.bf16.mxu0 %vm7554_vm0, %v7553_v0  ;;  %v6708_v16 = vld [vmem:[%s7888_s30] sm:$0xff]  }
 0xf09   :  { %6257 = vmatprep.subr.bf16.mxu0 %v7553_v0 }
 0xf0c   :  { %6258 = vmatpush3.bf16.msra.mxu0 %v8697_v11  ;;  %v3938_v59 = vpop.f32.mrb[88].mxu1  ;;  %v6709_v11 = vld [vmem:[%s7888_s30 + $0x8] sm:$0xff]   ;;  %s9250_s30 = sld [smem:[#allocation99_spill]] }
 0xf0d   :  { %v3939_v62 = vadd.f32 %v5278_v28, %v3938_v59  ;;  %v6317_v7 = vpop.f32.mrb[89].mxu1  ;;  %6259 = vmatprep.subr.bf16.mxu0 %v7553_v0 }
 0xf0e   :  { %v3941_v33 = vpop.f32.mrb[90].mxu1  ;;  %v5284_v7 = vld [vmem:[#allocation10] ss:$0 sm:$0xff] }
 0xf0f   :  { %v3944_v53 = vmax.f32 %v3939_v62, 0.0  ;;  %v6318_v4 = vpop.f32.mrb[91].mxu1 }
 0xf10   :  { %6260 = vmatpush3.bf16.msra.mxu0 %v8704_v13  ;;  %v8867_v13 = vld [vmem:[%s7883_s12] sm:$0xff]  }
 0xf11   :  { %v3945_v30 = vpack.c.bf16 %v3944_v53, %v3944_v53  ;;  %6261 = vmatprep.subr.bf16.mxu0 %v7553_v0 }
 0xf13   :  { %6336 = vmatmul.mubr.bf16.vlgmr.msra.gmra.mrb[92].mxu1 %v3945_v30 }
 0xf14   :  { %6262 = vmatpush3.bf16.msra.mxu0 %v8709_v39  ;;  %6364 = vmatpush3.bf16.msra.mxu1 %v6708_v16  ;;  %v8876_v39 = vld [vmem:[%s7883_s12 + $0x8] sm:$0xff]  }
 0xf15   :  { %6263 = vmatprep.subr.bf16.mxu0 %v7553_v0  ;;  %6365 = vmatprep.subr.bf16.mxu1 %v7553_v0 }
 0xf16   :  { %6367 = vmatprep.mubr.msk.bf16.mxu1 %vm7554_vm0, %v7553_v0 }
 0xf18   :  { %6264 = vmatpush3.bf16.msra.mxu0 %v8714_v47  ;;  %6366 = vmatpush3.bf16.msra.mxu1 %v6709_v11  ;;  %v8885_v47 = vld [vmem:[%s7883_s12 + $0x10] sm:$0xff]  }
 0xf19   :  { %6265 = vmatprep.subr.bf16.mxu0 %v7553_v0  ;;  %6379 = vmatprep.subr.bf16.mxu1 %v7553_v0 }
 0xf1b   :  { %6368 = vmatmul.mubr.msk.bf16.vlgmr.msra.gmra.mrb[96].mxu1 %vm584_vm1, %v8060_v17  ;;  %v8889_v17 = vld [vmem:[#allocation31] ss:$0 sm:$0xff] }
 0xf1c   :  { %6266 = vmatpush3.bf16.msra.mxu0 %v8719_v48  ;;  %6380 = vmatpush3.bf16.msra.mxu1 %v8867_v13  ;;  %v8894_v48 = vld [vmem:[%s7883_s12 + $0x18] sm:$0xff]   ;;  %v3465_v32 = vadd.f32 %v8889_v17, %v8839_v31  ;;  %s9251_s12 = sld [smem:[#allocation100_spill]] }
 0xf1d   :  { %6267 = vmatprep.subr.bf16.mxu0 %v7553_v0  ;;  %6381 = vmatprep.subr.bf16.mxu1 %v7553_v0 }
 0xf1e   :  { %6387 = vmatprep.mubr.msk.bf16.mxu1 %vm7554_vm0, %v7553_v0 }
 0xf20   :  { %6268 = vmatpush3.bf16.msra.mxu0 %v8724_v49  ;;  %6382 = vmatpush3.bf16.msra.mxu1 %v8876_v39  ;;  %v8903_v49 = vpack.c.bf16 %v3465_v32, %v3465_v32 }
 0xf21   :  { %6269 = vmatprep.subr.bf16.mxu0 %v7553_v0  ;;  %6383 = vmatprep.subr.bf16.mxu1 %v7553_v0 }
 0xf24   :  { %6270 = vmatpush3.bf16.msra.mxu0 %v8729_v50  ;;  %6384 = vmatpush3.bf16.msra.mxu1 %v8885_v47 }
 0xf25   :  { %6287 = vmatprep.subr.bf16.mxu0 %v7553_v0  ;;  %6385 = vmatprep.subr.bf16.mxu1 %v7553_v0 }
 0xf27   :  { %6272 = vmatmul.mubr.bf16.vlgmr.msra.gmra.mrb[80].mxu0 %v8650_v60  ;;  %v3786_v60 = vadd.f32 %v5278_v28, %v8845_v8 }
 0xf28   :  { %6288 = vmatpush3.bf16.msra.mxu0 %v8796_v5  ;;  %6386 = vmatpush3.bf16.msra.mxu1 %v8894_v48 }
 0xf29   :  { %6289 = vmatprep.subr.bf16.mxu0 %v7553_v0  ;;  %6303 = vmatprep.mubr.msk.bf16.mxu0 %vm7554_vm0, %v7553_v0  ;;  %v3791_v50 = vmax.f32 %v3786_v60, 0.0 }
 0xf2a   :  { %6403 = vmatprep.subr.bf16.mxu1 %v7553_v0 }
 0xf2b   :  { %6388 = vmatmul.mubr.msk.bf16.vlgmr.msra.gmra.mrb[100].mxu1 %vm1412_vm12, %v8903_v49  ;;  %v3792_v5 = vpack.c.bf16 %v3791_v50, %v3791_v50 }
 0xf2c   :  { %6290 = vmatpush3.bf16.msra.mxu0 %v8801_v22  ;;  %6411 = vmatprep.mubr.msk.bf16.mxu1 %vm7554_vm0, %v7553_v0  ;;  %v6714_v22 = vld [vmem:[%s9250_s30] sm:$0xff]  }
 0xf2d   :  { %6291 = vmatprep.subr.bf16.mxu0 %v7553_v0  ;;  %6404 = vmatpush3.bf16.msra.mxu1 %v6714_v22 }
 0xf2e   :  { %6405 = vmatprep.subr.bf16.mxu1 %v7553_v0 }
 0xf30   :  { %6292 = vmatpush3.bf16.msra.mxu0 %v8806_v23  ;;  %v6715_v23 = vld [vmem:[%s9250_s30 + $0x8] sm:$0xff]  }
 0xf31   :  { %6293 = vmatprep.subr.bf16.mxu0 %v7553_v0  ;;  %6406 = vmatpush3.bf16.msra.mxu1 %v6715_v23 }
 0xf32   :  { %6407 = vmatprep.subr.bf16.mxu1 %v7553_v0 }
 0xf34   :  { %6294 = vmatpush3.bf16.msra.mxu0 %v8811_v9  ;;  %v6716_v9 = vld [vmem:[%s9250_s30 + $0x10] sm:$0xff]  }
 0xf35   :  { %6295 = vmatprep.subr.bf16.mxu0 %v7553_v0  ;;  %6408 = vmatpush3.bf16.msra.mxu1 %v6716_v9 }
 0xf36   :  { %6409 = vmatprep.subr.bf16.mxu1 %v7553_v0 }
 0xf38   :  { %6296 = vmatpush3.bf16.msra.mxu0 %v8816_v55  ;;  %v6717_v55 = vld [vmem:[%s9250_s30 + $0x18] sm:$0xff]  }
 0xf39   :  { %6297 = vmatprep.subr.bf16.mxu0 %v7553_v0  ;;  %6410 = vmatpush3.bf16.msra.mxu1 %v6717_v55 }
 0xf3a   :  { %6427 = vmatprep.subr.bf16.mxu1 %v7553_v0 }
 0xf3c   :  { %6298 = vmatpush3.bf16.msra.mxu0 %v8821_v14 }
 0xf3d   :  { %6299 = vmatprep.subr.bf16.mxu0 %v7553_v0 }
 0xf40   :  { %6300 = vmatpush3.bf16.msra.mxu0 %v8828_v40 }
 0xf41   :  { %6301 = vmatprep.subr.bf16.mxu0 %v7553_v0 }
 0xf44   :  { %6302 = vmatpush3.bf16.msra.mxu0 %v8834_v46 }
 0xf45   :  { %6339 = vmatprep.subr.bf16.mxu0 %v7553_v0 }
 0xf47   :  { %6304 = vmatmul.mubr.bf16.vlgmr.msra.gmra.mrb[84].mxu0 %v3792_v5 }
 0xf48   :  { %6347 = vmatprep.mubr.msk.bf16.mxu0 %vm7554_vm0, %v7553_v0  ;;  %6340 = vmatpush3.bf16.msra.mxu0 %v6714_v22 }
 0xf49   :  { %6341 = vmatprep.subr.bf16.mxu0 %v7553_v0 }
 0xf4c   :  { %6342 = vmatpush3.bf16.msra.mxu0 %v6715_v23 }
 0xf4d   :  { %6343 = vmatprep.subr.bf16.mxu0 %v7553_v0 }
 0xf50   :  { %6344 = vmatpush3.bf16.msra.mxu0 %v6716_v9 }
 0xf51   :  { %6345 = vmatprep.subr.bf16.mxu0 %v7553_v0 }
 0xf54   :  { %6346 = vmatpush3.bf16.msra.mxu0 %v6717_v55 }
 0xf55   :  { %6351 = vmatprep.subr.bf16.mxu0 %v7553_v0 }
 0xfda   :  { %v3606_v14 = vpop.f32.mrb[76].mxu0 }
 0xfdb   :  { %v3607_v40 = vadd.f32 %v8825_v19, %v3606_v14  ;;  %v6233_v46 = vpop.f32.mrb[77].mxu0 }
 0xfdc   :  { %v3609_v31 = vpop.f32.mrb[78].mxu0 }
 0xfdd   :  { %v3613_v34 = vand.u32 2147483647, %v3607_v40  ;;  %v6234_v61 = vpop.f32.mrb[79].mxu0  ;;  %v3612_v6 = vmax.f32 %v3607_v40, 0.0 }
 0xfdf   :  { %v3614_v38 = vsub.f32 0.0, %v3613_v34  ;;  %v8953_v34 = vld [vmem:[%s9251_s12] sm:$0xff]  }
 0xfe1   :  { %v3615_v52 = vmul.f32 1.442695, %v3614_v38 }
 0xfe3   :  { %6838 = vpow2.f32 %v3615_v52  ;;  %v8965_v52 = vld [vmem:[%s9251_s12 + $0x8] sm:$0xff]  }
 0xfe6   :  { %v3980_v54 = vpop.f32.mrb[92].mxu1 }
 0xfe7   :  { %v6337_v24 = vpop.f32.mrb[93].mxu1  ;;  %v3981_v53 = vadd.f32 %v5284_v7, %v3980_v54  ;;  %v6722_v54 = vld [vmem:[%s9252_s0] sm:$0xff]  }
 0xfe8   :  { %v3983_v20 = vpop.f32.mrb[94].mxu1  ;;  %v6723_v24 = vld [vmem:[%s9252_s0 + $0x8] sm:$0xff]  }
 0xfe9   :  { %v6338_v21 = vpop.f32.mrb[95].mxu1 }
 0xfed   :  { %v6839_v35 = vpop.eup %6838 }
 0xfee   :  { %v3617_v41 = vadd.f32 1.0, %v6839_v35  ;;  %v8943_v42 = vpop.f32.mrb[96].mxu1  ;;  %v3620_v19 = vmul.f32 -0.5, %v6839_v35  ;;  %v3623_v15 = vand.u32 2147483647, %v6839_v35 }
 0xfef   :  { %v6369_v44 = vpop.f32.mrb[97].mxu1 }
 0xff0   :  { %6840 = vlog2.f32 %v3617_v41  ;;  %v4229_v43 = vpop.f32.mrb[98].mxu1  ;;  %v3621_v29 = vadd.f32 1.0, %v3620_v19  ;;  %vm3624_vm6 = vcmp.lt.f32.partialorder %v3623_v15, 0.0004427343 }
 0xff1   :  { %v6370_v63 = vpop.f32.mrb[99].mxu1 }
 0xff2   :  { %v3622_v36 = vmul.f32 %v6839_v35, %v3621_v29  ;;  %v8996_v29 = vld [vmem:[#allocation34] ss:$0 sm:$0xff] }
 0xffa   :  { %v6841_v51 = vpop.eup %6840  ;;  %v3704_v2 = vpop.f32.mrb[80].mxu0 }
 0xffb   :  { %v3619_v3 = vmul.f32 0.6931472, %v6841_v51  ;;  %v6273_v12 = vpop.f32.mrb[81].mxu0 }
 0xffc   :  { %v3707_v8 = vpop.f32.mrb[82].mxu0 }
 0xffd   :  { %v3625_v18 = vsel %vm3624_vm6, %v3622_v36, %v3619_v3  ;;  %v6274_v10 = vpop.f32.mrb[83].mxu0 }
 0xffe   :  { %v3626_v26 = vadd.f32 %v3625_v18, %v3612_v6  ;;  %v8945_v27 = vpop.f32.mrb[100].mxu1 }
 0xfff   :  { %v6389_v25 = vpop.f32.mrb[101].mxu1 }
0x1000   :  { %6842 = vtanh.f32 %v3626_v26  ;;  %v4394_v56 = vpop.f32.mrb[102].mxu1 }
0x1001   :  { %v6390_v57 = vpop.f32.mrb[103].mxu1 }
0x100a   :  { %v6843_v58 = vpop.eup %6842 }
0x100b   :  { %v3628_v28 = vmul.f32 %v6843_v58, %v3607_v40 }
0x100d   :  { %v3669_v59 = vadd.f32 %v8843_v45, %v3628_v28 }
0x100f   :  { %v8948_v62 = vadd.f32 %v3704_v2, %v3669_v59 }
0x101a   :  { %v3898_v33 = vpop.f32.mrb[84].mxu0 }
0x101b   :  { %v3899_v4 = vadd.f32 %v5284_v7, %v3898_v33  ;;  %v6305_v16 = vpop.f32.mrb[85].mxu0 }
0x101c   :  { %v3901_v30 = vpop.f32.mrb[86].mxu0  ;;  %v8999_v16 = vld [vmem:[#allocation39] ss:$0 sm:$0xff] }
0x101d   :  { %v3986_v11 = vmax.f32 %v3899_v4, %v3981_v53  ;;  %v6306_v32 = vpop.f32.mrb[87].mxu0 }
0x101e   :  { %v9004_v32 = vld [vmem:[%s7878_s9] sm:$0xff]  }
0x101f   :  { %v3987_v60 = vsub.f32 %v3899_v4, %v3986_v11  ;;  %v3990_v50 = vsub.f32 %v3981_v53, %v3986_v11 }
0x1021   :  { %v3988_v5 = vmul.f32 1.442695, %v3987_v60  ;;  %v3991_v22 = vmul.f32 1.442695, %v3990_v50  ;;  %v9009_v50 = vld [vmem:[%s7878_s9 + $0x8] sm:$0xff]  }
0x1023   :  { %6844 = vpow2.f32 %v3988_v5  ;;  %v9016_v5 = vld [vmem:[%s7878_s9 + $0x10] sm:$0xff]  }
0x1024   :  { %6846 = vpow2.f32 %v3991_v22  ;;  %v9021_v22 = vld [vmem:[%s7878_s9 + $0x18] sm:$0xff]   ;;  %s9253_s9 = sld [smem:[#allocation84_spill]] }
0x102d   :  { %v6845_v23 = vpop.eup %6844 }
0x102e   :  { %v6847_v45 = vpop.eup %6846 }
0x102f   :  { %v3993_v9 = vadd.f32 %v6847_v45, %v6845_v23 }
0x1031   :  { %6848 = vrcp.f32 %v3993_v9 }
0x103b   :  { %v6849_v55 = vpop.eup %6848 }
0x103c   :  { %v3995_v14 = vmul.f32 %v6849_v55, %v6845_v23  ;;  %v3997_v40 = vmul.f32 %v6849_v55, %v6847_v45  ;;  %v3711_v23 = vadd.f32 %v8889_v17, %v8948_v62 }
0x103e   :  { %v3996_v46 = vmul.f32 %v3995_v14, %v8210_v1  ;;  %v3998_v31 = vmul.f32 %v3997_v40, %v8238_v37  ;;  %v8974_v1 = vld [vmem:[%s9251_s12 + $0x10] sm:$0xff]   ;;  %v8979_v37 = vld [vmem:[%s9251_s12 + $0x18] sm:$0xff]   ;;  %v4479_v45 = vpack.c.bf16 %v3711_v23, %v3711_v23 }
0x1040   :  { %v8955_v61 = vpack.c.bf16 %v3996_v46, %v3996_v46  ;;  %v8957_v38 = vpack.c.bf16 %v3998_v31, %v3998_v31 }
0x1042   :  { %6348 = vmatmul.mubr.msk.bf16.vlgmr.msra.gmra.mrb[88].mxu0 %vm1412_vm12, %v8955_v61  ;;  %6412 = vmatmul.mubr.msk.bf16.vlgmr.msra.gmra.mrb[104].mxu1 %vm1412_vm12, %v8957_v38 }
0x1043   :  { %6352 = vmatpush3.bf16.msra.mxu0 %v8953_v34  ;;  %6359 = vmatprep.mubr.msk.bf16.mxu0 %vm7554_vm0, %v7553_v0 }
0x1044   :  { %6353 = vmatprep.subr.bf16.mxu0 %v7553_v0  ;;  %6431 = vmatprep.mubr.msk.bf16.mxu1 %vm7554_vm0, %v7553_v0 }
0x1045   :  { %6428 = vmatpush3.bf16.msra.mxu1 %v6722_v54 }
0x1046   :  { %6429 = vmatprep.subr.bf16.mxu1 %v7553_v0 }
0x1047   :  { %6354 = vmatpush3.bf16.msra.mxu0 %v8965_v52 }
0x1048   :  { %6355 = vmatprep.subr.bf16.mxu0 %v7553_v0 }
0x1049   :  { %6430 = vmatpush3.bf16.msra.mxu1 %v6723_v24 }
0x104a   :  { %6447 = vmatprep.subr.bf16.mxu1 %v7553_v0 }
0x104b   :  { %6356 = vmatpush3.bf16.msra.mxu0 %v8974_v1 }
0x104c   :  { %6357 = vmatprep.subr.bf16.mxu0 %v7553_v0 }
0x104f   :  { %6358 = vmatpush3.bf16.msra.mxu0 %v8979_v37 }
0x1050   :  { %6371 = vmatprep.subr.bf16.mxu0 %v7553_v0 }
0x1052   :  { %6360 = vmatmul.mubr.msk.bf16.vlgmr.msra.gmra.mrb[92].mxu0 %vm1412_vm12, %v8903_v49 }
0x1053   :  { %6375 = vmatprep.mubr.msk.bf16.mxu0 %vm7554_vm0, %v7553_v0  ;;  %6372 = vmatpush3.bf16.msra.mxu0 %v6722_v54 }
0x1054   :  { %6373 = vmatprep.subr.bf16.mxu0 %v7553_v0 }
0x1057   :  { %6374 = vmatpush3.bf16.msra.mxu0 %v6723_v24 }
0x1058   :  { %6391 = vmatprep.subr.bf16.mxu0 %v7553_v0 }
0x1115   :  { %v4078_v20 = vpop.f32.mrb[88].mxu0  ;;  %v8994_v21 = vpop.f32.mrb[104].mxu1 }
0x1116   :  { %v6349_v49 = vpop.f32.mrb[89].mxu0  ;;  %v6413_v35 = vpop.f32.mrb[105].mxu1 }
0x1117   :  { %v4081_v41 = vpop.f32.mrb[90].mxu0  ;;  %v4521_v44 = vpop.f32.mrb[106].mxu1 }
0x1118   :  { %v6350_v43 = vpop.f32.mrb[91].mxu0  ;;  %v6414_v63 = vpop.f32.mrb[107].mxu1 }
0x1125   :  { %v4145_v19 = vpop.f32.mrb[92].mxu0 }
0x1126   :  { %v4146_v15 = vadd.f32 %v4145_v19, %v4078_v20  ;;  %v6361_v51 = vpop.f32.mrb[93].mxu0 }
0x1127   :  { %v4148_v2 = vpop.f32.mrb[94].mxu0 }
0x1128   :  { %v4158_v3 = vadd.f32 %v8996_v29, %v4146_v15  ;;  %v6362_v36 = vpop.f32.mrb[95].mxu0 }
0x112a   :  { %v4160_v12 = vand.u32 2147483647, %v4158_v3  ;;  %v4159_v59 = vmax.f32 %v4158_v3, 0.0 }
0x112c   :  { %v4161_v6 = vsub.f32 0.0, %v4160_v12 }
0x112e   :  { %v4162_v8 = vmul.f32 1.442695, %v4161_v6 }
0x1130   :  { %6850 = vpow2.f32 %v4162_v8 }
0x113a   :  { %v6851_v18 = vpop.eup %6850 }
0x113b   :  { %v4164_v10 = vadd.f32 1.0, %v6851_v18  ;;  %v4167_v26 = vmul.f32 -0.5, %v6851_v18  ;;  %v4170_v56 = vand.u32 2147483647, %v6851_v18 }
0x113d   :  { %6852 = vlog2.f32 %v4164_v10  ;;  %v4168_v25 = vadd.f32 1.0, %v4167_v26  ;;  %vm4171_vm7 = vcmp.lt.f32.partialorder %v4170_v56, 0.0004427343 }
0x113f   :  { %v4169_v28 = vmul.f32 %v6851_v18, %v4168_v25 }
0x1147   :  { %v6853_v57 = vpop.eup %6852 }
0x1148   :  { %v4166_v58 = vmul.f32 0.6931472, %v6853_v57 }
0x114a   :  { %v4172_v7 = vsel %vm4171_vm7, %v4169_v28, %v4166_v58  ;;  %v9066_v58 = vld [vmem:[#allocation37] ss:$0 sm:$0xff] }
0x114b   :  { %v4173_v33 = vadd.f32 %v4172_v7, %v4159_v59 }
0x114d   :  { %6854 = vtanh.f32 %v4173_v33 }
0x1157   :  { %v6855_v53 = vpop.eup %6854 }
0x1158   :  { %v4175_v4 = vmul.f32 %v6855_v53, %v4158_v3 }
0x115a   :  { %v4232_v30 = vadd.f32 %v8943_v42, %v4175_v4 }
0x115c   :  { %v4240_v11 = vadd.f32 %v8999_v16, %v4232_v30 }
0x115e   :  { %v4241_v60 = vpack.c.bf16 %v4240_v11, %v4240_v11 }
0x1160   :  { %6376 = vmatmul.mubr.msk.bf16.vlgmr.msra.gmra.mrb[96].mxu0 %vm584_vm1, %v4241_v60 }
0x1161   :  { %6392 = vmatpush3.bf16.msra.mxu0 %v9004_v32  ;;  %6399 = vmatprep.mubr.msk.bf16.mxu0 %vm7554_vm0, %v7553_v0 }
0x1162   :  { %6393 = vmatprep.subr.bf16.mxu0 %v7553_v0 }
0x1165   :  { %6394 = vmatpush3.bf16.msra.mxu0 %v9009_v50 }
0x1166   :  { %6395 = vmatprep.subr.bf16.mxu0 %v7553_v0 }
0x1169   :  { %6396 = vmatpush3.bf16.msra.mxu0 %v9016_v5 }
0x116a   :  { %6397 = vmatprep.subr.bf16.mxu0 %v7553_v0 }
0x116d   :  { %6398 = vmatpush3.bf16.msra.mxu0 %v9021_v22 }
0x116e   :  { %6415 = vmatprep.subr.bf16.mxu0 %v7553_v0 }
0x1170   :  { %6400 = vmatmul.mubr.msk.bf16.vlgmr.msra.gmra.mrb[100].mxu0 %vm1412_vm12, %v8955_v61 }
0x1171   :  { %6416 = vmatpush3.bf16.msra.mxu0 %v8953_v34  ;;  %6423 = vmatprep.mubr.msk.bf16.mxu0 %vm7554_vm0, %v7553_v0 }
0x1172   :  { %6417 = vmatprep.subr.bf16.mxu0 %v7553_v0 }
0x1175   :  { %6418 = vmatpush3.bf16.msra.mxu0 %v8965_v52 }
0x1176   :  { %6419 = vmatprep.subr.bf16.mxu0 %v7553_v0 }
0x1179   :  { %6420 = vmatpush3.bf16.msra.mxu0 %v8974_v1 }
0x117a   :  { %6421 = vmatprep.subr.bf16.mxu0 %v7553_v0 }
0x117d   :  { %6422 = vmatpush3.bf16.msra.mxu0 %v8979_v37 }
0x117e   :  { %6435 = vmatprep.subr.bf16.mxu0 %v7553_v0 }
0x1180   :  { %6424 = vmatmul.mubr.msk.bf16.vlgmr.msra.gmra.mrb[104].mxu0 %vm1412_vm12, %v4479_v45 }
0x1181   :  { %6436 = vmatpush3.bf16.msra.mxu0 %v8867_v13  ;;  %6443 = vmatprep.mubr.msk.bf16.mxu0 %vm7554_vm0, %v7553_v0  ;;  %v6728_v13 = vld [vmem:[%s9253_s9] sm:$0xff]  }
0x1182   :  { %6437 = vmatprep.subr.bf16.mxu0 %v7553_v0 }
0x1185   :  { %6438 = vmatpush3.bf16.msra.mxu0 %v8876_v39  ;;  %v6729_v39 = vld [vmem:[%s9253_s9 + $0x8] sm:$0xff]  }
0x1186   :  { %6439 = vmatprep.subr.bf16.mxu0 %v7553_v0 }
0x1189   :  { %6440 = vmatpush3.bf16.msra.mxu0 %v8885_v47  ;;  %v9058_v47 = vld [vmem:[#allocation36] ss:$0 sm:$0xff] }
0x118a   :  { %6441 = vmatprep.subr.bf16.mxu0 %v7553_v0 }
0x118d   :  { %6442 = vmatpush3.bf16.msra.mxu0 %v8894_v48 }
0x118e   :  { %6459 = vmatprep.subr.bf16.mxu0 %v7553_v0 }
0x1190   :  { %6444 = vmatmul.mubr.msk.bf16.vlgmr.msra.gmra.mrb[108].mxu0 %vm1412_vm12, %v4479_v45 }
0x1191   :  { %6463 = vmatprep.mubr.msk.bf16.mxu0 %vm7554_vm0, %v7553_v0  ;;  %6460 = vmatpush3.bf16.msra.mxu0 %v6728_v13 }
0x1192   :  { %6461 = vmatprep.subr.bf16.mxu0 %v7553_v0 }
0x1195   :  { %6462 = vmatpush3.bf16.msra.mxu0 %v6729_v39 }
0x1196   :  { %6475 = vmatprep.subr.bf16.mxu0 %v7553_v0 }
0x1233   :  { %v4302_v17 = vpop.f32.mrb[96].mxu0 }
0x1234   :  { %v4303_v48 = vadd.f32 %v9058_v47, %v4302_v17  ;;  %v6377_v62 = vpop.f32.mrb[97].mxu0 }
0x1235   :  { %v4305_v9 = vpop.f32.mrb[98].mxu0 }
0x1236   :  { %v4309_v55 = vand.u32 2147483647, %v4303_v48  ;;  %v6378_v14 = vpop.f32.mrb[99].mxu0  ;;  %v4308_v19 = vmax.f32 %v4303_v48, 0.0 }
0x1238   :  { %v4310_v40 = vsub.f32 0.0, %v4309_v55 }
0x123a   :  { %v4311_v46 = vmul.f32 1.442695, %v4310_v40 }
0x123c   :  { %6856 = vpow2.f32 %v4311_v46 }
0x1243   :  { %v4464_v31 = vpop.f32.mrb[100].mxu0 }
0x1244   :  { %v6401_v34 = vpop.f32.mrb[101].mxu0 }
0x1245   :  { %v4467_v61 = vpop.f32.mrb[102].mxu0 }
0x1246   :  { %v6857_v52 = vpop.eup %6856  ;;  %v6402_v1 = vpop.f32.mrb[103].mxu0 }
0x1247   :  { %v4313_v37 = vadd.f32 1.0, %v6857_v52  ;;  %v4316_v54 = vmul.f32 -0.5, %v6857_v52  ;;  %v4319_v20 = vand.u32 2147483647, %v6857_v52 }
0x1249   :  { %6858 = vlog2.f32 %v4313_v37  ;;  %v4317_v24 = vadd.f32 1.0, %v4316_v54  ;;  %vm4320_vm8 = vcmp.lt.f32.partialorder %v4319_v20, 0.0004427343 }
0x124b   :  { %v4318_v44 = vmul.f32 %v6857_v52, %v4317_v24 }
0x1253   :  { %v6859_v49 = vpop.eup %6858  ;;  %v4561_v35 = vpop.f32.mrb[104].mxu0 }
0x1254   :  { %v4315_v41 = vmul.f32 0.6931472, %v6859_v49  ;;  %v4562_v43 = vadd.f32 %v4561_v35, %v8994_v21  ;;  %v6425_v63 = vpop.f32.mrb[105].mxu0 }
0x1255   :  { %v4564_v15 = vpop.f32.mrb[106].mxu0 }
0x1256   :  { %v4321_v51 = vsel %vm4320_vm8, %v4318_v44, %v4315_v41  ;;  %v4567_v2 = vadd.f32 %v8996_v29, %v4562_v43  ;;  %v6426_v3 = vpop.f32.mrb[107].mxu0 }
0x1257   :  { %v4322_v36 = vadd.f32 %v4321_v51, %v4308_v19 }
0x1258   :  { %v4569_v12 = vand.u32 2147483647, %v4567_v2  ;;  %v4568_v23 = vmax.f32 %v4567_v2, 0.0 }
0x1259   :  { %6860 = vtanh.f32 %v4322_v36 }
0x125a   :  { %v4570_v6 = vsub.f32 0.0, %v4569_v12 }
0x125c   :  { %v4571_v8 = vmul.f32 1.442695, %v4570_v6 }
0x125e   :  { %6862 = vpow2.f32 %v4571_v8 }
0x1263   :  { %v6861_v18 = vpop.eup %6860  ;;  %v9063_v10 = vpop.f32.mrb[108].mxu0 }
0x1264   :  { %v4324_v26 = vmul.f32 %v6861_v18, %v4303_v48  ;;  %v6445_v25 = vpop.f32.mrb[109].mxu0 }
0x1265   :  { %v4685_v21 = vpop.f32.mrb[110].mxu0 }
0x1266   :  { %v4397_v56 = vadd.f32 %v8945_v27, %v4324_v26  ;;  %v6446_v57 = vpop.f32.mrb[111].mxu0 }
0x1268   :  { %v6863_v28 = vpop.eup %6862  ;;  %v4470_v29 = vadd.f32 %v4464_v31, %v4397_v56 }
0x1269   :  { %v4573_v59 = vadd.f32 1.0, %v6863_v28  ;;  %v4576_v53 = vmul.f32 -0.5, %v6863_v28  ;;  %v4579_v30 = vand.u32 2147483647, %v6863_v28 }
0x126a   :  { %v4478_v7 = vadd.f32 %v9066_v58, %v4470_v29 }
0x126b   :  { %6864 = vlog2.f32 %v4573_v59  ;;  %v4577_v4 = vadd.f32 1.0, %v4576_v53  ;;  %vm4580_vm9 = vcmp.lt.f32.partialorder %v4579_v30, 0.0004427343 }
0x126c   :  { %v4731_v33 = vpack.c.bf16 %v4478_v7, %v4478_v7 }
0x126d   :  { %v4578_v60 = vmul.f32 %v6863_v28, %v4577_v4 }
0x126e   :  { %6464 = vmatmul.mubr.msk.bf16.vlgmr.msra.gmra.mrb[112].mxu0 %vm584_vm1, %v4731_v33 }
0x126f   :  { %6479 = vmatprep.mubr.msk.bf16.mxu0 %vm7554_vm0, %v7553_v0 }
0x1275   :  { %v6865_v11 = vpop.eup %6864 }
0x1276   :  { %v4575_v27 = vmul.f32 0.6931472, %v6865_v11 }
0x1278   :  { %v4581_v45 = vsel %vm4580_vm9, %v4578_v60, %v4575_v27 }
0x1279   :  { %v4582_v13 = vadd.f32 %v4581_v45, %v4568_v23 }
0x127b   :  { %6866 = vtanh.f32 %v4582_v13 }
0x1285   :  { %v6867_v39 = vpop.eup %6866 }
0x1286   :  { %v4584_v17 = vmul.f32 %v6867_v39, %v4567_v2  ;;  %v6734_v39 = vld [vmem:[%s9254_s3] sm:$0xff]  }
0x1288   :  { %v4585_v48 = vadd.f32 %v4584_v17, %v8943_v42  ;;  %v6730_v42 = vld [vmem:[%s9254_s3] sm:$0xff]   ;;  %v6735_v17 = vld [vmem:[%s9254_s3 + $0x8] sm:$0xff]  }
0x128a   :  { %v4586_v62 = vadd.f32 %v8999_v16, %v4585_v48  ;;  %v6731_v16 = vld [vmem:[%s9254_s3 + $0x8] sm:$0xff]   ;;  %v5333_v48 = vld [vmem:[%s9256_s4] ss:$0 sm:$0xff] }
0x128c   :  { %v4587_v9 = vpack.c.bf16 %v4586_v62, %v4586_v62 }
0x128e   :  { %6432 = vmatmul.mubr.msk.bf16.vlgmr.msra.gmra.mrb[108].mxu1 %vm584_vm1, %v4587_v9 }
0x128f   :  { %6448 = vmatpush3.bf16.msra.mxu1 %v9004_v32  ;;  %6455 = vmatprep.mubr.msk.bf16.mxu1 %vm7554_vm0, %v7553_v0  ;;  %v6732_v32 = vld [vmem:[%s9253_s9] sm:$0xff]  }
0x1290   :  { %6449 = vmatprep.subr.bf16.mxu1 %v7553_v0  ;;  %6476 = vmatpush3.bf16.msra.mxu0 %v6732_v32 }
0x1291   :  { %6477 = vmatprep.subr.bf16.mxu0 %v7553_v0 }
0x1293   :  { %6450 = vmatpush3.bf16.msra.mxu1 %v9009_v50  ;;  %v6733_v50 = vld [vmem:[%s9253_s9 + $0x8] sm:$0xff]  }
0x1294   :  { %6451 = vmatprep.subr.bf16.mxu1 %v7553_v0  ;;  %6478 = vmatpush3.bf16.msra.mxu0 %v6733_v50 }
0x1297   :  { %6452 = vmatpush3.bf16.msra.mxu1 %v9016_v5  ;;  %v9097_v5 = vld [vmem:[%s9255_s25] ss:$0 sm:$0xff] }
0x1298   :  { %6453 = vmatprep.subr.bf16.mxu1 %v7553_v0 }
0x129b   :  { %6454 = vmatpush3.bf16.msra.mxu1 %v9021_v22 }
0x129c   :  { %6467 = vmatprep.subr.bf16.mxu1 %v7553_v0 }
0x129e   :  { %6456 = vmatmul.mubr.msk.bf16.vlgmr.msra.gmra.mrb[112].mxu1 %vm1412_vm12, %v8957_v38 }
0x129f   :  { %6471 = vmatprep.mubr.msk.bf16.mxu1 %vm7554_vm0, %v7553_v0  ;;  %6468 = vmatpush3.bf16.msra.mxu1 %v6730_v42 }
0x12a0   :  { %6469 = vmatprep.subr.bf16.mxu1 %v7553_v0 }
0x12a3   :  { %6470 = vmatpush3.bf16.msra.mxu1 %v6731_v16 }
0x12a4   :  { %6483 = vmatprep.subr.bf16.mxu1 %v7553_v0 }
0x1341   :  { %v4792_v38 = vpop.f32.mrb[112].mxu0 }
0x1342   :  { %v4793_v22 = vadd.f32 %v9097_v5, %v4792_v38  ;;  %v6465_v55 = vpop.f32.mrb[113].mxu0 }
0x1343   :  { %v4795_v14 = vpop.f32.mrb[114].mxu0 }
0x1344   :  { %v4799_v40 = vand.u32 2147483647, %v4793_v22  ;;  %v6466_v46 = vpop.f32.mrb[115].mxu0  ;;  %v4798_v43 = vmax.f32 %v4793_v22, 0.0 }
0x1346   :  { %v4800_v31 = vsub.f32 0.0, %v4799_v40 }
0x1348   :  { %v4801_v34 = vmul.f32 1.442695, %v4800_v31 }
0x134a   :  { %6868 = vpow2.f32 %v4801_v34 }
0x1354   :  { %v6869_v61 = vpop.eup %6868 }
0x1355   :  { %v4803_v52 = vadd.f32 1.0, %v6869_v61  ;;  %v4806_v1 = vmul.f32 -0.5, %v6869_v61  ;;  %v4809_v54 = vand.u32 2147483647, %v6869_v61 }
0x1357   :  { %6870 = vlog2.f32 %v4803_v52  ;;  %v4807_v37 = vadd.f32 1.0, %v4806_v1  ;;  %vm4810_vm10 = vcmp.lt.f32.partialorder %v4809_v54, 0.0004427343 }
0x1359   :  { %v4808_v35 = vmul.f32 %v6869_v61, %v4807_v37 }
0x1361   :  { %v6871_v24 = vpop.eup %6870  ;;  %v4625_v20 = vpop.f32.mrb[108].mxu1 }
0x1362   :  { %v4805_v49 = vmul.f32 0.6931472, %v6871_v24  ;;  %v4626_v41 = vadd.f32 %v9058_v47, %v4625_v20  ;;  %v6433_v44 = vpop.f32.mrb[109].mxu1 }
0x1363   :  { %v4628_v63 = vpop.f32.mrb[110].mxu1 }
0x1364   :  { %v4811_v19 = vsel %vm4810_vm10, %v4808_v35, %v4805_v49  ;;  %v4632_v15 = vand.u32 2147483647, %v4626_v41  ;;  %v6434_v51 = vpop.f32.mrb[111].mxu1  ;;  %v4631_v53 = vmax.f32 %v4626_v41, 0.0 }
0x1365   :  { %v4812_v2 = vadd.f32 %v4811_v19, %v4798_v43 }
0x1366   :  { %v4633_v3 = vsub.f32 0.0, %v4632_v15 }
0x1367   :  { %6872 = vtanh.f32 %v4812_v2 }
0x1368   :  { %v4634_v36 = vmul.f32 1.442695, %v4633_v3 }
0x136a   :  { %6874 = vpow2.f32 %v4634_v36 }
0x1371   :  { %v6873_v12 = vpop.eup %6872  ;;  %v4723_v6 = vpop.f32.mrb[112].mxu1 }
0x1372   :  { %v4814_v8 = vmul.f32 %v6873_v12, %v4793_v22  ;;  %v6457_v18 = vpop.f32.mrb[113].mxu1 }
0x1373   :  { %v4726_v26 = vpop.f32.mrb[114].mxu1 }
0x1374   :  { %v6875_v25 = vpop.eup %6874  ;;  %v4815_v21 = vpack.c.bf16 %v4814_v8, %v4814_v8  ;;  %v6458_v47 = vpop.f32.mrb[115].mxu1 }
0x1375   :  { %v4636_v56 = vadd.f32 1.0, %v6875_v25  ;;  %v4639_v57 = vmul.f32 -0.5, %v6875_v25  ;;  %v4642_v29 = vand.u32 2147483647, %v6875_v25 }
0x1376   :  { %6472 = vmatmul.mubr.msk.bf16.vlgmr.msra.gmra.mrb[116].mxu1 %vm584_vm1, %v4815_v21 }
0x1377   :  { %6876 = vlog2.f32 %v4636_v56  ;;  %6487 = vmatprep.mubr.msk.bf16.mxu1 %vm7554_vm0, %v7553_v0  ;;  %v4640_v28 = vadd.f32 1.0, %v4639_v57  ;;  %vm4643_vm11 = vcmp.lt.f32.partialorder %v4642_v29, 0.0004427343  ;;  %6484 = vmatpush3.bf16.msra.mxu1 %v6734_v39  ;;  %vm4882_vm0 = vcmask 58368  }
0x1378   :  { %6485 = vmatprep.subr.bf16.mxu1 %v7553_v0 }
0x1379   :  { %v4641_v33 = vmul.f32 %v6875_v25, %v4640_v28 }
0x137b   :  { %6486 = vmatpush3.bf16.msra.mxu1 %v6735_v17 }
0x1381   :  { %v6877_v59 = vpop.eup %6876 }
0x1382   :  { %v4638_v7 = vmul.f32 0.6931472, %v6877_v59 }
0x1384   :  { %v4644_v4 = vsel %vm4643_vm11, %v4641_v33, %v4638_v7 }
0x1385   :  { %v4645_v30 = vadd.f32 %v4644_v4, %v4631_v53 }
0x1387   :  { %6878 = vtanh.f32 %v4645_v30 }
0x1391   :  { %v6879_v11 = vpop.eup %6878 }
0x1392   :  { %v4647_v27 = vmul.f32 %v6879_v11, %v4626_v41 }
0x1394   :  { %v4688_v60 = vadd.f32 %v9063_v10, %v4647_v27 }
0x1396   :  { %v4729_v23 = vadd.f32 %v4723_v6, %v4688_v60 }
0x1398   :  { %v4730_v45 = vadd.f32 %v9066_v58, %v4729_v23 }
0x139a   :  { %v4884_v13 = vpack.c.bf16 %v4730_v45, %v4730_v45 }
0x139c   :  { %6480 = vmatmul.mubr.msk.bf16.vlgmr.msra.gmra.mrb[116].mxu0 %vm584_vm1, %v4884_v13 }
0x1449   :  { %v4876_v62 = vpop.f32.mrb[116].mxu1 }
0x144a   :  { %v4877_v9 = vadd.f32 %v5333_v48, %v4876_v62  ;;  %v6473_v42 = vpop.f32.mrb[117].mxu1 }
0x144b   :  { %v4879_v16 = vpop.f32.mrb[118].mxu1 }
0x144c   :  { %4883 = vst.msk [vmem:[%s7893_s19] sm:$0x3] %vm4882_vm0, %v4877_v9  ;;  %v6474_v10 = vpop.f32.mrb[119].mxu1 }
0x146f   :  { %v4945_v32 = vpop.f32.mrb[116].mxu0 }
0x1470   :  { %v4946_v58 = vadd.f32 %v9097_v5, %v4945_v32  ;;  %v6481_v50 = vpop.f32.mrb[117].mxu0 }
0x1471   :  { %v4948_v38 = vpop.f32.mrb[118].mxu0 }
0x1472   :  { %v4952_v22 = vand.u32 2147483647, %v4946_v58  ;;  %v6482_v55 = vpop.f32.mrb[119].mxu0  ;;  %v4951_v54 = vmax.f32 %v4946_v58, 0.0 }
0x1474   :  { %v4953_v14 = vsub.f32 0.0, %v4952_v22 }
0x1476   :  { %v4954_v0 = vmul.f32 1.442695, %v4953_v14 }
0x1478   :  { %6880 = vpow2.f32 %v4954_v0 }
0x1482   :  { %v6881_v40 = vpop.eup %6880 }
0x1483   :  { %v4956_v46 = vadd.f32 1.0, %v6881_v40  ;;  %v4959_v31 = vmul.f32 -0.5, %v6881_v40  ;;  %v4962_v61 = vand.u32 2147483647, %v6881_v40 }
0x1485   :  { %6882 = vlog2.f32 %v4956_v46  ;;  %v4960_v34 = vadd.f32 1.0, %v4959_v31  ;;  %vm4963_vm12 = vcmp.lt.f32.partialorder %v4962_v61, 0.0004427343 }
0x1487   :  { %v4961_v37 = vmul.f32 %v6881_v40, %v4960_v34 }
0x148f   :  { %v6883_v52 = vpop.eup %6882 }
0x1490   :  { %v4958_v1 = vmul.f32 0.6931472, %v6883_v52 }
0x1492   :  { %v4964_v5 = vsel %vm4963_vm12, %v4961_v37, %v4958_v1 }
0x1493   :  { %v4965_v24 = vadd.f32 %v4964_v5, %v4951_v54 }
0x1495   :  { %6884 = vtanh.f32 %v4965_v24 }
0x149f   :  { %v6885_v20 = vpop.eup %6884 }
0x14a0   :  { %v4967_v49 = vmul.f32 %v6885_v20, %v4946_v58 }
0x14a2   :  { %v4968_v35 = vpack.c.bf16 %v4967_v49, %v4967_v49 }
0x14a4   :  { %6488 = vmatmul.mubr.msk.bf16.vlgmr.msra.gmra.mrb[120].mxu1 %vm584_vm1, %v4968_v35 }
0x1577   :  { %v5029_v41 = vpop.f32.mrb[120].mxu1 }
0x1578   :  { %v5030_v44 = vadd.f32 %v5333_v48, %v5029_v41  ;;  %v6489_v43 = vpop.f32.mrb[121].mxu1 }
0x1579   :  { %v5032_v63 = vpop.f32.mrb[122].mxu1 }
0x157a   :  { %5345 = vst.msk [vmem:[%s7893_s19 + $0x2] sm:$0x3] %vm4882_vm0, %v5030_v44  ;;  %v6490_v19 = vpop.f32.mrb[123].mxu1 }
0x157b   :  { %5041 = vsyncpa [#allocation3], 1 }
0x157c   :  { %5042 = vsyncpa [#allocation5], 1 }
0x157d   :  { %5043 = vsyncpa [#allocation8], 1 }
0x157e   :  { %5044 = vsyncpa [#allocation11], 1 }
0x157f   :  { %5045 = vsyncpa [#allocation14], 1 }
0x1580   :  { %5046 = vsyncpa [#allocation17], 1 }
0x1581   :  { %5047 = vsyncpa [#allocation20], 1 }
0x1582   :  { %5048 = vsyncpa [#allocation23], 1 }
0x1583   :  { %5049 = vsyncpa [#allocation26], 1 }
0x1584   :  { %5050 = vsyncpa [#allocation29], 1 }
0x1585   :  { %5051 = vsyncpa [#allocation32], 1 }
0x1586   :  { %5052 = vsyncpa [#allocation35], 1 }
0x1587   :  { %5053 = vsyncpa [#allocation38], 1 }

</bundles_post_ra>
